<compile_context>
chip_gen: v5e
topology: v5e:2x2
jax: 0.10.0
libtpu: 0.0.40
codegen_flags: <defaults>
</compile_context>

<pallas_src>
import jax
import jax.numpy as jnp
from jax.experimental import pallas as pl
from jax.experimental.pallas import tpu as pltpu

# ---- model hyper-params (small, deterministic synthetic setup) --------------
VOCAB = 64
EMB = 32
HID = 32
OUT = 8
N_LAYERS = 2
BIDIR = True          # required: forward uses hidden[-2] and hidden[-1]
PAD_IDX = 0
BATCH = 2
SEQ = 8
BATCH_PAD = 8         # pad batch rows to a full f32 sublane tile


# ---------------------------------------------------------------------------
# Single fused Pallas kernel: (pre-gathered embeddings) -> 2 x biGRU -> Linear
# ---------------------------------------------------------------------------
def fused_gru_kernel(x_ref, wih0_ref, wih1_ref, whh_ref, gib_ref, hnb_ref,
                     fcw_ref, fcb_ref, out_ref,
                     gi_f_s, gi_b_s, ho_f_s, ho_b_s):
    T, BP, H = SEQ, BATCH_PAD, HID
    H2, H3 = 2 * HID, 3 * HID

    # ---- layer-0 prologue: hoisted input->hidden matmul for ALL timesteps ----
    x0 = x_ref[...]                                                  # [T*BP, EMB]
    gi_f_s[...] = (jnp.dot(x0, wih0_ref[0], preferred_element_type=jnp.float32)
                   + gib_ref[0])                                     # [T*BP, 3H]
    gi_b_s[...] = (jnp.dot(x0, wih0_ref[1], preferred_element_type=jnp.float32)
                   + gib_ref[1])

    hf = jnp.zeros((BP, H), jnp.float32)
    hb = jnp.zeros((BP, H), jnp.float32)

    for layer in range(N_LAYERS):
        kf, kb = 2 * layer, 2 * layer + 1
        last = layer == N_LAYERS - 1

        # b_hh_n broadcasts hoisted out of the unrolled time loop
        bhn_f = jnp.broadcast_to(hnb_ref[kf], (BP, H))
        bhn_b = jnp.broadcast_to(hnb_ref[kb], (BP, H))

        hf = jnp.zeros((BP, H), jnp.float32)
        hb = jnp.zeros((BP, H), jnp.float32)

        # ---- fused fwd/bwd recurrence, fully unrolled (static T=8) -----------
        # one gate-fused [BP,H]x[H,3H] matmul per direction per step
        for s in range(T):
            lo_f = s * BP                                            # fwd: time s
            lo_b = (T - 1 - s) * BP                                  # bwd: time T-1-s

            gi_f = gi_f_s[lo_f:lo_f + BP, :]                         # [BP, 3H]
            gi_b = gi_b_s[lo_b:lo_b + BP, :]
            gh_f = jnp.dot(hf, whh_ref[kf], preferred_element_type=jnp.float32)
            gh_b = jnp.dot(hb, whh_ref[kb], preferred_element_type=jnp.float32)

            r_f = jax.nn.sigmoid(gi_f[:, 0:H] + gh_f[:, 0:H])
            z_f = jax.nn.sigmoid(gi_f[:, H:H2] + gh_f[:, H:H2])
            n_f = jnp.tanh(gi_f[:, H2:H3] + r_f * (gh_f[:, H2:H3] + bhn_f))

            r_b = jax.nn.sigmoid(gi_b[:, 0:H] + gh_b[:, 0:H])
            z_b = jax.nn.sigmoid(gi_b[:, H:H2] + gh_b[:, H:H2])
            n_b = jnp.tanh(gi_b[:, H2:H3] + r_b * (gh_b[:, H2:H3] + bhn_b))

            hf = n_f + z_f * (hf - n_f)                              # (1-z)*n + z*h
            hb = n_b + z_b * (hb - n_b)

            if not last:
                ho_f_s[lo_f:lo_f + BP, :] = hf                       # time order
                ho_b_s[lo_b:lo_b + BP, :] = hb                       # time order

        # ---- next-layer prologue: gi = x_fwd @ W_top + x_bwd @ W_bot + bias --
        if not last:
            xf = ho_f_s[...]                                         # [T*BP, H]
            xb = ho_b_s[...]
            gi_f_s[...] = (
                jnp.dot(xf, wih1_ref[0], preferred_element_type=jnp.float32)
                + jnp.dot(xb, wih1_ref[1], preferred_element_type=jnp.float32)
                + gib_ref[2])
            gi_b_s[...] = (
                jnp.dot(xf, wih1_ref[2], preferred_element_type=jnp.float32)
                + jnp.dot(xb, wih1_ref[3], preferred_element_type=jnp.float32)
                + gib_ref[3])

    # ---- final hidden = [fwd_final | bwd_final]; Linear as two half-matmuls --
    out_ref[...] = (jnp.dot(hf, fcw_ref[0], preferred_element_type=jnp.float32)
                    + jnp.dot(hb, fcw_ref[1], preferred_element_type=jnp.float32)
                    + fcb_ref[...])


# ---------------------------------------------------------------------------
# Wrapper: pack weights into kernel-friendly layouts and launch once.
# ---------------------------------------------------------------------------
@jax.jit
def gru_model_forward(text, text_lengths, params):
    del text_lengths  # unused by the reference forward
    B, T = text.shape
    BP, H = BATCH_PAD, HID

    # time-major indices, batch padded to BP rows with PAD_IDX (zero embedding);
    # embedding gathered here (tiny XLA gather) so the kernel gets f32 directly.
    idx_tm = jnp.transpose(text)                                     # [T, B]
    idx_pad = jnp.full((T, BP), PAD_IDX, jnp.int32).at[:, :B].set(idx_tm)
    x = params["embedding"][idx_pad.reshape(T * BP)]                 # [T*BP, EMB]

    def pack_dir(w_ih, w_hh, b_ih, b_hh):
        wih_t = jnp.transpose(w_ih)                                  # [Din, 3H] cols r|z|n
        whh_t = jnp.transpose(w_hh)                                  # [H, 3H]  cols r|z|n
        gi_b = jnp.concatenate([b_ih[:H] + b_hh[:H],
                                b_ih[H:2 * H] + b_hh[H:2 * H],
                                b_ih[2 * H:]])                       # [3H]
        hn_b = b_hh[2 * H:]                                          # [H]
        return wih_t, whh_t, gi_b, hn_b

    wih0_list, wih1_list, whh_list, gib_list, hnb_list = [], [], [], [], []
    for l in range(N_LAYERS):
        for d in ("fwd", "bwd"):
            wih_t, whh_t, gi_b, hn_b = pack_dir(*params["gru"][l][d])
            if l == 0:
                wih0_list.append(wih_t)                              # [EMB, 3H]
            else:
                wih1_list.append(wih_t.reshape(2, H, 3 * H))         # top/bot halves
            whh_list.append(whh_t)
            gib_list.append(gi_b)
            hnb_list.append(hn_b)

    wih0 = jnp.stack(wih0_list)                                      # [2, EMB, 3H]
    wih1 = jnp.concatenate(wih1_list, axis=0)                        # [4, H, 3H]
    whh = jnp.stack(whh_list)                                        # [4, H, 3H]
    gib = jnp.stack(gib_list).reshape(2 * N_LAYERS, 1, 3 * H)        # [4, 1, 3H]
    hnb = jnp.stack(hnb_list).reshape(2 * N_LAYERS, 1, H)            # [4, 1, H]
    fcw = jnp.transpose(params["fc_w"]).reshape(2, H, OUT)           # [2, H, OUT]
    fcb = params["fc_b"].reshape(1, OUT)

    out = pl.pallas_call(
        fused_gru_kernel,
        out_shape=jax.ShapeDtypeStruct((BP, OUT), jnp.float32),
        in_specs=[
            pl.BlockSpec((T * BP, EMB)),
            pl.BlockSpec((2, EMB, 3 * H)),
            pl.BlockSpec((4, H, 3 * H)),
            pl.BlockSpec((4, H, 3 * H)),
            pl.BlockSpec((4, 1, 3 * H)),
            pl.BlockSpec((4, 1, H)),
            pl.BlockSpec((2, H, OUT)),
            pl.BlockSpec((1, OUT)),
        ],
        out_specs=pl.BlockSpec((BP, OUT)),
        scratch_shapes=[
            pltpu.VMEM((T * BP, 3 * H), jnp.float32),   # gi fwd (current layer)
            pltpu.VMEM((T * BP, 3 * H), jnp.float32),   # gi bwd (current layer)
            pltpu.VMEM((T * BP, H), jnp.float32),       # layer outputs fwd (time order)
            pltpu.VMEM((T * BP, H), jnp.float32),       # layer outputs bwd (time order)
        ],
    )(x, wih0, wih1, whh, gib, hnb, fcw, fcb)
    return out[:B]


# ---------------------------------------------------------------------------
# Pure-JAX reference (for a self-check), same math as PyTorch GRU eval forward
# ---------------------------------------------------------------------------
def gru_reference(text, params):
    x = params["embedding"][jnp.transpose(text)]                     # [T, B, E]
    finals = []
    for l in range(N_LAYERS):
        outs, finals = [], []
        for d, (w_ih, w_hh, b_ih, b_hh) in enumerate(
                (params["gru"][l]["fwd"], params["gru"][l]["bwd"])):
            xs = x if d == 0 else x[::-1]
            h = jnp.zeros((x.shape[1], HID), jnp.float32)
            hs = []
            for t in range(SEQ):
                gi = xs[t] @ w_ih.T + b_ih
                gh = h @ w_hh.T + b_hh
                r = jax.nn.sigmoid(gi[:, :HID] + gh[:, :HID])
                z = jax.nn.sigmoid(gi[:, HID:2 * HID] + gh[:, HID:2 * HID])
                n = jnp.tanh(gi[:, 2 * HID:] + r * gh[:, 2 * HID:])
                h = (1.0 - z) * n + z * h
                hs.append(h)
            outs.append(jnp.stack(hs) if d == 0 else jnp.stack(hs)[::-1])
            finals.append(h)
        x = jnp.concatenate(outs, axis=-1)
    hidden = jnp.concatenate(finals, axis=-1)
    return hidden @ params["fc_w"].T + params["fc_b"]


# ---------------------------------------------------------------------------
# Deterministic parameter init (shapes match the nn.Module __init__)
# ---------------------------------------------------------------------------
def init_params(key):
    keys = iter(jax.random.split(key, 64))

    def u(shape, scale):
        return jax.random.uniform(next(keys), shape, jnp.float32, -scale, scale)

    emb = u((VOCAB, EMB), 1.0)
    emb = emb.at[PAD_IDX].set(0.0)          # padding_idx row zeroed

    s = 1.0 / float(HID) ** 0.5
    gru = []
    for l in range(N_LAYERS):
        din = EMB if l == 0 else 2 * HID
        layer = {}
        for d in ("fwd", "bwd"):
            layer[d] = (u((3 * HID, din), s),   # weight_ih_l{l}
                        u((3 * HID, HID), s),   # weight_hh_l{l}
                        u((3 * HID,), s),       # bias_ih_l{l}
                        u((3 * HID,), s))       # bias_hh_l{l}
        gru.append(layer)

    s_fc = 1.0 / float(2 * HID) ** 0.5
    fc_w = u((OUT, 2 * HID), s_fc)
    fc_b = u((OUT,), s_fc)
    return {"embedding": emb, "gru": gru, "fc_w": fc_w, "fc_b": fc_b}


if __name__ == "__main__":
    key = jax.random.PRNGKey(0)
    k_param, k_text = jax.random.split(key)

    params = init_params(k_param)
    text = jax.random.randint(k_text, (BATCH, SEQ), 0, VOCAB, dtype=jnp.int32)
    text_lengths = jnp.full((BATCH,), SEQ, dtype=jnp.int32)

    out = gru_model_forward(text, text_lengths, params)
    jax.block_until_ready(out)
    assert out.shape == (BATCH, OUT) and out.dtype == jnp.float32

    ref = gru_reference(text, params)
    err = float(jnp.max(jnp.abs(out - ref)))
    assert err < 1e-4, f"mismatch vs pure-JAX reference: {err}"

    print("KERNEL_OK")
</pallas_src>

<mosaic_0001>
module attributes {stable_mosaic.version = 11 : i64} {
  func.func @fused_gru_kernel(%arg0: memref<64x32xf32, #tpu.memory_space<vmem>>, %arg1: memref<2x32x96xf32, #tpu.memory_space<vmem>>, %arg2: memref<4x32x96xf32, #tpu.memory_space<vmem>>, %arg3: memref<4x32x96xf32, #tpu.memory_space<vmem>>, %arg4: memref<4x1x96xf32, #tpu.memory_space<vmem>>, %arg5: memref<4x1x32xf32, #tpu.memory_space<vmem>>, %arg6: memref<2x32x8xf32, #tpu.memory_space<vmem>>, %arg7: memref<1x8xf32, #tpu.memory_space<vmem>>, %arg8: memref<8x8xf32, #tpu.memory_space<vmem>>, %arg9: memref<64x96xf32, #tpu.memory_space<vmem>>, %arg10: memref<64x96xf32, #tpu.memory_space<vmem>>, %arg11: memref<64x32xf32, #tpu.memory_space<vmem>>, %arg12: memref<64x32xf32, #tpu.memory_space<vmem>>) attributes {dimension_semantics = [], scalar_prefetch = 0 : i64, scratch_operands = 4 : i64, tpu.core_type = #tpu.core_type<tc>} {
    %c0 = arith.constant 0 : index
    %c0_0 = arith.constant 0 : index
    %0 = vector.load %arg0[%c0, %c0_0] : memref<64x32xf32, #tpu.memory_space<vmem>>, vector<64x32xf32>
    %c0_1 = arith.constant 0 : index
    %c0_2 = arith.constant 0 : index
    %c0_3 = arith.constant 0 : index
    %1 = vector.load %arg1[%c0_1, %c0_2, %c0_3] : memref<2x32x96xf32, #tpu.memory_space<vmem>>, vector<1x32x96xf32>
    %2 = vector.shape_cast %1 : vector<1x32x96xf32> to vector<32x96xf32>
    %cst = arith.constant dense<0.000000e+00> : vector<64x96xf32>
    %3 = tpu.matmul %0, %2, %cst {dimension_numbers = #tpu.dot_dimension_numbers<[1], [0], [0], [1], [0, 0, 1, 1], [], []>} : vector<64x32xf32>, vector<32x96xf32>, vector<64x96xf32> -> vector<64x96xf32>
    %c0_4 = arith.constant 0 : index
    %c0_5 = arith.constant 0 : index
    %c0_6 = arith.constant 0 : index
    %4 = vector.load %arg4[%c0_4, %c0_5, %c0_6] : memref<4x1x96xf32, #tpu.memory_space<vmem>>, vector<1x1x96xf32>
    %5 = vector.shape_cast %4 : vector<1x1x96xf32> to vector<1x96xf32>
    %6 = vector.broadcast %5 : vector<1x96xf32> to vector<64x96xf32>
    %7 = arith.addf %3, %6 : vector<64x96xf32>
    %c0_7 = arith.constant 0 : index
    %c0_8 = arith.constant 0 : index
    %8 = vector.load %arg9[%c0_7, %c0_8] : memref<64x96xf32, #tpu.memory_space<vmem>>, vector<64x96xf32>
    tpu.vector_store %arg9[%c0_7, %c0_8], %7 {strides = array<i32>} : memref<64x96xf32, #tpu.memory_space<vmem>>, vector<64x96xf32>,
    %c1 = arith.constant 1 : index
    %c0_9 = arith.constant 0 : index
    %c0_10 = arith.constant 0 : index
    %9 = vector.load %arg1[%c1, %c0_9, %c0_10] : memref<2x32x96xf32, #tpu.memory_space<vmem>>, vector<1x32x96xf32>
    %10 = vector.shape_cast %9 : vector<1x32x96xf32> to vector<32x96xf32>
    %cst_11 = arith.constant dense<0.000000e+00> : vector<64x96xf32>
    %11 = tpu.matmul %0, %10, %cst_11 {dimension_numbers = #tpu.dot_dimension_numbers<[1], [0], [0], [1], [0, 0, 1, 1], [], []>} : vector<64x32xf32>, vector<32x96xf32>, vector<64x96xf32> -> vector<64x96xf32>
    %c1_12 = arith.constant 1 : index
    %c0_13 = arith.constant 0 : index
    %c0_14 = arith.constant 0 : index
    %12 = vector.load %arg4[%c1_12, %c0_13, %c0_14] : memref<4x1x96xf32, #tpu.memory_space<vmem>>, vector<1x1x96xf32>
    %13 = vector.shape_cast %12 : vector<1x1x96xf32> to vector<1x96xf32>
    %14 = vector.broadcast %13 : vector<1x96xf32> to vector<64x96xf32>
    %15 = arith.addf %11, %14 : vector<64x96xf32>
    %c0_15 = arith.constant 0 : index
    %c0_16 = arith.constant 0 : index
    %16 = vector.load %arg10[%c0_15, %c0_16] : memref<64x96xf32, #tpu.memory_space<vmem>>, vector<64x96xf32>
    tpu.vector_store %arg10[%c0_15, %c0_16], %15 {strides = array<i32>} : memref<64x96xf32, #tpu.memory_space<vmem>>, vector<64x96xf32>,
    %c0_17 = arith.constant 0 : index
    %c0_18 = arith.constant 0 : index
    %c0_19 = arith.constant 0 : index
    %17 = vector.load %arg5[%c0_17, %c0_18, %c0_19] : memref<4x1x32xf32, #tpu.memory_space<vmem>>, vector<1x1x32xf32>
    %18 = vector.shape_cast %17 : vector<1x1x32xf32> to vector<1x32xf32>
    %19 = vector.shape_cast %18 : vector<1x32xf32> to vector<1x32xf32>
    %20 = vector.broadcast %19 : vector<1x32xf32> to vector<8x32xf32>
    %c1_20 = arith.constant 1 : index
    %c0_21 = arith.constant 0 : index
    %c0_22 = arith.constant 0 : index
    %21 = vector.load %arg5[%c1_20, %c0_21, %c0_22] : memref<4x1x32xf32, #tpu.memory_space<vmem>>, vector<1x1x32xf32>
    %22 = vector.shape_cast %21 : vector<1x1x32xf32> to vector<1x32xf32>
    %23 = vector.shape_cast %22 : vector<1x32xf32> to vector<1x32xf32>
    %24 = vector.broadcast %23 : vector<1x32xf32> to vector<8x32xf32>
    %cst_23 = arith.constant 0.000000e+00 : f32
    %25 = vector.broadcast %cst_23 : f32 to vector<8x32xf32>
    %cst_24 = arith.constant 0.000000e+00 : f32
    %26 = vector.broadcast %cst_24 : f32 to vector<8x32xf32>
    %c0_25 = arith.constant 0 : index
    %c0_26 = arith.constant 0 : index
    %27 = vector.load %arg9[%c0_25, %c0_26] : memref<64x96xf32, #tpu.memory_space<vmem>>, vector<8x96xf32>
    %c56 = arith.constant 56 : index
    %c0_27 = arith.constant 0 : index
    %28 = vector.load %arg10[%c56, %c0_27] : memref<64x96xf32, #tpu.memory_space<vmem>>, vector<8x96xf32>
    %c0_28 = arith.constant 0 : index
    %c0_29 = arith.constant 0 : index
    %c0_30 = arith.constant 0 : index
    %29 = vector.load %arg3[%c0_28, %c0_29, %c0_30] : memref<4x32x96xf32, #tpu.memory_space<vmem>>, vector<1x32x96xf32>
    %30 = vector.shape_cast %29 : vector<1x32x96xf32> to vector<32x96xf32>
    %cst_31 = arith.constant dense<0.000000e+00> : vector<8x96xf32>
    %31 = tpu.matmul %25, %30, %cst_31 {dimension_numbers = #tpu.dot_dimension_numbers<[1], [0], [0], [1], [0, 0, 1, 1], [], []>} : vector<8x32xf32>, vector<32x96xf32>, vector<8x96xf32> -> vector<8x96xf32>
    %c1_32 = arith.constant 1 : index
    %c0_33 = arith.constant 0 : index
    %c0_34 = arith.constant 0 : index
    %32 = vector.load %arg3[%c1_32, %c0_33, %c0_34] : memref<4x32x96xf32, #tpu.memory_space<vmem>>, vector<1x32x96xf32>
    %33 = vector.shape_cast %32 : vector<1x32x96xf32> to vector<32x96xf32>
    %cst_35 = arith.constant dense<0.000000e+00> : vector<8x96xf32>
    %34 = tpu.matmul %26, %33, %cst_35 {dimension_numbers = #tpu.dot_dimension_numbers<[1], [0], [0], [1], [0, 0, 1, 1], [], []>} : vector<8x32xf32>, vector<32x96xf32>, vector<8x96xf32> -> vector<8x96xf32>
    %35 = vector.extract_strided_slice %27 {offsets = [0, 0], sizes = [8, 32], strides = [1, 1]} : vector<8x96xf32> to vector<8x32xf32>
    %36 = vector.extract_strided_slice %31 {offsets = [0, 0], sizes = [8, 32], strides = [1, 1]} : vector<8x96xf32> to vector<8x32xf32>
    %37 = arith.addf %35, %36 : vector<8x32xf32>
    %38 = arith.negf %37 : vector<8x32xf32>
    %39 = math.exp %38 : vector<8x32xf32>
    %cst_36 = arith.constant 1.000000e+00 : f32
    %40 = vector.broadcast %cst_36 : f32 to vector<8x32xf32>
    %41 = arith.addf %40, %39 : vector<8x32xf32>
    %42 = arith.divf %40, %41 : vector<8x32xf32>
    %43 = vector.extract_strided_slice %27 {offsets = [0, 32], sizes = [8, 32], strides = [1, 1]} : vector<8x96xf32> to vector<8x32xf32>
    %44 = vector.extract_strided_slice %31 {offsets = [0, 32], sizes = [8, 32], strides = [1, 1]} : vector<8x96xf32> to vector<8x32xf32>
    %45 = arith.addf %43, %44 : vector<8x32xf32>
    %46 = arith.negf %45 : vector<8x32xf32>
    %47 = math.exp %46 : vector<8x32xf32>
    %cst_37 = arith.constant 1.000000e+00 : f32
    %48 = vector.broadcast %cst_37 : f32 to vector<8x32xf32>
    %49 = arith.addf %48, %47 : vector<8x32xf32>
    %50 = arith.divf %48, %49 : vector<8x32xf32>
    %51 = vector.extract_strided_slice %27 {offsets = [0, 64], sizes = [8, 32], strides = [1, 1]} : vector<8x96xf32> to vector<8x32xf32>
    %52 = vector.extract_strided_slice %31 {offsets = [0, 64], sizes = [8, 32], strides = [1, 1]} : vector<8x96xf32> to vector<8x32xf32>
    %53 = arith.addf %52, %20 : vector<8x32xf32>
    %54 = arith.mulf %42, %53 : vector<8x32xf32>
    %55 = arith.addf %51, %54 : vector<8x32xf32>
    %56 = math.tanh %55 : vector<8x32xf32>
    %57 = vector.extract_strided_slice %28 {offsets = [0, 0], sizes = [8, 32], strides = [1, 1]} : vector<8x96xf32> to vector<8x32xf32>
    %58 = vector.extract_strided_slice %34 {offsets = [0, 0], sizes = [8, 32], strides = [1, 1]} : vector<8x96xf32> to vector<8x32xf32>
    %59 = arith.addf %57, %58 : vector<8x32xf32>
    %60 = arith.negf %59 : vector<8x32xf32>
    %61 = math.exp %60 : vector<8x32xf32>
    %cst_38 = arith.constant 1.000000e+00 : f32
    %62 = vector.broadcast %cst_38 : f32 to vector<8x32xf32>
    %63 = arith.addf %62, %61 : vector<8x32xf32>
    %64 = arith.divf %62, %63 : vector<8x32xf32>
    %65 = vector.extract_strided_slice %28 {offsets = [0, 32], sizes = [8, 32], strides = [1, 1]} : vector<8x96xf32> to vector<8x32xf32>
    %66 = vector.extract_strided_slice %34 {offsets = [0, 32], sizes = [8, 32], strides = [1, 1]} : vector<8x96xf32> to vector<8x32xf32>
    %67 = arith.addf %65, %66 : vector<8x32xf32>
    %68 = arith.negf %67 : vector<8x32xf32>
    %69 = math.exp %68 : vector<8x32xf32>
    %cst_39 = arith.constant 1.000000e+00 : f32
    %70 = vector.broadcast %cst_39 : f32 to vector<8x32xf32>
    %71 = arith.addf %70, %69 : vector<8x32xf32>
    %72 = arith.divf %70, %71 : vector<8x32xf32>
    %73 = vector.extract_strided_slice %28 {offsets = [0, 64], sizes = [8, 32], strides = [1, 1]} : vector<8x96xf32> to vector<8x32xf32>
    %74 = vector.extract_strided_slice %34 {offsets = [0, 64], sizes = [8, 32], strides = [1, 1]} : vector<8x96xf32> to vector<8x32xf32>
    %75 = arith.addf %74, %24 : vector<8x32xf32>
    %76 = arith.mulf %64, %75 : vector<8x32xf32>
    %77 = arith.addf %73, %76 : vector<8x32xf32>
    %78 = math.tanh %77 : vector<8x32xf32>
    %79 = arith.subf %25, %56 : vector<8x32xf32>
    %80 = arith.mulf %50, %79 : vector<8x32xf32>
    %81 = arith.addf %56, %80 : vector<8x32xf32>
    %82 = arith.subf %26, %78 : vector<8x32xf32>
    %83 = arith.mulf %72, %82 : vector<8x32xf32>
    %84 = arith.addf %78, %83 : vector<8x32xf32>
    %c0_40 = arith.constant 0 : index
    %c0_41 = arith.constant 0 : index
    %85 = vector.load %arg11[%c0_40, %c0_41] : memref<64x32xf32, #tpu.memory_space<vmem>>, vector<8x32xf32>
    tpu.vector_store %arg11[%c0_40, %c0_41], %81 {strides = array<i32>} : memref<64x32xf32, #tpu.memory_space<vmem>>, vector<8x32xf32>,
    %c56_42 = arith.constant 56 : index
    %c0_43 = arith.constant 0 : index
    %86 = vector.load %arg12[%c56_42, %c0_43] : memref<64x32xf32, #tpu.memory_space<vmem>>, vector<8x32xf32>
    tpu.vector_store %arg12[%c56_42, %c0_43], %84 {strides = array<i32>} : memref<64x32xf32, #tpu.memory_space<vmem>>, vector<8x32xf32>,
    %c8 = arith.constant 8 : index
    %c0_44 = arith.constant 0 : index
    %87 = vector.load %arg9[%c8, %c0_44] : memref<64x96xf32, #tpu.memory_space<vmem>>, vector<8x96xf32>
    %c48 = arith.constant 48 : index
    %c0_45 = arith.constant 0 : index
    %88 = vector.load %arg10[%c48, %c0_45] : memref<64x96xf32, #tpu.memory_space<vmem>>, vector<8x96xf32>
    %c0_46 = arith.constant 0 : index
    %c0_47 = arith.constant 0 : index
    %c0_48 = arith.constant 0 : index
    %89 = vector.load %arg3[%c0_46, %c0_47, %c0_48] : memref<4x32x96xf32, #tpu.memory_space<vmem>>, vector<1x32x96xf32>
    %90 = vector.shape_cast %89 : vector<1x32x96xf32> to vector<32x96xf32>
    %cst_49 = arith.constant dense<0.000000e+00> : vector<8x96xf32>
    %91 = tpu.matmul %81, %90, %cst_49 {dimension_numbers = #tpu.dot_dimension_numbers<[1], [0], [0], [1], [0, 0, 1, 1], [], []>} : vector<8x32xf32>, vector<32x96xf32>, vector<8x96xf32> -> vector<8x96xf32>
    %c1_50 = arith.constant 1 : index
    %c0_51 = arith.constant 0 : index
    %c0_52 = arith.constant 0 : index
    %92 = vector.load %arg3[%c1_50, %c0_51, %c0_52] : memref<4x32x96xf32, #tpu.memory_space<vmem>>, vector<1x32x96xf32>
    %93 = vector.shape_cast %92 : vector<1x32x96xf32> to vector<32x96xf32>
    %cst_53 = arith.constant dense<0.000000e+00> : vector<8x96xf32>
    %94 = tpu.matmul %84, %93, %cst_53 {dimension_numbers = #tpu.dot_dimension_numbers<[1], [0], [0], [1], [0, 0, 1, 1], [], []>} : vector<8x32xf32>, vector<32x96xf32>, vector<8x96xf32> -> vector<8x96xf32>
    %95 = vector.extract_strided_slice %87 {offsets = [0, 0], sizes = [8, 32], strides = [1, 1]} : vector<8x96xf32> to vector<8x32xf32>
    %96 = vector.extract_strided_slice %91 {offsets = [0, 0], sizes = [8, 32], strides = [1, 1]} : vector<8x96xf32> to vector<8x32xf32>
    %97 = arith.addf %95, %96 : vector<8x32xf32>
    %98 = arith.negf %97 : vector<8x32xf32>
    %99 = math.exp %98 : vector<8x32xf32>
    %cst_54 = arith.constant 1.000000e+00 : f32
    %100 = vector.broadcast %cst_54 : f32 to vector<8x32xf32>
    %101 = arith.addf %100, %99 : vector<8x32xf32>
    %102 = arith.divf %100, %101 : vector<8x32xf32>
    %103 = vector.extract_strided_slice %87 {offsets = [0, 32], sizes = [8, 32], strides = [1, 1]} : vector<8x96xf32> to vector<8x32xf32>
    %104 = vector.extract_strided_slice %91 {offsets = [0, 32], sizes = [8, 32], strides = [1, 1]} : vector<8x96xf32> to vector<8x32xf32>
    %105 = arith.addf %103, %104 : vector<8x32xf32>
    %106 = arith.negf %105 : vector<8x32xf32>
    %107 = math.exp %106 : vector<8x32xf32>
    %cst_55 = arith.constant 1.000000e+00 : f32
    %108 = vector.broadcast %cst_55 : f32 to vector<8x32xf32>
    %109 = arith.addf %108, %107 : vector<8x32xf32>
    %110 = arith.divf %108, %109 : vector<8x32xf32>
    %111 = vector.extract_strided_slice %87 {offsets = [0, 64], sizes = [8, 32], strides = [1, 1]} : vector<8x96xf32> to vector<8x32xf32>
    %112 = vector.extract_strided_slice %91 {offsets = [0, 64], sizes = [8, 32], strides = [1, 1]} : vector<8x96xf32> to vector<8x32xf32>
    %113 = arith.addf %112, %20 : vector<8x32xf32>
    %114 = arith.mulf %102, %113 : vector<8x32xf32>
    %115 = arith.addf %111, %114 : vector<8x32xf32>
    %116 = math.tanh %115 : vector<8x32xf32>
    %117 = vector.extract_strided_slice %88 {offsets = [0, 0], sizes = [8, 32], strides = [1, 1]} : vector<8x96xf32> to vector<8x32xf32>
    %118 = vector.extract_strided_slice %94 {offsets = [0, 0], sizes = [8, 32], strides = [1, 1]} : vector<8x96xf32> to vector<8x32xf32>
    %119 = arith.addf %117, %118 : vector<8x32xf32>
    %120 = arith.negf %119 : vector<8x32xf32>
    %121 = math.exp %120 : vector<8x32xf32>
    %cst_56 = arith.constant 1.000000e+00 : f32
    %122 = vector.broadcast %cst_56 : f32 to vector<8x32xf32>
    %123 = arith.addf %122, %121 : vector<8x32xf32>
    %124 = arith.divf %122, %123 : vector<8x32xf32>
    %125 = vector.extract_strided_slice %88 {offsets = [0, 32], sizes = [8, 32], strides = [1, 1]} : vector<8x96xf32> to vector<8x32xf32>
    %126 = vector.extract_strided_slice %94 {offsets = [0, 32], sizes = [8, 32], strides = [1, 1]} : vector<8x96xf32> to vector<8x32xf32>
    %127 = arith.addf %125, %126 : vector<8x32xf32>
    %128 = arith.negf %127 : vector<8x32xf32>
    %129 = math.exp %128 : vector<8x32xf32>
    %cst_57 = arith.constant 1.000000e+00 : f32
    %130 = vector.broadcast %cst_57 : f32 to vector<8x32xf32>
    %131 = arith.addf %130, %129 : vector<8x32xf32>
    %132 = arith.divf %130, %131 : vector<8x32xf32>
    %133 = vector.extract_strided_slice %88 {offsets = [0, 64], sizes = [8, 32], strides = [1, 1]} : vector<8x96xf32> to vector<8x32xf32>
    %134 = vector.extract_strided_slice %94 {offsets = [0, 64], sizes = [8, 32], strides = [1, 1]} : vector<8x96xf32> to vector<8x32xf32>
    %135 = arith.addf %134, %24 : vector<8x32xf32>
    %136 = arith.mulf %124, %135 : vector<8x32xf32>
    %137 = arith.addf %133, %136 : vector<8x32xf32>
    %138 = math.tanh %137 : vector<8x32xf32>
    %139 = arith.subf %81, %116 : vector<8x32xf32>
    %140 = arith.mulf %110, %139 : vector<8x32xf32>
    %141 = arith.addf %116, %140 : vector<8x32xf32>
    %142 = arith.subf %84, %138 : vector<8x32xf32>
    %143 = arith.mulf %132, %142 : vector<8x32xf32>
    %144 = arith.addf %138, %143 : vector<8x32xf32>
    %c8_58 = arith.constant 8 : index
    %c0_59 = arith.constant 0 : index
    %145 = vector.load %arg11[%c8_58, %c0_59] : memref<64x32xf32, #tpu.memory_space<vmem>>, vector<8x32xf32>
    tpu.vector_store %arg11[%c8_58, %c0_59], %141 {strides = array<i32>} : memref<64x32xf32, #tpu.memory_space<vmem>>, vector<8x32xf32>,
    %c48_60 = arith.constant 48 : index
    %c0_61 = arith.constant 0 : index
    %146 = vector.load %arg12[%c48_60, %c0_61] : memref<64x32xf32, #tpu.memory_space<vmem>>, vector<8x32xf32>
    tpu.vector_store %arg12[%c48_60, %c0_61], %144 {strides = array<i32>} : memref<64x32xf32, #tpu.memory_space<vmem>>, vector<8x32xf32>,
    %c16 = arith.constant 16 : index
    %c0_62 = arith.constant 0 : index
    %147 = vector.load %arg9[%c16, %c0_62] : memref<64x96xf32, #tpu.memory_space<vmem>>, vector<8x96xf32>
    %c40 = arith.constant 40 : index
    %c0_63 = arith.constant 0 : index
    %148 = vector.load %arg10[%c40, %c0_63] : memref<64x96xf32, #tpu.memory_space<vmem>>, vector<8x96xf32>
    %c0_64 = arith.constant 0 : index
    %c0_65 = arith.constant 0 : index
    %c0_66 = arith.constant 0 : index
    %149 = vector.load %arg3[%c0_64, %c0_65, %c0_66] : memref<4x32x96xf32, #tpu.memory_space<vmem>>, vector<1x32x96xf32>
    %150 = vector.shape_cast %149 : vector<1x32x96xf32> to vector<32x96xf32>
    %cst_67 = arith.constant dense<0.000000e+00> : vector<8x96xf32>
    %151 = tpu.matmul %141, %150, %cst_67 {dimension_numbers = #tpu.dot_dimension_numbers<[1], [0], [0], [1], [0, 0, 1, 1], [], []>} : vector<8x32xf32>, vector<32x96xf32>, vector<8x96xf32> -> vector<8x96xf32>
    %c1_68 = arith.constant 1 : index
    %c0_69 = arith.constant 0 : index
    %c0_70 = arith.constant 0 : index
    %152 = vector.load %arg3[%c1_68, %c0_69, %c0_70] : memref<4x32x96xf32, #tpu.memory_space<vmem>>, vector<1x32x96xf32>
    %153 = vector.shape_cast %152 : vector<1x32x96xf32> to vector<32x96xf32>
    %cst_71 = arith.constant dense<0.000000e+00> : vector<8x96xf32>
    %154 = tpu.matmul %144, %153, %cst_71 {dimension_numbers = #tpu.dot_dimension_numbers<[1], [0], [0], [1], [0, 0, 1, 1], [], []>} : vector<8x32xf32>, vector<32x96xf32>, vector<8x96xf32> -> vector<8x96xf32>
    %155 = vector.extract_strided_slice %147 {offsets = [0, 0], sizes = [8, 32], strides = [1, 1]} : vector<8x96xf32> to vector<8x32xf32>
    %156 = vector.extract_strided_slice %151 {offsets = [0, 0], sizes = [8, 32], strides = [1, 1]} : vector<8x96xf32> to vector<8x32xf32>
    %157 = arith.addf %155, %156 : vector<8x32xf32>
    %158 = arith.negf %157 : vector<8x32xf32>
    %159 = math.exp %158 : vector<8x32xf32>
    %cst_72 = arith.constant 1.000000e+00 : f32
    %160 = vector.broadcast %cst_72 : f32 to vector<8x32xf32>
    %161 = arith.addf %160, %159 : vector<8x32xf32>
    %162 = arith.divf %160, %161 : vector<8x32xf32>
    %163 = vector.extract_strided_slice %147 {offsets = [0, 32], sizes = [8, 32], strides = [1, 1]} : vector<8x96xf32> to vector<8x32xf32>
    %164 = vector.extract_strided_slice %151 {offsets = [0, 32], sizes = [8, 32], strides = [1, 1]} : vector<8x96xf32> to vector<8x32xf32>
    %165 = arith.addf %163, %164 : vector<8x32xf32>
    %166 = arith.negf %165 : vector<8x32xf32>
    %167 = math.exp %166 : vector<8x32xf32>
    %cst_73 = arith.constant 1.000000e+00 : f32
    %168 = vector.broadcast %cst_73 : f32 to vector<8x32xf32>
    %169 = arith.addf %168, %167 : vector<8x32xf32>
    %170 = arith.divf %168, %169 : vector<8x32xf32>
    %171 = vector.extract_strided_slice %147 {offsets = [0, 64], sizes = [8, 32], strides = [1, 1]} : vector<8x96xf32> to vector<8x32xf32>
    %172 = vector.extract_strided_slice %151 {offsets = [0, 64], sizes = [8, 32], strides = [1, 1]} : vector<8x96xf32> to vector<8x32xf32>
    %173 = arith.addf %172, %20 : vector<8x32xf32>
    %174 = arith.mulf %162, %173 : vector<8x32xf32>
    %175 = arith.addf %171, %174 : vector<8x32xf32>
    %176 = math.tanh %175 : vector<8x32xf32>
    %177 = vector.extract_strided_slice %148 {offsets = [0, 0], sizes = [8, 32], strides = [1, 1]} : vector<8x96xf32> to vector<8x32xf32>
    %178 = vector.extract_strided_slice %154 {offsets = [0, 0], sizes = [8, 32], strides = [1, 1]} : vector<8x96xf32> to vector<8x32xf32>
    %179 = arith.addf %177, %178 : vector<8x32xf32>
    %180 = arith.negf %179 : vector<8x32xf32>
    %181 = math.exp %180 : vector<8x32xf32>
    %cst_74 = arith.constant 1.000000e+00 : f32
    %182 = vector.broadcast %cst_74 : f32 to vector<8x32xf32>
    %183 = arith.addf %182, %181 : vector<8x32xf32>
    %184 = arith.divf %182, %183 : vector<8x32xf32>
    %185 = vector.extract_strided_slice %148 {offsets = [0, 32], sizes = [8, 32], strides = [1, 1]} : vector<8x96xf32> to vector<8x32xf32>
    %186 = vector.extract_strided_slice %154 {offsets = [0, 32], sizes = [8, 32], strides = [1, 1]} : vector<8x96xf32> to vector<8x32xf32>
    %187 = arith.addf %185, %186 : vector<8x32xf32>
    %188 = arith.negf %187 : vector<8x32xf32>
    %189 = math.exp %188 : vector<8x32xf32>
    %cst_75 = arith.constant 1.000000e+00 : f32
    %190 = vector.broadcast %cst_75 : f32 to vector<8x32xf32>
    %191 = arith.addf %190, %189 : vector<8x32xf32>
    %192 = arith.divf %190, %191 : vector<8x32xf32>
    %193 = vector.extract_strided_slice %148 {offsets = [0, 64], sizes = [8, 32], strides = [1, 1]} : vector<8x96xf32> to vector<8x32xf32>
    %194 = vector.extract_strided_slice %154 {offsets = [0, 64], sizes = [8, 32], strides = [1, 1]} : vector<8x96xf32> to vector<8x32xf32>
    %195 = arith.addf %194, %24 : vector<8x32xf32>
    %196 = arith.mulf %184, %195 : vector<8x32xf32>
    %197 = arith.addf %193, %196 : vector<8x32xf32>
    %198 = math.tanh %197 : vector<8x32xf32>
    %199 = arith.subf %141, %176 : vector<8x32xf32>
    %200 = arith.mulf %170, %199 : vector<8x32xf32>
    %201 = arith.addf %176, %200 : vector<8x32xf32>
    %202 = arith.subf %144, %198 : vector<8x32xf32>
    %203 = arith.mulf %192, %202 : vector<8x32xf32>
    %204 = arith.addf %198, %203 : vector<8x32xf32>
    %c16_76 = arith.constant 16 : index
    %c0_77 = arith.constant 0 : index
    %205 = vector.load %arg11[%c16_76, %c0_77] : memref<64x32xf32, #tpu.memory_space<vmem>>, vector<8x32xf32>
    tpu.vector_store %arg11[%c16_76, %c0_77], %201 {strides = array<i32>} : memref<64x32xf32, #tpu.memory_space<vmem>>, vector<8x32xf32>,
    %c40_78 = arith.constant 40 : index
    %c0_79 = arith.constant 0 : index
    %206 = vector.load %arg12[%c40_78, %c0_79] : memref<64x32xf32, #tpu.memory_space<vmem>>, vector<8x32xf32>
    tpu.vector_store %arg12[%c40_78, %c0_79], %204 {strides = array<i32>} : memref<64x32xf32, #tpu.memory_space<vmem>>, vector<8x32xf32>,
    %c24 = arith.constant 24 : index
    %c0_80 = arith.constant 0 : index
    %207 = vector.load %arg9[%c24, %c0_80] : memref<64x96xf32, #tpu.memory_space<vmem>>, vector<8x96xf32>
    %c32 = arith.constant 32 : index
    %c0_81 = arith.constant 0 : index
    %208 = vector.load %arg10[%c32, %c0_81] : memref<64x96xf32, #tpu.memory_space<vmem>>, vector<8x96xf32>
    %c0_82 = arith.constant 0 : index
    %c0_83 = arith.constant 0 : index
    %c0_84 = arith.constant 0 : index
    %209 = vector.load %arg3[%c0_82, %c0_83, %c0_84] : memref<4x32x96xf32, #tpu.memory_space<vmem>>, vector<1x32x96xf32>
    %210 = vector.shape_cast %209 : vector<1x32x96xf32> to vector<32x96xf32>
    %cst_85 = arith.constant dense<0.000000e+00> : vector<8x96xf32>
    %211 = tpu.matmul %201, %210, %cst_85 {dimension_numbers = #tpu.dot_dimension_numbers<[1], [0], [0], [1], [0, 0, 1, 1], [], []>} : vector<8x32xf32>, vector<32x96xf32>, vector<8x96xf32> -> vector<8x96xf32>
    %c1_86 = arith.constant 1 : index
    %c0_87 = arith.constant 0 : index
    %c0_88 = arith.constant 0 : index
    %212 = vector.load %arg3[%c1_86, %c0_87, %c0_88] : memref<4x32x96xf32, #tpu.memory_space<vmem>>, vector<1x32x96xf32>
    %213 = vector.shape_cast %212 : vector<1x32x96xf32> to vector<32x96xf32>
    %cst_89 = arith.constant dense<0.000000e+00> : vector<8x96xf32>
    %214 = tpu.matmul %204, %213, %cst_89 {dimension_numbers = #tpu.dot_dimension_numbers<[1], [0], [0], [1], [0, 0, 1, 1], [], []>} : vector<8x32xf32>, vector<32x96xf32>, vector<8x96xf32> -> vector<8x96xf32>
    %215 = vector.extract_strided_slice %207 {offsets = [0, 0], sizes = [8, 32], strides = [1, 1]} : vector<8x96xf32> to vector<8x32xf32>
    %216 = vector.extract_strided_slice %211 {offsets = [0, 0], sizes = [8, 32], strides = [1, 1]} : vector<8x96xf32> to vector<8x32xf32>
    %217 = arith.addf %215, %216 : vector<8x32xf32>
    %218 = arith.negf %217 : vector<8x32xf32>
    %219 = math.exp %218 : vector<8x32xf32>
    %cst_90 = arith.constant 1.000000e+00 : f32
    %220 = vector.broadcast %cst_90 : f32 to vector<8x32xf32>
    %221 = arith.addf %220, %219 : vector<8x32xf32>
    %222 = arith.divf %220, %221 : vector<8x32xf32>
    %223 = vector.extract_strided_slice %207 {offsets = [0, 32], sizes = [8, 32], strides = [1, 1]} : vector<8x96xf32> to vector<8x32xf32>
    %224 = vector.extract_strided_slice %211 {offsets = [0, 32], sizes = [8, 32], strides = [1, 1]} : vector<8x96xf32> to vector<8x32xf32>
    %225 = arith.addf %223, %224 : vector<8x32xf32>
    %226 = arith.negf %225 : vector<8x32xf32>
    %227 = math.exp %226 : vector<8x32xf32>
    %cst_91 = arith.constant 1.000000e+00 : f32
    %228 = vector.broadcast %cst_91 : f32 to vector<8x32xf32>
    %229 = arith.addf %228, %227 : vector<8x32xf32>
    %230 = arith.divf %228, %229 : vector<8x32xf32>
    %231 = vector.extract_strided_slice %207 {offsets = [0, 64], sizes = [8, 32], strides = [1, 1]} : vector<8x96xf32> to vector<8x32xf32>
    %232 = vector.extract_strided_slice %211 {offsets = [0, 64], sizes = [8, 32], strides = [1, 1]} : vector<8x96xf32> to vector<8x32xf32>
    %233 = arith.addf %232, %20 : vector<8x32xf32>
    %234 = arith.mulf %222, %233 : vector<8x32xf32>
    %235 = arith.addf %231, %234 : vector<8x32xf32>
    %236 = math.tanh %235 : vector<8x32xf32>
    %237 = vector.extract_strided_slice %208 {offsets = [0, 0], sizes = [8, 32], strides = [1, 1]} : vector<8x96xf32> to vector<8x32xf32>
    %238 = vector.extract_strided_slice %214 {offsets = [0, 0], sizes = [8, 32], strides = [1, 1]} : vector<8x96xf32> to vector<8x32xf32>
    %239 = arith.addf %237, %238 : vector<8x32xf32>
    %240 = arith.negf %239 : vector<8x32xf32>
    %241 = math.exp %240 : vector<8x32xf32>
    %cst_92 = arith.constant 1.000000e+00 : f32
    %242 = vector.broadcast %cst_92 : f32 to vector<8x32xf32>
    %243 = arith.addf %242, %241 : vector<8x32xf32>
    %244 = arith.divf %242, %243 : vector<8x32xf32>
    %245 = vector.extract_strided_slice %208 {offsets = [0, 32], sizes = [8, 32], strides = [1, 1]} : vector<8x96xf32> to vector<8x32xf32>
    %246 = vector.extract_strided_slice %214 {offsets = [0, 32], sizes = [8, 32], strides = [1, 1]} : vector<8x96xf32> to vector<8x32xf32>
    %247 = arith.addf %245, %246 : vector<8x32xf32>
    %248 = arith.negf %247 : vector<8x32xf32>
    %249 = math.exp %248 : vector<8x32xf32>
    %cst_93 = arith.constant 1.000000e+00 : f32
    %250 = vector.broadcast %cst_93 : f32 to vector<8x32xf32>
    %251 = arith.addf %250, %249 : vector<8x32xf32>
    %252 = arith.divf %250, %251 : vector<8x32xf32>
    %253 = vector.extract_strided_slice %208 {offsets = [0, 64], sizes = [8, 32], strides = [1, 1]} : vector<8x96xf32> to vector<8x32xf32>
    %254 = vector.extract_strided_slice %214 {offsets = [0, 64], sizes = [8, 32], strides = [1, 1]} : vector<8x96xf32> to vector<8x32xf32>
    %255 = arith.addf %254, %24 : vector<8x32xf32>
    %256 = arith.mulf %244, %255 : vector<8x32xf32>
    %257 = arith.addf %253, %256 : vector<8x32xf32>
    %258 = math.tanh %257 : vector<8x32xf32>
    %259 = arith.subf %201, %236 : vector<8x32xf32>
    %260 = arith.mulf %230, %259 : vector<8x32xf32>
    %261 = arith.addf %236, %260 : vector<8x32xf32>
    %262 = arith.subf %204, %258 : vector<8x32xf32>
    %263 = arith.mulf %252, %262 : vector<8x32xf32>
    %264 = arith.addf %258, %263 : vector<8x32xf32>
    %c24_94 = arith.constant 24 : index
    %c0_95 = arith.constant 0 : index
    %265 = vector.load %arg11[%c24_94, %c0_95] : memref<64x32xf32, #tpu.memory_space<vmem>>, vector<8x32xf32>
    tpu.vector_store %arg11[%c24_94, %c0_95], %261 {strides = array<i32>} : memref<64x32xf32, #tpu.memory_space<vmem>>, vector<8x32xf32>,
    %c32_96 = arith.constant 32 : index
    %c0_97 = arith.constant 0 : index
    %266 = vector.load %arg12[%c32_96, %c0_97] : memref<64x32xf32, #tpu.memory_space<vmem>>, vector<8x32xf32>
    tpu.vector_store %arg12[%c32_96, %c0_97], %264 {strides = array<i32>} : memref<64x32xf32, #tpu.memory_space<vmem>>, vector<8x32xf32>,
    %c32_98 = arith.constant 32 : index
    %c0_99 = arith.constant 0 : index
    %267 = vector.load %arg9[%c32_98, %c0_99] : memref<64x96xf32, #tpu.memory_space<vmem>>, vector<8x96xf32>
    %c24_100 = arith.constant 24 : index
    %c0_101 = arith.constant 0 : index
    %268 = vector.load %arg10[%c24_100, %c0_101] : memref<64x96xf32, #tpu.memory_space<vmem>>, vector<8x96xf32>
    %c0_102 = arith.constant 0 : index
    %c0_103 = arith.constant 0 : index
    %c0_104 = arith.constant 0 : index
    %269 = vector.load %arg3[%c0_102, %c0_103, %c0_104] : memref<4x32x96xf32, #tpu.memory_space<vmem>>, vector<1x32x96xf32>
    %270 = vector.shape_cast %269 : vector<1x32x96xf32> to vector<32x96xf32>
    %cst_105 = arith.constant dense<0.000000e+00> : vector<8x96xf32>
    %271 = tpu.matmul %261, %270, %cst_105 {dimension_numbers = #tpu.dot_dimension_numbers<[1], [0], [0], [1], [0, 0, 1, 1], [], []>} : vector<8x32xf32>, vector<32x96xf32>, vector<8x96xf32> -> vector<8x96xf32>
    %c1_106 = arith.constant 1 : index
    %c0_107 = arith.constant 0 : index
    %c0_108 = arith.constant 0 : index
    %272 = vector.load %arg3[%c1_106, %c0_107, %c0_108] : memref<4x32x96xf32, #tpu.memory_space<vmem>>, vector<1x32x96xf32>
    %273 = vector.shape_cast %272 : vector<1x32x96xf32> to vector<32x96xf32>
    %cst_109 = arith.constant dense<0.000000e+00> : vector<8x96xf32>
    %274 = tpu.matmul %264, %273, %cst_109 {dimension_numbers = #tpu.dot_dimension_numbers<[1], [0], [0], [1], [0, 0, 1, 1], [], []>} : vector<8x32xf32>, vector<32x96xf32>, vector<8x96xf32> -> vector<8x96xf32>
    %275 = vector.extract_strided_slice %267 {offsets = [0, 0], sizes = [8, 32], strides = [1, 1]} : vector<8x96xf32> to vector<8x32xf32>
    %276 = vector.extract_strided_slice %271 {offsets = [0, 0], sizes = [8, 32], strides = [1, 1]} : vector<8x96xf32> to vector<8x32xf32>
    %277 = arith.addf %275, %276 : vector<8x32xf32>
    %278 = arith.negf %277 : vector<8x32xf32>
    %279 = math.exp %278 : vector<8x32xf32>
    %cst_110 = arith.constant 1.000000e+00 : f32
    %280 = vector.broadcast %cst_110 : f32 to vector<8x32xf32>
    %281 = arith.addf %280, %279 : vector<8x32xf32>
    %282 = arith.divf %280, %281 : vector<8x32xf32>
    %283 = vector.extract_strided_slice %267 {offsets = [0, 32], sizes = [8, 32], strides = [1, 1]} : vector<8x96xf32> to vector<8x32xf32>
    %284 = vector.extract_strided_slice %271 {offsets = [0, 32], sizes = [8, 32], strides = [1, 1]} : vector<8x96xf32> to vector<8x32xf32>
    %285 = arith.addf %283, %284 : vector<8x32xf32>
    %286 = arith.negf %285 : vector<8x32xf32>
    %287 = math.exp %286 : vector<8x32xf32>
    %cst_111 = arith.constant 1.000000e+00 : f32
    %288 = vector.broadcast %cst_111 : f32 to vector<8x32xf32>
    %289 = arith.addf %288, %287 : vector<8x32xf32>
    %290 = arith.divf %288, %289 : vector<8x32xf32>
    %291 = vector.extract_strided_slice %267 {offsets = [0, 64], sizes = [8, 32], strides = [1, 1]} : vector<8x96xf32> to vector<8x32xf32>
    %292 = vector.extract_strided_slice %271 {offsets = [0, 64], sizes = [8, 32], strides = [1, 1]} : vector<8x96xf32> to vector<8x32xf32>
    %293 = arith.addf %292, %20 : vector<8x32xf32>
    %294 = arith.mulf %282, %293 : vector<8x32xf32>
    %295 = arith.addf %291, %294 : vector<8x32xf32>
    %296 = math.tanh %295 : vector<8x32xf32>
    %297 = vector.extract_strided_slice %268 {offsets = [0, 0], sizes = [8, 32], strides = [1, 1]} : vector<8x96xf32> to vector<8x32xf32>
    %298 = vector.extract_strided_slice %274 {offsets = [0, 0], sizes = [8, 32], strides = [1, 1]} : vector<8x96xf32> to vector<8x32xf32>
    %299 = arith.addf %297, %298 : vector<8x32xf32>
    %300 = arith.negf %299 : vector<8x32xf32>
    %301 = math.exp %300 : vector<8x32xf32>
    %cst_112 = arith.constant 1.000000e+00 : f32
    %302 = vector.broadcast %cst_112 : f32 to vector<8x32xf32>
    %303 = arith.addf %302, %301 : vector<8x32xf32>
    %304 = arith.divf %302, %303 : vector<8x32xf32>
    %305 = vector.extract_strided_slice %268 {offsets = [0, 32], sizes = [8, 32], strides = [1, 1]} : vector<8x96xf32> to vector<8x32xf32>
    %306 = vector.extract_strided_slice %274 {offsets = [0, 32], sizes = [8, 32], strides = [1, 1]} : vector<8x96xf32> to vector<8x32xf32>
    %307 = arith.addf %305, %306 : vector<8x32xf32>
    %308 = arith.negf %307 : vector<8x32xf32>
    %309 = math.exp %308 : vector<8x32xf32>
    %cst_113 = arith.constant 1.000000e+00 : f32
    %310 = vector.broadcast %cst_113 : f32 to vector<8x32xf32>
    %311 = arith.addf %310, %309 : vector<8x32xf32>
    %312 = arith.divf %310, %311 : vector<8x32xf32>
    %313 = vector.extract_strided_slice %268 {offsets = [0, 64], sizes = [8, 32], strides = [1, 1]} : vector<8x96xf32> to vector<8x32xf32>
    %314 = vector.extract_strided_slice %274 {offsets = [0, 64], sizes = [8, 32], strides = [1, 1]} : vector<8x96xf32> to vector<8x32xf32>
    %315 = arith.addf %314, %24 : vector<8x32xf32>
    %316 = arith.mulf %304, %315 : vector<8x32xf32>
    %317 = arith.addf %313, %316 : vector<8x32xf32>
    %318 = math.tanh %317 : vector<8x32xf32>
    %319 = arith.subf %261, %296 : vector<8x32xf32>
    %320 = arith.mulf %290, %319 : vector<8x32xf32>
    %321 = arith.addf %296, %320 : vector<8x32xf32>
    %322 = arith.subf %264, %318 : vector<8x32xf32>
    %323 = arith.mulf %312, %322 : vector<8x32xf32>
    %324 = arith.addf %318, %323 : vector<8x32xf32>
    %c32_114 = arith.constant 32 : index
    %c0_115 = arith.constant 0 : index
    %325 = vector.load %arg11[%c32_114, %c0_115] : memref<64x32xf32, #tpu.memory_space<vmem>>, vector<8x32xf32>
    tpu.vector_store %arg11[%c32_114, %c0_115], %321 {strides = array<i32>} : memref<64x32xf32, #tpu.memory_space<vmem>>, vector<8x32xf32>,
    %c24_116 = arith.constant 24 : index
    %c0_117 = arith.constant 0 : index
    %326 = vector.load %arg12[%c24_116, %c0_117] : memref<64x32xf32, #tpu.memory_space<vmem>>, vector<8x32xf32>
    tpu.vector_store %arg12[%c24_116, %c0_117], %324 {strides = array<i32>} : memref<64x32xf32, #tpu.memory_space<vmem>>, vector<8x32xf32>,
    %c40_118 = arith.constant 40 : index
    %c0_119 = arith.constant 0 : index
    %327 = vector.load %arg9[%c40_118, %c0_119] : memref<64x96xf32, #tpu.memory_space<vmem>>, vector<8x96xf32>
    %c16_120 = arith.constant 16 : index
    %c0_121 = arith.constant 0 : index
    %328 = vector.load %arg10[%c16_120, %c0_121] : memref<64x96xf32, #tpu.memory_space<vmem>>, vector<8x96xf32>
    %c0_122 = arith.constant 0 : index
    %c0_123 = arith.constant 0 : index
    %c0_124 = arith.constant 0 : index
    %329 = vector.load %arg3[%c0_122, %c0_123, %c0_124] : memref<4x32x96xf32, #tpu.memory_space<vmem>>, vector<1x32x96xf32>
    %330 = vector.shape_cast %329 : vector<1x32x96xf32> to vector<32x96xf32>
    %cst_125 = arith.constant dense<0.000000e+00> : vector<8x96xf32>
    %331 = tpu.matmul %321, %330, %cst_125 {dimension_numbers = #tpu.dot_dimension_numbers<[1], [0], [0], [1], [0, 0, 1, 1], [], []>} : vector<8x32xf32>, vector<32x96xf32>, vector<8x96xf32> -> vector<8x96xf32>
    %c1_126 = arith.constant 1 : index
    %c0_127 = arith.constant 0 : index
    %c0_128 = arith.constant 0 : index
    %332 = vector.load %arg3[%c1_126, %c0_127, %c0_128] : memref<4x32x96xf32, #tpu.memory_space<vmem>>, vector<1x32x96xf32>
    %333 = vector.shape_cast %332 : vector<1x32x96xf32> to vector<32x96xf32>
    %cst_129 = arith.constant dense<0.000000e+00> : vector<8x96xf32>
    %334 = tpu.matmul %324, %333, %cst_129 {dimension_numbers = #tpu.dot_dimension_numbers<[1], [0], [0], [1], [0, 0, 1, 1], [], []>} : vector<8x32xf32>, vector<32x96xf32>, vector<8x96xf32> -> vector<8x96xf32>
    %335 = vector.extract_strided_slice %327 {offsets = [0, 0], sizes = [8, 32], strides = [1, 1]} : vector<8x96xf32> to vector<8x32xf32>
    %336 = vector.extract_strided_slice %331 {offsets = [0, 0], sizes = [8, 32], strides = [1, 1]} : vector<8x96xf32> to vector<8x32xf32>
    %337 = arith.addf %335, %336 : vector<8x32xf32>
    %338 = arith.negf %337 : vector<8x32xf32>
    %339 = math.exp %338 : vector<8x32xf32>
    %cst_130 = arith.constant 1.000000e+00 : f32
    %340 = vector.broadcast %cst_130 : f32 to vector<8x32xf32>
    %341 = arith.addf %340, %339 : vector<8x32xf32>
    %342 = arith.divf %340, %341 : vector<8x32xf32>
    %343 = vector.extract_strided_slice %327 {offsets = [0, 32], sizes = [8, 32], strides = [1, 1]} : vector<8x96xf32> to vector<8x32xf32>
    %344 = vector.extract_strided_slice %331 {offsets = [0, 32], sizes = [8, 32], strides = [1, 1]} : vector<8x96xf32> to vector<8x32xf32>
    %345 = arith.addf %343, %344 : vector<8x32xf32>
    %346 = arith.negf %345 : vector<8x32xf32>
    %347 = math.exp %346 : vector<8x32xf32>
    %cst_131 = arith.constant 1.000000e+00 : f32
    %348 = vector.broadcast %cst_131 : f32 to vector<8x32xf32>
    %349 = arith.addf %348, %347 : vector<8x32xf32>
    %350 = arith.divf %348, %349 : vector<8x32xf32>
    %351 = vector.extract_strided_slice %327 {offsets = [0, 64], sizes = [8, 32], strides = [1, 1]} : vector<8x96xf32> to vector<8x32xf32>
    %352 = vector.extract_strided_slice %331 {offsets = [0, 64], sizes = [8, 32], strides = [1, 1]} : vector<8x96xf32> to vector<8x32xf32>
    %353 = arith.addf %352, %20 : vector<8x32xf32>
    %354 = arith.mulf %342, %353 : vector<8x32xf32>
    %355 = arith.addf %351, %354 : vector<8x32xf32>
    %356 = math.tanh %355 : vector<8x32xf32>
    %357 = vector.extract_strided_slice %328 {offsets = [0, 0], sizes = [8, 32], strides = [1, 1]} : vector<8x96xf32> to vector<8x32xf32>
    %358 = vector.extract_strided_slice %334 {offsets = [0, 0], sizes = [8, 32], strides = [1, 1]} : vector<8x96xf32> to vector<8x32xf32>
    %359 = arith.addf %357, %358 : vector<8x32xf32>
    %360 = arith.negf %359 : vector<8x32xf32>
    %361 = math.exp %360 : vector<8x32xf32>
    %cst_132 = arith.constant 1.000000e+00 : f32
    %362 = vector.broadcast %cst_132 : f32 to vector<8x32xf32>
    %363 = arith.addf %362, %361 : vector<8x32xf32>
    %364 = arith.divf %362, %363 : vector<8x32xf32>
    %365 = vector.extract_strided_slice %328 {offsets = [0, 32], sizes = [8, 32], strides = [1, 1]} : vector<8x96xf32> to vector<8x32xf32>
    %366 = vector.extract_strided_slice %334 {offsets = [0, 32], sizes = [8, 32], strides = [1, 1]} : vector<8x96xf32> to vector<8x32xf32>
    %367 = arith.addf %365, %366 : vector<8x32xf32>
    %368 = arith.negf %367 : vector<8x32xf32>
    %369 = math.exp %368 : vector<8x32xf32>
    %cst_133 = arith.constant 1.000000e+00 : f32
    %370 = vector.broadcast %cst_133 : f32 to vector<8x32xf32>
    %371 = arith.addf %370, %369 : vector<8x32xf32>
    %372 = arith.divf %370, %371 : vector<8x32xf32>
    %373 = vector.extract_strided_slice %328 {offsets = [0, 64], sizes = [8, 32], strides = [1, 1]} : vector<8x96xf32> to vector<8x32xf32>
    %374 = vector.extract_strided_slice %334 {offsets = [0, 64], sizes = [8, 32], strides = [1, 1]} : vector<8x96xf32> to vector<8x32xf32>
    %375 = arith.addf %374, %24 : vector<8x32xf32>
    %376 = arith.mulf %364, %375 : vector<8x32xf32>
    %377 = arith.addf %373, %376 : vector<8x32xf32>
    %378 = math.tanh %377 : vector<8x32xf32>
    %379 = arith.subf %321, %356 : vector<8x32xf32>
    %380 = arith.mulf %350, %379 : vector<8x32xf32>
    %381 = arith.addf %356, %380 : vector<8x32xf32>
    %382 = arith.subf %324, %378 : vector<8x32xf32>
    %383 = arith.mulf %372, %382 : vector<8x32xf32>
    %384 = arith.addf %378, %383 : vector<8x32xf32>
    %c40_134 = arith.constant 40 : index
    %c0_135 = arith.constant 0 : index
    %385 = vector.load %arg11[%c40_134, %c0_135] : memref<64x32xf32, #tpu.memory_space<vmem>>, vector<8x32xf32>
    tpu.vector_store %arg11[%c40_134, %c0_135], %381 {strides = array<i32>} : memref<64x32xf32, #tpu.memory_space<vmem>>, vector<8x32xf32>,
    %c16_136 = arith.constant 16 : index
    %c0_137 = arith.constant 0 : index
    %386 = vector.load %arg12[%c16_136, %c0_137] : memref<64x32xf32, #tpu.memory_space<vmem>>, vector<8x32xf32>
    tpu.vector_store %arg12[%c16_136, %c0_137], %384 {strides = array<i32>} : memref<64x32xf32, #tpu.memory_space<vmem>>, vector<8x32xf32>,
    %c48_138 = arith.constant 48 : index
    %c0_139 = arith.constant 0 : index
    %387 = vector.load %arg9[%c48_138, %c0_139] : memref<64x96xf32, #tpu.memory_space<vmem>>, vector<8x96xf32>
    %c8_140 = arith.constant 8 : index
    %c0_141 = arith.constant 0 : index
    %388 = vector.load %arg10[%c8_140, %c0_141] : memref<64x96xf32, #tpu.memory_space<vmem>>, vector<8x96xf32>
    %c0_142 = arith.constant 0 : index
    %c0_143 = arith.constant 0 : index
    %c0_144 = arith.constant 0 : index
    %389 = vector.load %arg3[%c0_142, %c0_143, %c0_144] : memref<4x32x96xf32, #tpu.memory_space<vmem>>, vector<1x32x96xf32>
    %390 = vector.shape_cast %389 : vector<1x32x96xf32> to vector<32x96xf32>
    %cst_145 = arith.constant dense<0.000000e+00> : vector<8x96xf32>
    %391 = tpu.matmul %381, %390, %cst_145 {dimension_numbers = #tpu.dot_dimension_numbers<[1], [0], [0], [1], [0, 0, 1, 1], [], []>} : vector<8x32xf32>, vector<32x96xf32>, vector<8x96xf32> -> vector<8x96xf32>
    %c1_146 = arith.constant 1 : index
    %c0_147 = arith.constant 0 : index
    %c0_148 = arith.constant 0 : index
    %392 = vector.load %arg3[%c1_146, %c0_147, %c0_148] : memref<4x32x96xf32, #tpu.memory_space<vmem>>, vector<1x32x96xf32>
    %393 = vector.shape_cast %392 : vector<1x32x96xf32> to vector<32x96xf32>
    %cst_149 = arith.constant dense<0.000000e+00> : vector<8x96xf32>
    %394 = tpu.matmul %384, %393, %cst_149 {dimension_numbers = #tpu.dot_dimension_numbers<[1], [0], [0], [1], [0, 0, 1, 1], [], []>} : vector<8x32xf32>, vector<32x96xf32>, vector<8x96xf32> -> vector<8x96xf32>
    %395 = vector.extract_strided_slice %387 {offsets = [0, 0], sizes = [8, 32], strides = [1, 1]} : vector<8x96xf32> to vector<8x32xf32>
    %396 = vector.extract_strided_slice %391 {offsets = [0, 0], sizes = [8, 32], strides = [1, 1]} : vector<8x96xf32> to vector<8x32xf32>
    %397 = arith.addf %395, %396 : vector<8x32xf32>
    %398 = arith.negf %397 : vector<8x32xf32>
    %399 = math.exp %398 : vector<8x32xf32>
    %cst_150 = arith.constant 1.000000e+00 : f32
    %400 = vector.broadcast %cst_150 : f32 to vector<8x32xf32>
    %401 = arith.addf %400, %399 : vector<8x32xf32>
    %402 = arith.divf %400, %401 : vector<8x32xf32>
    %403 = vector.extract_strided_slice %387 {offsets = [0, 32], sizes = [8, 32], strides = [1, 1]} : vector<8x96xf32> to vector<8x32xf32>
    %404 = vector.extract_strided_slice %391 {offsets = [0, 32], sizes = [8, 32], strides = [1, 1]} : vector<8x96xf32> to vector<8x32xf32>
    %405 = arith.addf %403, %404 : vector<8x32xf32>
    %406 = arith.negf %405 : vector<8x32xf32>
    %407 = math.exp %406 : vector<8x32xf32>
    %cst_151 = arith.constant 1.000000e+00 : f32
    %408 = vector.broadcast %cst_151 : f32 to vector<8x32xf32>
    %409 = arith.addf %408, %407 : vector<8x32xf32>
    %410 = arith.divf %408, %409 : vector<8x32xf32>
    %411 = vector.extract_strided_slice %387 {offsets = [0, 64], sizes = [8, 32], strides = [1, 1]} : vector<8x96xf32> to vector<8x32xf32>
    %412 = vector.extract_strided_slice %391 {offsets = [0, 64], sizes = [8, 32], strides = [1, 1]} : vector<8x96xf32> to vector<8x32xf32>
    %413 = arith.addf %412, %20 : vector<8x32xf32>
    %414 = arith.mulf %402, %413 : vector<8x32xf32>
    %415 = arith.addf %411, %414 : vector<8x32xf32>
    %416 = math.tanh %415 : vector<8x32xf32>
    %417 = vector.extract_strided_slice %388 {offsets = [0, 0], sizes = [8, 32], strides = [1, 1]} : vector<8x96xf32> to vector<8x32xf32>
    %418 = vector.extract_strided_slice %394 {offsets = [0, 0], sizes = [8, 32], strides = [1, 1]} : vector<8x96xf32> to vector<8x32xf32>
    %419 = arith.addf %417, %418 : vector<8x32xf32>
    %420 = arith.negf %419 : vector<8x32xf32>
    %421 = math.exp %420 : vector<8x32xf32>
    %cst_152 = arith.constant 1.000000e+00 : f32
    %422 = vector.broadcast %cst_152 : f32 to vector<8x32xf32>
    %423 = arith.addf %422, %421 : vector<8x32xf32>
    %424 = arith.divf %422, %423 : vector<8x32xf32>
    %425 = vector.extract_strided_slice %388 {offsets = [0, 32], sizes = [8, 32], strides = [1, 1]} : vector<8x96xf32> to vector<8x32xf32>
    %426 = vector.extract_strided_slice %394 {offsets = [0, 32], sizes = [8, 32], strides = [1, 1]} : vector<8x96xf32> to vector<8x32xf32>
    %427 = arith.addf %425, %426 : vector<8x32xf32>
    %428 = arith.negf %427 : vector<8x32xf32>
    %429 = math.exp %428 : vector<8x32xf32>
    %cst_153 = arith.constant 1.000000e+00 : f32
    %430 = vector.broadcast %cst_153 : f32 to vector<8x32xf32>
    %431 = arith.addf %430, %429 : vector<8x32xf32>
    %432 = arith.divf %430, %431 : vector<8x32xf32>
    %433 = vector.extract_strided_slice %388 {offsets = [0, 64], sizes = [8, 32], strides = [1, 1]} : vector<8x96xf32> to vector<8x32xf32>
    %434 = vector.extract_strided_slice %394 {offsets = [0, 64], sizes = [8, 32], strides = [1, 1]} : vector<8x96xf32> to vector<8x32xf32>
    %435 = arith.addf %434, %24 : vector<8x32xf32>
    %436 = arith.mulf %424, %435 : vector<8x32xf32>
    %437 = arith.addf %433, %436 : vector<8x32xf32>
    %438 = math.tanh %437 : vector<8x32xf32>
    %439 = arith.subf %381, %416 : vector<8x32xf32>
    %440 = arith.mulf %410, %439 : vector<8x32xf32>
    %441 = arith.addf %416, %440 : vector<8x32xf32>
    %442 = arith.subf %384, %438 : vector<8x32xf32>
    %443 = arith.mulf %432, %442 : vector<8x32xf32>
    %444 = arith.addf %438, %443 : vector<8x32xf32>
    %c48_154 = arith.constant 48 : index
    %c0_155 = arith.constant 0 : index
    %445 = vector.load %arg11[%c48_154, %c0_155] : memref<64x32xf32, #tpu.memory_space<vmem>>, vector<8x32xf32>
    tpu.vector_store %arg11[%c48_154, %c0_155], %441 {strides = array<i32>} : memref<64x32xf32, #tpu.memory_space<vmem>>, vector<8x32xf32>,
    %c8_156 = arith.constant 8 : index
    %c0_157 = arith.constant 0 : index
    %446 = vector.load %arg12[%c8_156, %c0_157] : memref<64x32xf32, #tpu.memory_space<vmem>>, vector<8x32xf32>
    tpu.vector_store %arg12[%c8_156, %c0_157], %444 {strides = array<i32>} : memref<64x32xf32, #tpu.memory_space<vmem>>, vector<8x32xf32>,
    %c56_158 = arith.constant 56 : index
    %c0_159 = arith.constant 0 : index
    %447 = vector.load %arg9[%c56_158, %c0_159] : memref<64x96xf32, #tpu.memory_space<vmem>>, vector<8x96xf32>
    %c0_160 = arith.constant 0 : index
    %c0_161 = arith.constant 0 : index
    %448 = vector.load %arg10[%c0_160, %c0_161] : memref<64x96xf32, #tpu.memory_space<vmem>>, vector<8x96xf32>
    %c0_162 = arith.constant 0 : index
    %c0_163 = arith.constant 0 : index
    %c0_164 = arith.constant 0 : index
    %449 = vector.load %arg3[%c0_162, %c0_163, %c0_164] : memref<4x32x96xf32, #tpu.memory_space<vmem>>, vector<1x32x96xf32>
    %450 = vector.shape_cast %449 : vector<1x32x96xf32> to vector<32x96xf32>
    %cst_165 = arith.constant dense<0.000000e+00> : vector<8x96xf32>
    %451 = tpu.matmul %441, %450, %cst_165 {dimension_numbers = #tpu.dot_dimension_numbers<[1], [0], [0], [1], [0, 0, 1, 1], [], []>} : vector<8x32xf32>, vector<32x96xf32>, vector<8x96xf32> -> vector<8x96xf32>
    %c1_166 = arith.constant 1 : index
    %c0_167 = arith.constant 0 : index
    %c0_168 = arith.constant 0 : index
    %452 = vector.load %arg3[%c1_166, %c0_167, %c0_168] : memref<4x32x96xf32, #tpu.memory_space<vmem>>, vector<1x32x96xf32>
    %453 = vector.shape_cast %452 : vector<1x32x96xf32> to vector<32x96xf32>
    %cst_169 = arith.constant dense<0.000000e+00> : vector<8x96xf32>
    %454 = tpu.matmul %444, %453, %cst_169 {dimension_numbers = #tpu.dot_dimension_numbers<[1], [0], [0], [1], [0, 0, 1, 1], [], []>} : vector<8x32xf32>, vector<32x96xf32>, vector<8x96xf32> -> vector<8x96xf32>
    %455 = vector.extract_strided_slice %447 {offsets = [0, 0], sizes = [8, 32], strides = [1, 1]} : vector<8x96xf32> to vector<8x32xf32>
    %456 = vector.extract_strided_slice %451 {offsets = [0, 0], sizes = [8, 32], strides = [1, 1]} : vector<8x96xf32> to vector<8x32xf32>
    %457 = arith.addf %455, %456 : vector<8x32xf32>
    %458 = arith.negf %457 : vector<8x32xf32>
    %459 = math.exp %458 : vector<8x32xf32>
    %cst_170 = arith.constant 1.000000e+00 : f32
    %460 = vector.broadcast %cst_170 : f32 to vector<8x32xf32>
    %461 = arith.addf %460, %459 : vector<8x32xf32>
    %462 = arith.divf %460, %461 : vector<8x32xf32>
    %463 = vector.extract_strided_slice %447 {offsets = [0, 32], sizes = [8, 32], strides = [1, 1]} : vector<8x96xf32> to vector<8x32xf32>
    %464 = vector.extract_strided_slice %451 {offsets = [0, 32], sizes = [8, 32], strides = [1, 1]} : vector<8x96xf32> to vector<8x32xf32>
    %465 = arith.addf %463, %464 : vector<8x32xf32>
    %466 = arith.negf %465 : vector<8x32xf32>
    %467 = math.exp %466 : vector<8x32xf32>
    %cst_171 = arith.constant 1.000000e+00 : f32
    %468 = vector.broadcast %cst_171 : f32 to vector<8x32xf32>
    %469 = arith.addf %468, %467 : vector<8x32xf32>
    %470 = arith.divf %468, %469 : vector<8x32xf32>
    %471 = vector.extract_strided_slice %447 {offsets = [0, 64], sizes = [8, 32], strides = [1, 1]} : vector<8x96xf32> to vector<8x32xf32>
    %472 = vector.extract_strided_slice %451 {offsets = [0, 64], sizes = [8, 32], strides = [1, 1]} : vector<8x96xf32> to vector<8x32xf32>
    %473 = arith.addf %472, %20 : vector<8x32xf32>
    %474 = arith.mulf %462, %473 : vector<8x32xf32>
    %475 = arith.addf %471, %474 : vector<8x32xf32>
    %476 = math.tanh %475 : vector<8x32xf32>
    %477 = vector.extract_strided_slice %448 {offsets = [0, 0], sizes = [8, 32], strides = [1, 1]} : vector<8x96xf32> to vector<8x32xf32>
    %478 = vector.extract_strided_slice %454 {offsets = [0, 0], sizes = [8, 32], strides = [1, 1]} : vector<8x96xf32> to vector<8x32xf32>
    %479 = arith.addf %477, %478 : vector<8x32xf32>
    %480 = arith.negf %479 : vector<8x32xf32>
    %481 = math.exp %480 : vector<8x32xf32>
    %cst_172 = arith.constant 1.000000e+00 : f32
    %482 = vector.broadcast %cst_172 : f32 to vector<8x32xf32>
    %483 = arith.addf %482, %481 : vector<8x32xf32>
    %484 = arith.divf %482, %483 : vector<8x32xf32>
    %485 = vector.extract_strided_slice %448 {offsets = [0, 32], sizes = [8, 32], strides = [1, 1]} : vector<8x96xf32> to vector<8x32xf32>
    %486 = vector.extract_strided_slice %454 {offsets = [0, 32], sizes = [8, 32], strides = [1, 1]} : vector<8x96xf32> to vector<8x32xf32>
    %487 = arith.addf %485, %486 : vector<8x32xf32>
    %488 = arith.negf %487 : vector<8x32xf32>
    %489 = math.exp %488 : vector<8x32xf32>
    %cst_173 = arith.constant 1.000000e+00 : f32
    %490 = vector.broadcast %cst_173 : f32 to vector<8x32xf32>
    %491 = arith.addf %490, %489 : vector<8x32xf32>
    %492 = arith.divf %490, %491 : vector<8x32xf32>
    %493 = vector.extract_strided_slice %448 {offsets = [0, 64], sizes = [8, 32], strides = [1, 1]} : vector<8x96xf32> to vector<8x32xf32>
    %494 = vector.extract_strided_slice %454 {offsets = [0, 64], sizes = [8, 32], strides = [1, 1]} : vector<8x96xf32> to vector<8x32xf32>
    %495 = arith.addf %494, %24 : vector<8x32xf32>
    %496 = arith.mulf %484, %495 : vector<8x32xf32>
    %497 = arith.addf %493, %496 : vector<8x32xf32>
    %498 = math.tanh %497 : vector<8x32xf32>
    %499 = arith.subf %441, %476 : vector<8x32xf32>
    %500 = arith.mulf %470, %499 : vector<8x32xf32>
    %501 = arith.addf %476, %500 : vector<8x32xf32>
    %502 = arith.subf %444, %498 : vector<8x32xf32>
    %503 = arith.mulf %492, %502 : vector<8x32xf32>
    %504 = arith.addf %498, %503 : vector<8x32xf32>
    %c56_174 = arith.constant 56 : index
    %c0_175 = arith.constant 0 : index
    %505 = vector.load %arg11[%c56_174, %c0_175] : memref<64x32xf32, #tpu.memory_space<vmem>>, vector<8x32xf32>
    tpu.vector_store %arg11[%c56_174, %c0_175], %501 {strides = array<i32>} : memref<64x32xf32, #tpu.memory_space<vmem>>, vector<8x32xf32>,
    %c0_176 = arith.constant 0 : index
    %c0_177 = arith.constant 0 : index
    %506 = vector.load %arg12[%c0_176, %c0_177] : memref<64x32xf32, #tpu.memory_space<vmem>>, vector<8x32xf32>
    tpu.vector_store %arg12[%c0_176, %c0_177], %504 {strides = array<i32>} : memref<64x32xf32, #tpu.memory_space<vmem>>, vector<8x32xf32>,
    %c0_178 = arith.constant 0 : index
    %c0_179 = arith.constant 0 : index
    %507 = vector.load %arg11[%c0_178, %c0_179] : memref<64x32xf32, #tpu.memory_space<vmem>>, vector<64x32xf32>
    %c0_180 = arith.constant 0 : index
    %c0_181 = arith.constant 0 : index
    %508 = vector.load %arg12[%c0_180, %c0_181] : memref<64x32xf32, #tpu.memory_space<vmem>>, vector<64x32xf32>
    %c0_182 = arith.constant 0 : index
    %c0_183 = arith.constant 0 : index
    %c0_184 = arith.constant 0 : index
    %509 = vector.load %arg2[%c0_182, %c0_183, %c0_184] : memref<4x32x96xf32, #tpu.memory_space<vmem>>, vector<1x32x96xf32>
    %510 = vector.shape_cast %509 : vector<1x32x96xf32> to vector<32x96xf32>
    %cst_185 = arith.constant dense<0.000000e+00> : vector<64x96xf32>
    %511 = tpu.matmul %507, %510, %cst_185 {dimension_numbers = #tpu.dot_dimension_numbers<[1], [0], [0], [1], [0, 0, 1, 1], [], []>} : vector<64x32xf32>, vector<32x96xf32>, vector<64x96xf32> -> vector<64x96xf32>
    %c1_186 = arith.constant 1 : index
    %c0_187 = arith.constant 0 : index
    %c0_188 = arith.constant 0 : index
    %512 = vector.load %arg2[%c1_186, %c0_187, %c0_188] : memref<4x32x96xf32, #tpu.memory_space<vmem>>, vector<1x32x96xf32>
    %513 = vector.shape_cast %512 : vector<1x32x96xf32> to vector<32x96xf32>
    %cst_189 = arith.constant dense<0.000000e+00> : vector<64x96xf32>
    %514 = tpu.matmul %508, %513, %cst_189 {dimension_numbers = #tpu.dot_dimension_numbers<[1], [0], [0], [1], [0, 0, 1, 1], [], []>} : vector<64x32xf32>, vector<32x96xf32>, vector<64x96xf32> -> vector<64x96xf32>
    %515 = arith.addf %511, %514 : vector<64x96xf32>
    %c2 = arith.constant 2 : index
    %c0_190 = arith.constant 0 : index
    %c0_191 = arith.constant 0 : index
    %516 = vector.load %arg4[%c2, %c0_190, %c0_191] : memref<4x1x96xf32, #tpu.memory_space<vmem>>, vector<1x1x96xf32>
    %517 = vector.shape_cast %516 : vector<1x1x96xf32> to vector<1x96xf32>
    %518 = vector.broadcast %517 : vector<1x96xf32> to vector<64x96xf32>
    %519 = arith.addf %515, %518 : vector<64x96xf32>
    %c0_192 = arith.constant 0 : index
    %c0_193 = arith.constant 0 : index
    %520 = vector.load %arg9[%c0_192, %c0_193] : memref<64x96xf32, #tpu.memory_space<vmem>>, vector<64x96xf32>
    tpu.vector_store %arg9[%c0_192, %c0_193], %519 {strides = array<i32>} : memref<64x96xf32, #tpu.memory_space<vmem>>, vector<64x96xf32>,
    %c2_194 = arith.constant 2 : index
    %c0_195 = arith.constant 0 : index
    %c0_196 = arith.constant 0 : index
    %521 = vector.load %arg2[%c2_194, %c0_195, %c0_196] : memref<4x32x96xf32, #tpu.memory_space<vmem>>, vector<1x32x96xf32>
    %522 = vector.shape_cast %521 : vector<1x32x96xf32> to vector<32x96xf32>
    %cst_197 = arith.constant dense<0.000000e+00> : vector<64x96xf32>
    %523 = tpu.matmul %507, %522, %cst_197 {dimension_numbers = #tpu.dot_dimension_numbers<[1], [0], [0], [1], [0, 0, 1, 1], [], []>} : vector<64x32xf32>, vector<32x96xf32>, vector<64x96xf32> -> vector<64x96xf32>
    %c3 = arith.constant 3 : index
    %c0_198 = arith.constant 0 : index
    %c0_199 = arith.constant 0 : index
    %524 = vector.load %arg2[%c3, %c0_198, %c0_199] : memref<4x32x96xf32, #tpu.memory_space<vmem>>, vector<1x32x96xf32>
    %525 = vector.shape_cast %524 : vector<1x32x96xf32> to vector<32x96xf32>
    %cst_200 = arith.constant dense<0.000000e+00> : vector<64x96xf32>
    %526 = tpu.matmul %508, %525, %cst_200 {dimension_numbers = #tpu.dot_dimension_numbers<[1], [0], [0], [1], [0, 0, 1, 1], [], []>} : vector<64x32xf32>, vector<32x96xf32>, vector<64x96xf32> -> vector<64x96xf32>
    %527 = arith.addf %523, %526 : vector<64x96xf32>
    %c3_201 = arith.constant 3 : index
    %c0_202 = arith.constant 0 : index
    %c0_203 = arith.constant 0 : index
    %528 = vector.load %arg4[%c3_201, %c0_202, %c0_203] : memref<4x1x96xf32, #tpu.memory_space<vmem>>, vector<1x1x96xf32>
    %529 = vector.shape_cast %528 : vector<1x1x96xf32> to vector<1x96xf32>
    %530 = vector.broadcast %529 : vector<1x96xf32> to vector<64x96xf32>
    %531 = arith.addf %527, %530 : vector<64x96xf32>
    %c0_204 = arith.constant 0 : index
    %c0_205 = arith.constant 0 : index
    %532 = vector.load %arg10[%c0_204, %c0_205] : memref<64x96xf32, #tpu.memory_space<vmem>>, vector<64x96xf32>
    tpu.vector_store %arg10[%c0_204, %c0_205], %531 {strides = array<i32>} : memref<64x96xf32, #tpu.memory_space<vmem>>, vector<64x96xf32>,
    %c2_206 = arith.constant 2 : index
    %c0_207 = arith.constant 0 : index
    %c0_208 = arith.constant 0 : index
    %533 = vector.load %arg5[%c2_206, %c0_207, %c0_208] : memref<4x1x32xf32, #tpu.memory_space<vmem>>, vector<1x1x32xf32>
    %534 = vector.shape_cast %533 : vector<1x1x32xf32> to vector<1x32xf32>
    %535 = vector.shape_cast %534 : vector<1x32xf32> to vector<1x32xf32>
    %536 = vector.broadcast %535 : vector<1x32xf32> to vector<8x32xf32>
    %c3_209 = arith.constant 3 : index
    %c0_210 = arith.constant 0 : index
    %c0_211 = arith.constant 0 : index
    %537 = vector.load %arg5[%c3_209, %c0_210, %c0_211] : memref<4x1x32xf32, #tpu.memory_space<vmem>>, vector<1x1x32xf32>
    %538 = vector.shape_cast %537 : vector<1x1x32xf32> to vector<1x32xf32>
    %539 = vector.shape_cast %538 : vector<1x32xf32> to vector<1x32xf32>
    %540 = vector.broadcast %539 : vector<1x32xf32> to vector<8x32xf32>
    %cst_212 = arith.constant 0.000000e+00 : f32
    %541 = vector.broadcast %cst_212 : f32 to vector<8x32xf32>
    %cst_213 = arith.constant 0.000000e+00 : f32
    %542 = vector.broadcast %cst_213 : f32 to vector<8x32xf32>
    %c0_214 = arith.constant 0 : index
    %c0_215 = arith.constant 0 : index
    %543 = vector.load %arg9[%c0_214, %c0_215] : memref<64x96xf32, #tpu.memory_space<vmem>>, vector<8x96xf32>
    %c56_216 = arith.constant 56 : index
    %c0_217 = arith.constant 0 : index
    %544 = vector.load %arg10[%c56_216, %c0_217] : memref<64x96xf32, #tpu.memory_space<vmem>>, vector<8x96xf32>
    %c2_218 = arith.constant 2 : index
    %c0_219 = arith.constant 0 : index
    %c0_220 = arith.constant 0 : index
    %545 = vector.load %arg3[%c2_218, %c0_219, %c0_220] : memref<4x32x96xf32, #tpu.memory_space<vmem>>, vector<1x32x96xf32>
    %546 = vector.shape_cast %545 : vector<1x32x96xf32> to vector<32x96xf32>
    %cst_221 = arith.constant dense<0.000000e+00> : vector<8x96xf32>
    %547 = tpu.matmul %541, %546, %cst_221 {dimension_numbers = #tpu.dot_dimension_numbers<[1], [0], [0], [1], [0, 0, 1, 1], [], []>} : vector<8x32xf32>, vector<32x96xf32>, vector<8x96xf32> -> vector<8x96xf32>
    %c3_222 = arith.constant 3 : index
    %c0_223 = arith.constant 0 : index
    %c0_224 = arith.constant 0 : index
    %548 = vector.load %arg3[%c3_222, %c0_223, %c0_224] : memref<4x32x96xf32, #tpu.memory_space<vmem>>, vector<1x32x96xf32>
    %549 = vector.shape_cast %548 : vector<1x32x96xf32> to vector<32x96xf32>
    %cst_225 = arith.constant dense<0.000000e+00> : vector<8x96xf32>
    %550 = tpu.matmul %542, %549, %cst_225 {dimension_numbers = #tpu.dot_dimension_numbers<[1], [0], [0], [1], [0, 0, 1, 1], [], []>} : vector<8x32xf32>, vector<32x96xf32>, vector<8x96xf32> -> vector<8x96xf32>
    %551 = vector.extract_strided_slice %543 {offsets = [0, 0], sizes = [8, 32], strides = [1, 1]} : vector<8x96xf32> to vector<8x32xf32>
    %552 = vector.extract_strided_slice %547 {offsets = [0, 0], sizes = [8, 32], strides = [1, 1]} : vector<8x96xf32> to vector<8x32xf32>
    %553 = arith.addf %551, %552 : vector<8x32xf32>
    %554 = arith.negf %553 : vector<8x32xf32>
    %555 = math.exp %554 : vector<8x32xf32>
    %cst_226 = arith.constant 1.000000e+00 : f32
    %556 = vector.broadcast %cst_226 : f32 to vector<8x32xf32>
    %557 = arith.addf %556, %555 : vector<8x32xf32>
    %558 = arith.divf %556, %557 : vector<8x32xf32>
    %559 = vector.extract_strided_slice %543 {offsets = [0, 32], sizes = [8, 32], strides = [1, 1]} : vector<8x96xf32> to vector<8x32xf32>
    %560 = vector.extract_strided_slice %547 {offsets = [0, 32], sizes = [8, 32], strides = [1, 1]} : vector<8x96xf32> to vector<8x32xf32>
    %561 = arith.addf %559, %560 : vector<8x32xf32>
    %562 = arith.negf %561 : vector<8x32xf32>
    %563 = math.exp %562 : vector<8x32xf32>
    %cst_227 = arith.constant 1.000000e+00 : f32
    %564 = vector.broadcast %cst_227 : f32 to vector<8x32xf32>
    %565 = arith.addf %564, %563 : vector<8x32xf32>
    %566 = arith.divf %564, %565 : vector<8x32xf32>
    %567 = vector.extract_strided_slice %543 {offsets = [0, 64], sizes = [8, 32], strides = [1, 1]} : vector<8x96xf32> to vector<8x32xf32>
    %568 = vector.extract_strided_slice %547 {offsets = [0, 64], sizes = [8, 32], strides = [1, 1]} : vector<8x96xf32> to vector<8x32xf32>
    %569 = arith.addf %568, %536 : vector<8x32xf32>
    %570 = arith.mulf %558, %569 : vector<8x32xf32>
    %571 = arith.addf %567, %570 : vector<8x32xf32>
    %572 = math.tanh %571 : vector<8x32xf32>
    %573 = vector.extract_strided_slice %544 {offsets = [0, 0], sizes = [8, 32], strides = [1, 1]} : vector<8x96xf32> to vector<8x32xf32>
    %574 = vector.extract_strided_slice %550 {offsets = [0, 0], sizes = [8, 32], strides = [1, 1]} : vector<8x96xf32> to vector<8x32xf32>
    %575 = arith.addf %573, %574 : vector<8x32xf32>
    %576 = arith.negf %575 : vector<8x32xf32>
    %577 = math.exp %576 : vector<8x32xf32>
    %cst_228 = arith.constant 1.000000e+00 : f32
    %578 = vector.broadcast %cst_228 : f32 to vector<8x32xf32>
    %579 = arith.addf %578, %577 : vector<8x32xf32>
    %580 = arith.divf %578, %579 : vector<8x32xf32>
    %581 = vector.extract_strided_slice %544 {offsets = [0, 32], sizes = [8, 32], strides = [1, 1]} : vector<8x96xf32> to vector<8x32xf32>
    %582 = vector.extract_strided_slice %550 {offsets = [0, 32], sizes = [8, 32], strides = [1, 1]} : vector<8x96xf32> to vector<8x32xf32>
    %583 = arith.addf %581, %582 : vector<8x32xf32>
    %584 = arith.negf %583 : vector<8x32xf32>
    %585 = math.exp %584 : vector<8x32xf32>
    %cst_229 = arith.constant 1.000000e+00 : f32
    %586 = vector.broadcast %cst_229 : f32 to vector<8x32xf32>
    %587 = arith.addf %586, %585 : vector<8x32xf32>
    %588 = arith.divf %586, %587 : vector<8x32xf32>
    %589 = vector.extract_strided_slice %544 {offsets = [0, 64], sizes = [8, 32], strides = [1, 1]} : vector<8x96xf32> to vector<8x32xf32>
    %590 = vector.extract_strided_slice %550 {offsets = [0, 64], sizes = [8, 32], strides = [1, 1]} : vector<8x96xf32> to vector<8x32xf32>
    %591 = arith.addf %590, %540 : vector<8x32xf32>
    %592 = arith.mulf %580, %591 : vector<8x32xf32>
    %593 = arith.addf %589, %592 : vector<8x32xf32>
    %594 = math.tanh %593 : vector<8x32xf32>
    %595 = arith.subf %541, %572 : vector<8x32xf32>
    %596 = arith.mulf %566, %595 : vector<8x32xf32>
    %597 = arith.addf %572, %596 : vector<8x32xf32>
    %598 = arith.subf %542, %594 : vector<8x32xf32>
    %599 = arith.mulf %588, %598 : vector<8x32xf32>
    %600 = arith.addf %594, %599 : vector<8x32xf32>
    %c8_230 = arith.constant 8 : index
    %c0_231 = arith.constant 0 : index
    %601 = vector.load %arg9[%c8_230, %c0_231] : memref<64x96xf32, #tpu.memory_space<vmem>>, vector<8x96xf32>
    %c48_232 = arith.constant 48 : index
    %c0_233 = arith.constant 0 : index
    %602 = vector.load %arg10[%c48_232, %c0_233] : memref<64x96xf32, #tpu.memory_space<vmem>>, vector<8x96xf32>
    %c2_234 = arith.constant 2 : index
    %c0_235 = arith.constant 0 : index
    %c0_236 = arith.constant 0 : index
    %603 = vector.load %arg3[%c2_234, %c0_235, %c0_236] : memref<4x32x96xf32, #tpu.memory_space<vmem>>, vector<1x32x96xf32>
    %604 = vector.shape_cast %603 : vector<1x32x96xf32> to vector<32x96xf32>
    %cst_237 = arith.constant dense<0.000000e+00> : vector<8x96xf32>
    %605 = tpu.matmul %597, %604, %cst_237 {dimension_numbers = #tpu.dot_dimension_numbers<[1], [0], [0], [1], [0, 0, 1, 1], [], []>} : vector<8x32xf32>, vector<32x96xf32>, vector<8x96xf32> -> vector<8x96xf32>
    %c3_238 = arith.constant 3 : index
    %c0_239 = arith.constant 0 : index
    %c0_240 = arith.constant 0 : index
    %606 = vector.load %arg3[%c3_238, %c0_239, %c0_240] : memref<4x32x96xf32, #tpu.memory_space<vmem>>, vector<1x32x96xf32>
    %607 = vector.shape_cast %606 : vector<1x32x96xf32> to vector<32x96xf32>
    %cst_241 = arith.constant dense<0.000000e+00> : vector<8x96xf32>
    %608 = tpu.matmul %600, %607, %cst_241 {dimension_numbers = #tpu.dot_dimension_numbers<[1], [0], [0], [1], [0, 0, 1, 1], [], []>} : vector<8x32xf32>, vector<32x96xf32>, vector<8x96xf32> -> vector<8x96xf32>
    %609 = vector.extract_strided_slice %601 {offsets = [0, 0], sizes = [8, 32], strides = [1, 1]} : vector<8x96xf32> to vector<8x32xf32>
    %610 = vector.extract_strided_slice %605 {offsets = [0, 0], sizes = [8, 32], strides = [1, 1]} : vector<8x96xf32> to vector<8x32xf32>
    %611 = arith.addf %609, %610 : vector<8x32xf32>
    %612 = arith.negf %611 : vector<8x32xf32>
    %613 = math.exp %612 : vector<8x32xf32>
    %cst_242 = arith.constant 1.000000e+00 : f32
    %614 = vector.broadcast %cst_242 : f32 to vector<8x32xf32>
    %615 = arith.addf %614, %613 : vector<8x32xf32>
    %616 = arith.divf %614, %615 : vector<8x32xf32>
    %617 = vector.extract_strided_slice %601 {offsets = [0, 32], sizes = [8, 32], strides = [1, 1]} : vector<8x96xf32> to vector<8x32xf32>
    %618 = vector.extract_strided_slice %605 {offsets = [0, 32], sizes = [8, 32], strides = [1, 1]} : vector<8x96xf32> to vector<8x32xf32>
    %619 = arith.addf %617, %618 : vector<8x32xf32>
    %620 = arith.negf %619 : vector<8x32xf32>
    %621 = math.exp %620 : vector<8x32xf32>
    %cst_243 = arith.constant 1.000000e+00 : f32
    %622 = vector.broadcast %cst_243 : f32 to vector<8x32xf32>
    %623 = arith.addf %622, %621 : vector<8x32xf32>
    %624 = arith.divf %622, %623 : vector<8x32xf32>
    %625 = vector.extract_strided_slice %601 {offsets = [0, 64], sizes = [8, 32], strides = [1, 1]} : vector<8x96xf32> to vector<8x32xf32>
    %626 = vector.extract_strided_slice %605 {offsets = [0, 64], sizes = [8, 32], strides = [1, 1]} : vector<8x96xf32> to vector<8x32xf32>
    %627 = arith.addf %626, %536 : vector<8x32xf32>
    %628 = arith.mulf %616, %627 : vector<8x32xf32>
    %629 = arith.addf %625, %628 : vector<8x32xf32>
    %630 = math.tanh %629 : vector<8x32xf32>
    %631 = vector.extract_strided_slice %602 {offsets = [0, 0], sizes = [8, 32], strides = [1, 1]} : vector<8x96xf32> to vector<8x32xf32>
    %632 = vector.extract_strided_slice %608 {offsets = [0, 0], sizes = [8, 32], strides = [1, 1]} : vector<8x96xf32> to vector<8x32xf32>
    %633 = arith.addf %631, %632 : vector<8x32xf32>
    %634 = arith.negf %633 : vector<8x32xf32>
    %635 = math.exp %634 : vector<8x32xf32>
    %cst_244 = arith.constant 1.000000e+00 : f32
    %636 = vector.broadcast %cst_244 : f32 to vector<8x32xf32>
    %637 = arith.addf %636, %635 : vector<8x32xf32>
    %638 = arith.divf %636, %637 : vector<8x32xf32>
    %639 = vector.extract_strided_slice %602 {offsets = [0, 32], sizes = [8, 32], strides = [1, 1]} : vector<8x96xf32> to vector<8x32xf32>
    %640 = vector.extract_strided_slice %608 {offsets = [0, 32], sizes = [8, 32], strides = [1, 1]} : vector<8x96xf32> to vector<8x32xf32>
    %641 = arith.addf %639, %640 : vector<8x32xf32>
    %642 = arith.negf %641 : vector<8x32xf32>
    %643 = math.exp %642 : vector<8x32xf32>
    %cst_245 = arith.constant 1.000000e+00 : f32
    %644 = vector.broadcast %cst_245 : f32 to vector<8x32xf32>
    %645 = arith.addf %644, %643 : vector<8x32xf32>
    %646 = arith.divf %644, %645 : vector<8x32xf32>
    %647 = vector.extract_strided_slice %602 {offsets = [0, 64], sizes = [8, 32], strides = [1, 1]} : vector<8x96xf32> to vector<8x32xf32>
    %648 = vector.extract_strided_slice %608 {offsets = [0, 64], sizes = [8, 32], strides = [1, 1]} : vector<8x96xf32> to vector<8x32xf32>
    %649 = arith.addf %648, %540 : vector<8x32xf32>
    %650 = arith.mulf %638, %649 : vector<8x32xf32>
    %651 = arith.addf %647, %650 : vector<8x32xf32>
    %652 = math.tanh %651 : vector<8x32xf32>
    %653 = arith.subf %597, %630 : vector<8x32xf32>
    %654 = arith.mulf %624, %653 : vector<8x32xf32>
    %655 = arith.addf %630, %654 : vector<8x32xf32>
    %656 = arith.subf %600, %652 : vector<8x32xf32>
    %657 = arith.mulf %646, %656 : vector<8x32xf32>
    %658 = arith.addf %652, %657 : vector<8x32xf32>
    %c16_246 = arith.constant 16 : index
    %c0_247 = arith.constant 0 : index
    %659 = vector.load %arg9[%c16_246, %c0_247] : memref<64x96xf32, #tpu.memory_space<vmem>>, vector<8x96xf32>
    %c40_248 = arith.constant 40 : index
    %c0_249 = arith.constant 0 : index
    %660 = vector.load %arg10[%c40_248, %c0_249] : memref<64x96xf32, #tpu.memory_space<vmem>>, vector<8x96xf32>
    %c2_250 = arith.constant 2 : index
    %c0_251 = arith.constant 0 : index
    %c0_252 = arith.constant 0 : index
    %661 = vector.load %arg3[%c2_250, %c0_251, %c0_252] : memref<4x32x96xf32, #tpu.memory_space<vmem>>, vector<1x32x96xf32>
    %662 = vector.shape_cast %661 : vector<1x32x96xf32> to vector<32x96xf32>
    %cst_253 = arith.constant dense<0.000000e+00> : vector<8x96xf32>
    %663 = tpu.matmul %655, %662, %cst_253 {dimension_numbers = #tpu.dot_dimension_numbers<[1], [0], [0], [1], [0, 0, 1, 1], [], []>} : vector<8x32xf32>, vector<32x96xf32>, vector<8x96xf32> -> vector<8x96xf32>
    %c3_254 = arith.constant 3 : index
    %c0_255 = arith.constant 0 : index
    %c0_256 = arith.constant 0 : index
    %664 = vector.load %arg3[%c3_254, %c0_255, %c0_256] : memref<4x32x96xf32, #tpu.memory_space<vmem>>, vector<1x32x96xf32>
    %665 = vector.shape_cast %664 : vector<1x32x96xf32> to vector<32x96xf32>
    %cst_257 = arith.constant dense<0.000000e+00> : vector<8x96xf32>
    %666 = tpu.matmul %658, %665, %cst_257 {dimension_numbers = #tpu.dot_dimension_numbers<[1], [0], [0], [1], [0, 0, 1, 1], [], []>} : vector<8x32xf32>, vector<32x96xf32>, vector<8x96xf32> -> vector<8x96xf32>
    %667 = vector.extract_strided_slice %659 {offsets = [0, 0], sizes = [8, 32], strides = [1, 1]} : vector<8x96xf32> to vector<8x32xf32>
    %668 = vector.extract_strided_slice %663 {offsets = [0, 0], sizes = [8, 32], strides = [1, 1]} : vector<8x96xf32> to vector<8x32xf32>
    %669 = arith.addf %667, %668 : vector<8x32xf32>
    %670 = arith.negf %669 : vector<8x32xf32>
    %671 = math.exp %670 : vector<8x32xf32>
    %cst_258 = arith.constant 1.000000e+00 : f32
    %672 = vector.broadcast %cst_258 : f32 to vector<8x32xf32>
    %673 = arith.addf %672, %671 : vector<8x32xf32>
    %674 = arith.divf %672, %673 : vector<8x32xf32>
    %675 = vector.extract_strided_slice %659 {offsets = [0, 32], sizes = [8, 32], strides = [1, 1]} : vector<8x96xf32> to vector<8x32xf32>
    %676 = vector.extract_strided_slice %663 {offsets = [0, 32], sizes = [8, 32], strides = [1, 1]} : vector<8x96xf32> to vector<8x32xf32>
    %677 = arith.addf %675, %676 : vector<8x32xf32>
    %678 = arith.negf %677 : vector<8x32xf32>
    %679 = math.exp %678 : vector<8x32xf32>
    %cst_259 = arith.constant 1.000000e+00 : f32
    %680 = vector.broadcast %cst_259 : f32 to vector<8x32xf32>
    %681 = arith.addf %680, %679 : vector<8x32xf32>
    %682 = arith.divf %680, %681 : vector<8x32xf32>
    %683 = vector.extract_strided_slice %659 {offsets = [0, 64], sizes = [8, 32], strides = [1, 1]} : vector<8x96xf32> to vector<8x32xf32>
    %684 = vector.extract_strided_slice %663 {offsets = [0, 64], sizes = [8, 32], strides = [1, 1]} : vector<8x96xf32> to vector<8x32xf32>
    %685 = arith.addf %684, %536 : vector<8x32xf32>
    %686 = arith.mulf %674, %685 : vector<8x32xf32>
    %687 = arith.addf %683, %686 : vector<8x32xf32>
    %688 = math.tanh %687 : vector<8x32xf32>
    %689 = vector.extract_strided_slice %660 {offsets = [0, 0], sizes = [8, 32], strides = [1, 1]} : vector<8x96xf32> to vector<8x32xf32>
    %690 = vector.extract_strided_slice %666 {offsets = [0, 0], sizes = [8, 32], strides = [1, 1]} : vector<8x96xf32> to vector<8x32xf32>
    %691 = arith.addf %689, %690 : vector<8x32xf32>
    %692 = arith.negf %691 : vector<8x32xf32>
    %693 = math.exp %692 : vector<8x32xf32>
    %cst_260 = arith.constant 1.000000e+00 : f32
    %694 = vector.broadcast %cst_260 : f32 to vector<8x32xf32>
    %695 = arith.addf %694, %693 : vector<8x32xf32>
    %696 = arith.divf %694, %695 : vector<8x32xf32>
    %697 = vector.extract_strided_slice %660 {offsets = [0, 32], sizes = [8, 32], strides = [1, 1]} : vector<8x96xf32> to vector<8x32xf32>
    %698 = vector.extract_strided_slice %666 {offsets = [0, 32], sizes = [8, 32], strides = [1, 1]} : vector<8x96xf32> to vector<8x32xf32>
    %699 = arith.addf %697, %698 : vector<8x32xf32>
    %700 = arith.negf %699 : vector<8x32xf32>
    %701 = math.exp %700 : vector<8x32xf32>
    %cst_261 = arith.constant 1.000000e+00 : f32
    %702 = vector.broadcast %cst_261 : f32 to vector<8x32xf32>
    %703 = arith.addf %702, %701 : vector<8x32xf32>
    %704 = arith.divf %702, %703 : vector<8x32xf32>
    %705 = vector.extract_strided_slice %660 {offsets = [0, 64], sizes = [8, 32], strides = [1, 1]} : vector<8x96xf32> to vector<8x32xf32>
    %706 = vector.extract_strided_slice %666 {offsets = [0, 64], sizes = [8, 32], strides = [1, 1]} : vector<8x96xf32> to vector<8x32xf32>
    %707 = arith.addf %706, %540 : vector<8x32xf32>
    %708 = arith.mulf %696, %707 : vector<8x32xf32>
    %709 = arith.addf %705, %708 : vector<8x32xf32>
    %710 = math.tanh %709 : vector<8x32xf32>
    %711 = arith.subf %655, %688 : vector<8x32xf32>
    %712 = arith.mulf %682, %711 : vector<8x32xf32>
    %713 = arith.addf %688, %712 : vector<8x32xf32>
    %714 = arith.subf %658, %710 : vector<8x32xf32>
    %715 = arith.mulf %704, %714 : vector<8x32xf32>
    %716 = arith.addf %710, %715 : vector<8x32xf32>
    %c24_262 = arith.constant 24 : index
    %c0_263 = arith.constant 0 : index
    %717 = vector.load %arg9[%c24_262, %c0_263] : memref<64x96xf32, #tpu.memory_space<vmem>>, vector<8x96xf32>
    %c32_264 = arith.constant 32 : index
    %c0_265 = arith.constant 0 : index
    %718 = vector.load %arg10[%c32_264, %c0_265] : memref<64x96xf32, #tpu.memory_space<vmem>>, vector<8x96xf32>
    %c2_266 = arith.constant 2 : index
    %c0_267 = arith.constant 0 : index
    %c0_268 = arith.constant 0 : index
    %719 = vector.load %arg3[%c2_266, %c0_267, %c0_268] : memref<4x32x96xf32, #tpu.memory_space<vmem>>, vector<1x32x96xf32>
    %720 = vector.shape_cast %719 : vector<1x32x96xf32> to vector<32x96xf32>
    %cst_269 = arith.constant dense<0.000000e+00> : vector<8x96xf32>
    %721 = tpu.matmul %713, %720, %cst_269 {dimension_numbers = #tpu.dot_dimension_numbers<[1], [0], [0], [1], [0, 0, 1, 1], [], []>} : vector<8x32xf32>, vector<32x96xf32>, vector<8x96xf32> -> vector<8x96xf32>
    %c3_270 = arith.constant 3 : index
    %c0_271 = arith.constant 0 : index
    %c0_272 = arith.constant 0 : index
    %722 = vector.load %arg3[%c3_270, %c0_271, %c0_272] : memref<4x32x96xf32, #tpu.memory_space<vmem>>, vector<1x32x96xf32>
    %723 = vector.shape_cast %722 : vector<1x32x96xf32> to vector<32x96xf32>
    %cst_273 = arith.constant dense<0.000000e+00> : vector<8x96xf32>
    %724 = tpu.matmul %716, %723, %cst_273 {dimension_numbers = #tpu.dot_dimension_numbers<[1], [0], [0], [1], [0, 0, 1, 1], [], []>} : vector<8x32xf32>, vector<32x96xf32>, vector<8x96xf32> -> vector<8x96xf32>
    %725 = vector.extract_strided_slice %717 {offsets = [0, 0], sizes = [8, 32], strides = [1, 1]} : vector<8x96xf32> to vector<8x32xf32>
    %726 = vector.extract_strided_slice %721 {offsets = [0, 0], sizes = [8, 32], strides = [1, 1]} : vector<8x96xf32> to vector<8x32xf32>
    %727 = arith.addf %725, %726 : vector<8x32xf32>
    %728 = arith.negf %727 : vector<8x32xf32>
    %729 = math.exp %728 : vector<8x32xf32>
    %cst_274 = arith.constant 1.000000e+00 : f32
    %730 = vector.broadcast %cst_274 : f32 to vector<8x32xf32>
    %731 = arith.addf %730, %729 : vector<8x32xf32>
    %732 = arith.divf %730, %731 : vector<8x32xf32>
    %733 = vector.extract_strided_slice %717 {offsets = [0, 32], sizes = [8, 32], strides = [1, 1]} : vector<8x96xf32> to vector<8x32xf32>
    %734 = vector.extract_strided_slice %721 {offsets = [0, 32], sizes = [8, 32], strides = [1, 1]} : vector<8x96xf32> to vector<8x32xf32>
    %735 = arith.addf %733, %734 : vector<8x32xf32>
    %736 = arith.negf %735 : vector<8x32xf32>
    %737 = math.exp %736 : vector<8x32xf32>
    %cst_275 = arith.constant 1.000000e+00 : f32
    %738 = vector.broadcast %cst_275 : f32 to vector<8x32xf32>
    %739 = arith.addf %738, %737 : vector<8x32xf32>
    %740 = arith.divf %738, %739 : vector<8x32xf32>
    %741 = vector.extract_strided_slice %717 {offsets = [0, 64], sizes = [8, 32], strides = [1, 1]} : vector<8x96xf32> to vector<8x32xf32>
    %742 = vector.extract_strided_slice %721 {offsets = [0, 64], sizes = [8, 32], strides = [1, 1]} : vector<8x96xf32> to vector<8x32xf32>
    %743 = arith.addf %742, %536 : vector<8x32xf32>
    %744 = arith.mulf %732, %743 : vector<8x32xf32>
    %745 = arith.addf %741, %744 : vector<8x32xf32>
    %746 = math.tanh %745 : vector<8x32xf32>
    %747 = vector.extract_strided_slice %718 {offsets = [0, 0], sizes = [8, 32], strides = [1, 1]} : vector<8x96xf32> to vector<8x32xf32>
    %748 = vector.extract_strided_slice %724 {offsets = [0, 0], sizes = [8, 32], strides = [1, 1]} : vector<8x96xf32> to vector<8x32xf32>
    %749 = arith.addf %747, %748 : vector<8x32xf32>
    %750 = arith.negf %749 : vector<8x32xf32>
    %751 = math.exp %750 : vector<8x32xf32>
    %cst_276 = arith.constant 1.000000e+00 : f32
    %752 = vector.broadcast %cst_276 : f32 to vector<8x32xf32>
    %753 = arith.addf %752, %751 : vector<8x32xf32>
    %754 = arith.divf %752, %753 : vector<8x32xf32>
    %755 = vector.extract_strided_slice %718 {offsets = [0, 32], sizes = [8, 32], strides = [1, 1]} : vector<8x96xf32> to vector<8x32xf32>
    %756 = vector.extract_strided_slice %724 {offsets = [0, 32], sizes = [8, 32], strides = [1, 1]} : vector<8x96xf32> to vector<8x32xf32>
    %757 = arith.addf %755, %756 : vector<8x32xf32>
    %758 = arith.negf %757 : vector<8x32xf32>
    %759 = math.exp %758 : vector<8x32xf32>
    %cst_277 = arith.constant 1.000000e+00 : f32
    %760 = vector.broadcast %cst_277 : f32 to vector<8x32xf32>
    %761 = arith.addf %760, %759 : vector<8x32xf32>
    %762 = arith.divf %760, %761 : vector<8x32xf32>
    %763 = vector.extract_strided_slice %718 {offsets = [0, 64], sizes = [8, 32], strides = [1, 1]} : vector<8x96xf32> to vector<8x32xf32>
    %764 = vector.extract_strided_slice %724 {offsets = [0, 64], sizes = [8, 32], strides = [1, 1]} : vector<8x96xf32> to vector<8x32xf32>
    %765 = arith.addf %764, %540 : vector<8x32xf32>
    %766 = arith.mulf %754, %765 : vector<8x32xf32>
    %767 = arith.addf %763, %766 : vector<8x32xf32>
    %768 = math.tanh %767 : vector<8x32xf32>
    %769 = arith.subf %713, %746 : vector<8x32xf32>
    %770 = arith.mulf %740, %769 : vector<8x32xf32>
    %771 = arith.addf %746, %770 : vector<8x32xf32>
    %772 = arith.subf %716, %768 : vector<8x32xf32>
    %773 = arith.mulf %762, %772 : vector<8x32xf32>
    %774 = arith.addf %768, %773 : vector<8x32xf32>
    %c32_278 = arith.constant 32 : index
    %c0_279 = arith.constant 0 : index
    %775 = vector.load %arg9[%c32_278, %c0_279] : memref<64x96xf32, #tpu.memory_space<vmem>>, vector<8x96xf32>
    %c24_280 = arith.constant 24 : index
    %c0_281 = arith.constant 0 : index
    %776 = vector.load %arg10[%c24_280, %c0_281] : memref<64x96xf32, #tpu.memory_space<vmem>>, vector<8x96xf32>
    %c2_282 = arith.constant 2 : index
    %c0_283 = arith.constant 0 : index
    %c0_284 = arith.constant 0 : index
    %777 = vector.load %arg3[%c2_282, %c0_283, %c0_284] : memref<4x32x96xf32, #tpu.memory_space<vmem>>, vector<1x32x96xf32>
    %778 = vector.shape_cast %777 : vector<1x32x96xf32> to vector<32x96xf32>
    %cst_285 = arith.constant dense<0.000000e+00> : vector<8x96xf32>
    %779 = tpu.matmul %771, %778, %cst_285 {dimension_numbers = #tpu.dot_dimension_numbers<[1], [0], [0], [1], [0, 0, 1, 1], [], []>} : vector<8x32xf32>, vector<32x96xf32>, vector<8x96xf32> -> vector<8x96xf32>
    %c3_286 = arith.constant 3 : index
    %c0_287 = arith.constant 0 : index
    %c0_288 = arith.constant 0 : index
    %780 = vector.load %arg3[%c3_286, %c0_287, %c0_288] : memref<4x32x96xf32, #tpu.memory_space<vmem>>, vector<1x32x96xf32>
    %781 = vector.shape_cast %780 : vector<1x32x96xf32> to vector<32x96xf32>
    %cst_289 = arith.constant dense<0.000000e+00> : vector<8x96xf32>
    %782 = tpu.matmul %774, %781, %cst_289 {dimension_numbers = #tpu.dot_dimension_numbers<[1], [0], [0], [1], [0, 0, 1, 1], [], []>} : vector<8x32xf32>, vector<32x96xf32>, vector<8x96xf32> -> vector<8x96xf32>
    %783 = vector.extract_strided_slice %775 {offsets = [0, 0], sizes = [8, 32], strides = [1, 1]} : vector<8x96xf32> to vector<8x32xf32>
    %784 = vector.extract_strided_slice %779 {offsets = [0, 0], sizes = [8, 32], strides = [1, 1]} : vector<8x96xf32> to vector<8x32xf32>
    %785 = arith.addf %783, %784 : vector<8x32xf32>
    %786 = arith.negf %785 : vector<8x32xf32>
    %787 = math.exp %786 : vector<8x32xf32>
    %cst_290 = arith.constant 1.000000e+00 : f32
    %788 = vector.broadcast %cst_290 : f32 to vector<8x32xf32>
    %789 = arith.addf %788, %787 : vector<8x32xf32>
    %790 = arith.divf %788, %789 : vector<8x32xf32>
    %791 = vector.extract_strided_slice %775 {offsets = [0, 32], sizes = [8, 32], strides = [1, 1]} : vector<8x96xf32> to vector<8x32xf32>
    %792 = vector.extract_strided_slice %779 {offsets = [0, 32], sizes = [8, 32], strides = [1, 1]} : vector<8x96xf32> to vector<8x32xf32>
    %793 = arith.addf %791, %792 : vector<8x32xf32>
    %794 = arith.negf %793 : vector<8x32xf32>
    %795 = math.exp %794 : vector<8x32xf32>
    %cst_291 = arith.constant 1.000000e+00 : f32
    %796 = vector.broadcast %cst_291 : f32 to vector<8x32xf32>
    %797 = arith.addf %796, %795 : vector<8x32xf32>
    %798 = arith.divf %796, %797 : vector<8x32xf32>
    %799 = vector.extract_strided_slice %775 {offsets = [0, 64], sizes = [8, 32], strides = [1, 1]} : vector<8x96xf32> to vector<8x32xf32>
    %800 = vector.extract_strided_slice %779 {offsets = [0, 64], sizes = [8, 32], strides = [1, 1]} : vector<8x96xf32> to vector<8x32xf32>
    %801 = arith.addf %800, %536 : vector<8x32xf32>
    %802 = arith.mulf %790, %801 : vector<8x32xf32>
    %803 = arith.addf %799, %802 : vector<8x32xf32>
    %804 = math.tanh %803 : vector<8x32xf32>
    %805 = vector.extract_strided_slice %776 {offsets = [0, 0], sizes = [8, 32], strides = [1, 1]} : vector<8x96xf32> to vector<8x32xf32>
    %806 = vector.extract_strided_slice %782 {offsets = [0, 0], sizes = [8, 32], strides = [1, 1]} : vector<8x96xf32> to vector<8x32xf32>
    %807 = arith.addf %805, %806 : vector<8x32xf32>
    %808 = arith.negf %807 : vector<8x32xf32>
    %809 = math.exp %808 : vector<8x32xf32>
    %cst_292 = arith.constant 1.000000e+00 : f32
    %810 = vector.broadcast %cst_292 : f32 to vector<8x32xf32>
    %811 = arith.addf %810, %809 : vector<8x32xf32>
    %812 = arith.divf %810, %811 : vector<8x32xf32>
    %813 = vector.extract_strided_slice %776 {offsets = [0, 32], sizes = [8, 32], strides = [1, 1]} : vector<8x96xf32> to vector<8x32xf32>
    %814 = vector.extract_strided_slice %782 {offsets = [0, 32], sizes = [8, 32], strides = [1, 1]} : vector<8x96xf32> to vector<8x32xf32>
    %815 = arith.addf %813, %814 : vector<8x32xf32>
    %816 = arith.negf %815 : vector<8x32xf32>
    %817 = math.exp %816 : vector<8x32xf32>
    %cst_293 = arith.constant 1.000000e+00 : f32
    %818 = vector.broadcast %cst_293 : f32 to vector<8x32xf32>
    %819 = arith.addf %818, %817 : vector<8x32xf32>
    %820 = arith.divf %818, %819 : vector<8x32xf32>
    %821 = vector.extract_strided_slice %776 {offsets = [0, 64], sizes = [8, 32], strides = [1, 1]} : vector<8x96xf32> to vector<8x32xf32>
    %822 = vector.extract_strided_slice %782 {offsets = [0, 64], sizes = [8, 32], strides = [1, 1]} : vector<8x96xf32> to vector<8x32xf32>
    %823 = arith.addf %822, %540 : vector<8x32xf32>
    %824 = arith.mulf %812, %823 : vector<8x32xf32>
    %825 = arith.addf %821, %824 : vector<8x32xf32>
    %826 = math.tanh %825 : vector<8x32xf32>
    %827 = arith.subf %771, %804 : vector<8x32xf32>
    %828 = arith.mulf %798, %827 : vector<8x32xf32>
    %829 = arith.addf %804, %828 : vector<8x32xf32>
    %830 = arith.subf %774, %826 : vector<8x32xf32>
    %831 = arith.mulf %820, %830 : vector<8x32xf32>
    %832 = arith.addf %826, %831 : vector<8x32xf32>
    %c40_294 = arith.constant 40 : index
    %c0_295 = arith.constant 0 : index
    %833 = vector.load %arg9[%c40_294, %c0_295] : memref<64x96xf32, #tpu.memory_space<vmem>>, vector<8x96xf32>
    %c16_296 = arith.constant 16 : index
    %c0_297 = arith.constant 0 : index
    %834 = vector.load %arg10[%c16_296, %c0_297] : memref<64x96xf32, #tpu.memory_space<vmem>>, vector<8x96xf32>
    %c2_298 = arith.constant 2 : index
    %c0_299 = arith.constant 0 : index
    %c0_300 = arith.constant 0 : index
    %835 = vector.load %arg3[%c2_298, %c0_299, %c0_300] : memref<4x32x96xf32, #tpu.memory_space<vmem>>, vector<1x32x96xf32>
    %836 = vector.shape_cast %835 : vector<1x32x96xf32> to vector<32x96xf32>
    %cst_301 = arith.constant dense<0.000000e+00> : vector<8x96xf32>
    %837 = tpu.matmul %829, %836, %cst_301 {dimension_numbers = #tpu.dot_dimension_numbers<[1], [0], [0], [1], [0, 0, 1, 1], [], []>} : vector<8x32xf32>, vector<32x96xf32>, vector<8x96xf32> -> vector<8x96xf32>
    %c3_302 = arith.constant 3 : index
    %c0_303 = arith.constant 0 : index
    %c0_304 = arith.constant 0 : index
    %838 = vector.load %arg3[%c3_302, %c0_303, %c0_304] : memref<4x32x96xf32, #tpu.memory_space<vmem>>, vector<1x32x96xf32>
    %839 = vector.shape_cast %838 : vector<1x32x96xf32> to vector<32x96xf32>
    %cst_305 = arith.constant dense<0.000000e+00> : vector<8x96xf32>
    %840 = tpu.matmul %832, %839, %cst_305 {dimension_numbers = #tpu.dot_dimension_numbers<[1], [0], [0], [1], [0, 0, 1, 1], [], []>} : vector<8x32xf32>, vector<32x96xf32>, vector<8x96xf32> -> vector<8x96xf32>
    %841 = vector.extract_strided_slice %833 {offsets = [0, 0], sizes = [8, 32], strides = [1, 1]} : vector<8x96xf32> to vector<8x32xf32>
    %842 = vector.extract_strided_slice %837 {offsets = [0, 0], sizes = [8, 32], strides = [1, 1]} : vector<8x96xf32> to vector<8x32xf32>
    %843 = arith.addf %841, %842 : vector<8x32xf32>
    %844 = arith.negf %843 : vector<8x32xf32>
    %845 = math.exp %844 : vector<8x32xf32>
    %cst_306 = arith.constant 1.000000e+00 : f32
    %846 = vector.broadcast %cst_306 : f32 to vector<8x32xf32>
    %847 = arith.addf %846, %845 : vector<8x32xf32>
    %848 = arith.divf %846, %847 : vector<8x32xf32>
    %849 = vector.extract_strided_slice %833 {offsets = [0, 32], sizes = [8, 32], strides = [1, 1]} : vector<8x96xf32> to vector<8x32xf32>
    %850 = vector.extract_strided_slice %837 {offsets = [0, 32], sizes = [8, 32], strides = [1, 1]} : vector<8x96xf32> to vector<8x32xf32>
    %851 = arith.addf %849, %850 : vector<8x32xf32>
    %852 = arith.negf %851 : vector<8x32xf32>
    %853 = math.exp %852 : vector<8x32xf32>
    %cst_307 = arith.constant 1.000000e+00 : f32
    %854 = vector.broadcast %cst_307 : f32 to vector<8x32xf32>
    %855 = arith.addf %854, %853 : vector<8x32xf32>
    %856 = arith.divf %854, %855 : vector<8x32xf32>
    %857 = vector.extract_strided_slice %833 {offsets = [0, 64], sizes = [8, 32], strides = [1, 1]} : vector<8x96xf32> to vector<8x32xf32>
    %858 = vector.extract_strided_slice %837 {offsets = [0, 64], sizes = [8, 32], strides = [1, 1]} : vector<8x96xf32> to vector<8x32xf32>
    %859 = arith.addf %858, %536 : vector<8x32xf32>
    %860 = arith.mulf %848, %859 : vector<8x32xf32>
    %861 = arith.addf %857, %860 : vector<8x32xf32>
    %862 = math.tanh %861 : vector<8x32xf32>
    %863 = vector.extract_strided_slice %834 {offsets = [0, 0], sizes = [8, 32], strides = [1, 1]} : vector<8x96xf32> to vector<8x32xf32>
    %864 = vector.extract_strided_slice %840 {offsets = [0, 0], sizes = [8, 32], strides = [1, 1]} : vector<8x96xf32> to vector<8x32xf32>
    %865 = arith.addf %863, %864 : vector<8x32xf32>
    %866 = arith.negf %865 : vector<8x32xf32>
    %867 = math.exp %866 : vector<8x32xf32>
    %cst_308 = arith.constant 1.000000e+00 : f32
    %868 = vector.broadcast %cst_308 : f32 to vector<8x32xf32>
    %869 = arith.addf %868, %867 : vector<8x32xf32>
    %870 = arith.divf %868, %869 : vector<8x32xf32>
    %871 = vector.extract_strided_slice %834 {offsets = [0, 32], sizes = [8, 32], strides = [1, 1]} : vector<8x96xf32> to vector<8x32xf32>
    %872 = vector.extract_strided_slice %840 {offsets = [0, 32], sizes = [8, 32], strides = [1, 1]} : vector<8x96xf32> to vector<8x32xf32>
    %873 = arith.addf %871, %872 : vector<8x32xf32>
    %874 = arith.negf %873 : vector<8x32xf32>
    %875 = math.exp %874 : vector<8x32xf32>
    %cst_309 = arith.constant 1.000000e+00 : f32
    %876 = vector.broadcast %cst_309 : f32 to vector<8x32xf32>
    %877 = arith.addf %876, %875 : vector<8x32xf32>
    %878 = arith.divf %876, %877 : vector<8x32xf32>
    %879 = vector.extract_strided_slice %834 {offsets = [0, 64], sizes = [8, 32], strides = [1, 1]} : vector<8x96xf32> to vector<8x32xf32>
    %880 = vector.extract_strided_slice %840 {offsets = [0, 64], sizes = [8, 32], strides = [1, 1]} : vector<8x96xf32> to vector<8x32xf32>
    %881 = arith.addf %880, %540 : vector<8x32xf32>
    %882 = arith.mulf %870, %881 : vector<8x32xf32>
    %883 = arith.addf %879, %882 : vector<8x32xf32>
    %884 = math.tanh %883 : vector<8x32xf32>
    %885 = arith.subf %829, %862 : vector<8x32xf32>
    %886 = arith.mulf %856, %885 : vector<8x32xf32>
    %887 = arith.addf %862, %886 : vector<8x32xf32>
    %888 = arith.subf %832, %884 : vector<8x32xf32>
    %889 = arith.mulf %878, %888 : vector<8x32xf32>
    %890 = arith.addf %884, %889 : vector<8x32xf32>
    %c48_310 = arith.constant 48 : index
    %c0_311 = arith.constant 0 : index
    %891 = vector.load %arg9[%c48_310, %c0_311] : memref<64x96xf32, #tpu.memory_space<vmem>>, vector<8x96xf32>
    %c8_312 = arith.constant 8 : index
    %c0_313 = arith.constant 0 : index
    %892 = vector.load %arg10[%c8_312, %c0_313] : memref<64x96xf32, #tpu.memory_space<vmem>>, vector<8x96xf32>
    %c2_314 = arith.constant 2 : index
    %c0_315 = arith.constant 0 : index
    %c0_316 = arith.constant 0 : index
    %893 = vector.load %arg3[%c2_314, %c0_315, %c0_316] : memref<4x32x96xf32, #tpu.memory_space<vmem>>, vector<1x32x96xf32>
    %894 = vector.shape_cast %893 : vector<1x32x96xf32> to vector<32x96xf32>
    %cst_317 = arith.constant dense<0.000000e+00> : vector<8x96xf32>
    %895 = tpu.matmul %887, %894, %cst_317 {dimension_numbers = #tpu.dot_dimension_numbers<[1], [0], [0], [1], [0, 0, 1, 1], [], []>} : vector<8x32xf32>, vector<32x96xf32>, vector<8x96xf32> -> vector<8x96xf32>
    %c3_318 = arith.constant 3 : index
    %c0_319 = arith.constant 0 : index
    %c0_320 = arith.constant 0 : index
    %896 = vector.load %arg3[%c3_318, %c0_319, %c0_320] : memref<4x32x96xf32, #tpu.memory_space<vmem>>, vector<1x32x96xf32>
    %897 = vector.shape_cast %896 : vector<1x32x96xf32> to vector<32x96xf32>
    %cst_321 = arith.constant dense<0.000000e+00> : vector<8x96xf32>
    %898 = tpu.matmul %890, %897, %cst_321 {dimension_numbers = #tpu.dot_dimension_numbers<[1], [0], [0], [1], [0, 0, 1, 1], [], []>} : vector<8x32xf32>, vector<32x96xf32>, vector<8x96xf32> -> vector<8x96xf32>
    %899 = vector.extract_strided_slice %891 {offsets = [0, 0], sizes = [8, 32], strides = [1, 1]} : vector<8x96xf32> to vector<8x32xf32>
    %900 = vector.extract_strided_slice %895 {offsets = [0, 0], sizes = [8, 32], strides = [1, 1]} : vector<8x96xf32> to vector<8x32xf32>
    %901 = arith.addf %899, %900 : vector<8x32xf32>
    %902 = arith.negf %901 : vector<8x32xf32>
    %903 = math.exp %902 : vector<8x32xf32>
    %cst_322 = arith.constant 1.000000e+00 : f32
    %904 = vector.broadcast %cst_322 : f32 to vector<8x32xf32>
    %905 = arith.addf %904, %903 : vector<8x32xf32>
    %906 = arith.divf %904, %905 : vector<8x32xf32>
    %907 = vector.extract_strided_slice %891 {offsets = [0, 32], sizes = [8, 32], strides = [1, 1]} : vector<8x96xf32> to vector<8x32xf32>
    %908 = vector.extract_strided_slice %895 {offsets = [0, 32], sizes = [8, 32], strides = [1, 1]} : vector<8x96xf32> to vector<8x32xf32>
    %909 = arith.addf %907, %908 : vector<8x32xf32>
    %910 = arith.negf %909 : vector<8x32xf32>
    %911 = math.exp %910 : vector<8x32xf32>
    %cst_323 = arith.constant 1.000000e+00 : f32
    %912 = vector.broadcast %cst_323 : f32 to vector<8x32xf32>
    %913 = arith.addf %912, %911 : vector<8x32xf32>
    %914 = arith.divf %912, %913 : vector<8x32xf32>
    %915 = vector.extract_strided_slice %891 {offsets = [0, 64], sizes = [8, 32], strides = [1, 1]} : vector<8x96xf32> to vector<8x32xf32>
    %916 = vector.extract_strided_slice %895 {offsets = [0, 64], sizes = [8, 32], strides = [1, 1]} : vector<8x96xf32> to vector<8x32xf32>
    %917 = arith.addf %916, %536 : vector<8x32xf32>
    %918 = arith.mulf %906, %917 : vector<8x32xf32>
    %919 = arith.addf %915, %918 : vector<8x32xf32>
    %920 = math.tanh %919 : vector<8x32xf32>
    %921 = vector.extract_strided_slice %892 {offsets = [0, 0], sizes = [8, 32], strides = [1, 1]} : vector<8x96xf32> to vector<8x32xf32>
    %922 = vector.extract_strided_slice %898 {offsets = [0, 0], sizes = [8, 32], strides = [1, 1]} : vector<8x96xf32> to vector<8x32xf32>
    %923 = arith.addf %921, %922 : vector<8x32xf32>
    %924 = arith.negf %923 : vector<8x32xf32>
    %925 = math.exp %924 : vector<8x32xf32>
    %cst_324 = arith.constant 1.000000e+00 : f32
    %926 = vector.broadcast %cst_324 : f32 to vector<8x32xf32>
    %927 = arith.addf %926, %925 : vector<8x32xf32>
    %928 = arith.divf %926, %927 : vector<8x32xf32>
    %929 = vector.extract_strided_slice %892 {offsets = [0, 32], sizes = [8, 32], strides = [1, 1]} : vector<8x96xf32> to vector<8x32xf32>
    %930 = vector.extract_strided_slice %898 {offsets = [0, 32], sizes = [8, 32], strides = [1, 1]} : vector<8x96xf32> to vector<8x32xf32>
    %931 = arith.addf %929, %930 : vector<8x32xf32>
    %932 = arith.negf %931 : vector<8x32xf32>
    %933 = math.exp %932 : vector<8x32xf32>
    %cst_325 = arith.constant 1.000000e+00 : f32
    %934 = vector.broadcast %cst_325 : f32 to vector<8x32xf32>
    %935 = arith.addf %934, %933 : vector<8x32xf32>
    %936 = arith.divf %934, %935 : vector<8x32xf32>
    %937 = vector.extract_strided_slice %892 {offsets = [0, 64], sizes = [8, 32], strides = [1, 1]} : vector<8x96xf32> to vector<8x32xf32>
    %938 = vector.extract_strided_slice %898 {offsets = [0, 64], sizes = [8, 32], strides = [1, 1]} : vector<8x96xf32> to vector<8x32xf32>
    %939 = arith.addf %938, %540 : vector<8x32xf32>
    %940 = arith.mulf %928, %939 : vector<8x32xf32>
    %941 = arith.addf %937, %940 : vector<8x32xf32>
    %942 = math.tanh %941 : vector<8x32xf32>
    %943 = arith.subf %887, %920 : vector<8x32xf32>
    %944 = arith.mulf %914, %943 : vector<8x32xf32>
    %945 = arith.addf %920, %944 : vector<8x32xf32>
    %946 = arith.subf %890, %942 : vector<8x32xf32>
    %947 = arith.mulf %936, %946 : vector<8x32xf32>
    %948 = arith.addf %942, %947 : vector<8x32xf32>
    %c56_326 = arith.constant 56 : index
    %c0_327 = arith.constant 0 : index
    %949 = vector.load %arg9[%c56_326, %c0_327] : memref<64x96xf32, #tpu.memory_space<vmem>>, vector<8x96xf32>
    %c0_328 = arith.constant 0 : index
    %c0_329 = arith.constant 0 : index
    %950 = vector.load %arg10[%c0_328, %c0_329] : memref<64x96xf32, #tpu.memory_space<vmem>>, vector<8x96xf32>
    %c2_330 = arith.constant 2 : index
    %c0_331 = arith.constant 0 : index
    %c0_332 = arith.constant 0 : index
    %951 = vector.load %arg3[%c2_330, %c0_331, %c0_332] : memref<4x32x96xf32, #tpu.memory_space<vmem>>, vector<1x32x96xf32>
    %952 = vector.shape_cast %951 : vector<1x32x96xf32> to vector<32x96xf32>
    %cst_333 = arith.constant dense<0.000000e+00> : vector<8x96xf32>
    %953 = tpu.matmul %945, %952, %cst_333 {dimension_numbers = #tpu.dot_dimension_numbers<[1], [0], [0], [1], [0, 0, 1, 1], [], []>} : vector<8x32xf32>, vector<32x96xf32>, vector<8x96xf32> -> vector<8x96xf32>
    %c3_334 = arith.constant 3 : index
    %c0_335 = arith.constant 0 : index
    %c0_336 = arith.constant 0 : index
    %954 = vector.load %arg3[%c3_334, %c0_335, %c0_336] : memref<4x32x96xf32, #tpu.memory_space<vmem>>, vector<1x32x96xf32>
    %955 = vector.shape_cast %954 : vector<1x32x96xf32> to vector<32x96xf32>
    %cst_337 = arith.constant dense<0.000000e+00> : vector<8x96xf32>
    %956 = tpu.matmul %948, %955, %cst_337 {dimension_numbers = #tpu.dot_dimension_numbers<[1], [0], [0], [1], [0, 0, 1, 1], [], []>} : vector<8x32xf32>, vector<32x96xf32>, vector<8x96xf32> -> vector<8x96xf32>
    %957 = vector.extract_strided_slice %949 {offsets = [0, 0], sizes = [8, 32], strides = [1, 1]} : vector<8x96xf32> to vector<8x32xf32>
    %958 = vector.extract_strided_slice %953 {offsets = [0, 0], sizes = [8, 32], strides = [1, 1]} : vector<8x96xf32> to vector<8x32xf32>
    %959 = arith.addf %957, %958 : vector<8x32xf32>
    %960 = arith.negf %959 : vector<8x32xf32>
    %961 = math.exp %960 : vector<8x32xf32>
    %cst_338 = arith.constant 1.000000e+00 : f32
    %962 = vector.broadcast %cst_338 : f32 to vector<8x32xf32>
    %963 = arith.addf %962, %961 : vector<8x32xf32>
    %964 = arith.divf %962, %963 : vector<8x32xf32>
    %965 = vector.extract_strided_slice %949 {offsets = [0, 32], sizes = [8, 32], strides = [1, 1]} : vector<8x96xf32> to vector<8x32xf32>
    %966 = vector.extract_strided_slice %953 {offsets = [0, 32], sizes = [8, 32], strides = [1, 1]} : vector<8x96xf32> to vector<8x32xf32>
    %967 = arith.addf %965, %966 : vector<8x32xf32>
    %968 = arith.negf %967 : vector<8x32xf32>
    %969 = math.exp %968 : vector<8x32xf32>
    %cst_339 = arith.constant 1.000000e+00 : f32
    %970 = vector.broadcast %cst_339 : f32 to vector<8x32xf32>
    %971 = arith.addf %970, %969 : vector<8x32xf32>
    %972 = arith.divf %970, %971 : vector<8x32xf32>
    %973 = vector.extract_strided_slice %949 {offsets = [0, 64], sizes = [8, 32], strides = [1, 1]} : vector<8x96xf32> to vector<8x32xf32>
    %974 = vector.extract_strided_slice %953 {offsets = [0, 64], sizes = [8, 32], strides = [1, 1]} : vector<8x96xf32> to vector<8x32xf32>
    %975 = arith.addf %974, %536 : vector<8x32xf32>
    %976 = arith.mulf %964, %975 : vector<8x32xf32>
    %977 = arith.addf %973, %976 : vector<8x32xf32>
    %978 = math.tanh %977 : vector<8x32xf32>
    %979 = vector.extract_strided_slice %950 {offsets = [0, 0], sizes = [8, 32], strides = [1, 1]} : vector<8x96xf32> to vector<8x32xf32>
    %980 = vector.extract_strided_slice %956 {offsets = [0, 0], sizes = [8, 32], strides = [1, 1]} : vector<8x96xf32> to vector<8x32xf32>
    %981 = arith.addf %979, %980 : vector<8x32xf32>
    %982 = arith.negf %981 : vector<8x32xf32>
    %983 = math.exp %982 : vector<8x32xf32>
    %cst_340 = arith.constant 1.000000e+00 : f32
    %984 = vector.broadcast %cst_340 : f32 to vector<8x32xf32>
    %985 = arith.addf %984, %983 : vector<8x32xf32>
    %986 = arith.divf %984, %985 : vector<8x32xf32>
    %987 = vector.extract_strided_slice %950 {offsets = [0, 32], sizes = [8, 32], strides = [1, 1]} : vector<8x96xf32> to vector<8x32xf32>
    %988 = vector.extract_strided_slice %956 {offsets = [0, 32], sizes = [8, 32], strides = [1, 1]} : vector<8x96xf32> to vector<8x32xf32>
    %989 = arith.addf %987, %988 : vector<8x32xf32>
    %990 = arith.negf %989 : vector<8x32xf32>
    %991 = math.exp %990 : vector<8x32xf32>
    %cst_341 = arith.constant 1.000000e+00 : f32
    %992 = vector.broadcast %cst_341 : f32 to vector<8x32xf32>
    %993 = arith.addf %992, %991 : vector<8x32xf32>
    %994 = arith.divf %992, %993 : vector<8x32xf32>
    %995 = vector.extract_strided_slice %950 {offsets = [0, 64], sizes = [8, 32], strides = [1, 1]} : vector<8x96xf32> to vector<8x32xf32>
    %996 = vector.extract_strided_slice %956 {offsets = [0, 64], sizes = [8, 32], strides = [1, 1]} : vector<8x96xf32> to vector<8x32xf32>
    %997 = arith.addf %996, %540 : vector<8x32xf32>
    %998 = arith.mulf %986, %997 : vector<8x32xf32>
    %999 = arith.addf %995, %998 : vector<8x32xf32>
    %1000 = math.tanh %999 : vector<8x32xf32>
    %1001 = arith.subf %945, %978 : vector<8x32xf32>
    %1002 = arith.mulf %972, %1001 : vector<8x32xf32>
    %1003 = arith.addf %978, %1002 : vector<8x32xf32>
    %1004 = arith.subf %948, %1000 : vector<8x32xf32>
    %1005 = arith.mulf %994, %1004 : vector<8x32xf32>
    %1006 = arith.addf %1000, %1005 : vector<8x32xf32>
    %c0_342 = arith.constant 0 : index
    %c0_343 = arith.constant 0 : index
    %c0_344 = arith.constant 0 : index
    %1007 = vector.load %arg6[%c0_342, %c0_343, %c0_344] : memref<2x32x8xf32, #tpu.memory_space<vmem>>, vector<1x32x8xf32>
    %1008 = vector.shape_cast %1007 : vector<1x32x8xf32> to vector<32x8xf32>
    %cst_345 = arith.constant dense<0.000000e+00> : vector<8x8xf32>
    %1009 = tpu.matmul %1003, %1008, %cst_345 {dimension_numbers = #tpu.dot_dimension_numbers<[1], [0], [0], [1], [0, 0, 1, 1], [], []>} : vector<8x32xf32>, vector<32x8xf32>, vector<8x8xf32> -> vector<8x8xf32>
    %c1_346 = arith.constant 1 : index
    %c0_347 = arith.constant 0 : index
    %c0_348 = arith.constant 0 : index
    %1010 = vector.load %arg6[%c1_346, %c0_347, %c0_348] : memref<2x32x8xf32, #tpu.memory_space<vmem>>, vector<1x32x8xf32>
    %1011 = vector.shape_cast %1010 : vector<1x32x8xf32> to vector<32x8xf32>
    %cst_349 = arith.constant dense<0.000000e+00> : vector<8x8xf32>
    %1012 = tpu.matmul %1006, %1011, %cst_349 {dimension_numbers = #tpu.dot_dimension_numbers<[1], [0], [0], [1], [0, 0, 1, 1], [], []>} : vector<8x32xf32>, vector<32x8xf32>, vector<8x8xf32> -> vector<8x8xf32>
    %1013 = arith.addf %1009, %1012 : vector<8x8xf32>
    %c0_350 = arith.constant 0 : index
    %c0_351 = arith.constant 0 : index
    %1014 = vector.load %arg7[%c0_350, %c0_351] : memref<1x8xf32, #tpu.memory_space<vmem>>, vector<1x8xf32>
    %1015 = vector.broadcast %1014 : vector<1x8xf32> to vector<8x8xf32>
    %1016 = arith.addf %1013, %1015 : vector<8x8xf32>
    %c0_352 = arith.constant 0 : index
    %c0_353 = arith.constant 0 : index
    %1017 = vector.load %arg8[%c0_352, %c0_353] : memref<8x8xf32, #tpu.memory_space<vmem>>, vector<8x8xf32>
    tpu.vector_store %arg8[%c0_352, %c0_353], %1016 {strides = array<i32>} : memref<8x8xf32, #tpu.memory_space<vmem>>, vector<8x8xf32>,
    return
  }
}

</mosaic_0001>

<bundles_post_ra>
// kernel: gru_model_forward.1
= control target key start
LH: loop header
LB: loop body
LE: loop exit
PB: predicated region body
PF: predicated region fallthrough
CT: control target
= control target key end

     0   :  { %vm45_vm0 = vcmask 261120   ;;  %v3252_v15 = vmov 0.0   ;;  %s3253_s13 = smov 64   ;;  %vm111_vm1 = vcmask 785408   ;;  %s3254_s17 = smov 96   ;;  %s4164_s1 = inlined_call_operand.vmem [shape: f32[2,32,96], index: 1, kind: input, shape index: {}]   ;;  %s4165_s3 = inlined_call_operand.vmem [shape: f32[4,32,96], index: 3, kind: input, shape index: {}]   ;;  %s4166_s0 = inlined_call_operand.vmem [shape: f32[64,32], index: 0, kind: input, shape index: {}]   ;;  %s4167_s5 = inlined_call_operand.vmem [shape: f32[4,1,32], index: 5, kind: input, shape index: {}]   ;;  %s4168_s4 = inlined_call_operand.vmem [shape: f32[4,1,96], index: 4, kind: input, shape index: {}]   ;;  %s4169_s2 = inlined_call_operand.vmem [shape: f32[4,32,96], index: 2, kind: input, shape index: {}]   ;;  %s4170_s6 = inlined_call_operand.vmem [shape: f32[2,32,8], index: 6, kind: input, shape index: {}]   ;;  %s4171_s7 = inlined_call_operand.vmem [shape: f32[1,8], index: 7, kind: input, shape index: {}]   ;;  %s4172_s8 = inlined_call_operand.vmem [shape: f32[8,8], index: 8, kind: output, shape index: {}]  }
   0x1   :  { %v2880_v0 = vld [vmem:[%s4164_s1 + $0x38] sm:$0xff]  ;;  %v2879_v3 = vld [vmem:[%s4164_s1 + $0x30] sm:$0xff]  ;;  %v2878_v6 = vld [vmem:[%s4164_s1 + $0x28] sm:$0xff]  ;;  %s3255_s18 = smov 32  }
   0x2   :  { %v3307_v1 = vld [vmem:[%s4165_s3 + $0x18] sm:$0xff]  ;;  %142 = vmatpush.msra.mxu1 %v2880_v0  ;;  %v3321_v4 = vld [vmem:[%s4165_s3 + $0x10] sm:$0xff]  ;;  %v3335_v7 = vld [vmem:[%s4165_s3 + $0x8] sm:$0xff] }
   0x3   :  { %v3312_v2 = vld [vmem:[%s4165_s3 + $0x38] sm:$0xff]  ;;  %207 = vmatpush.msra.mxu2 %v3307_v1  ;;  %v3326_v5 = vld [vmem:[%s4165_s3 + $0x30] sm:$0xff]  ;;  %v3341_v8 = vld [vmem:[%s4165_s3 + $0x28] sm:$0xff] }
   0x4   :  { %232 = vmatpush.msra.mxu3 %v3312_v2  ;;  %143 = vmatpush.msra.mxu1 %v2879_v3  ;;  %v2877_v9 = vld [vmem:[%s4164_s1 + $0x20] sm:$0xff]  ;;  %v30_v16 = vld [vmem:[%s4166_s0 + $0x8] sm:$0xff]  ;;  %v31_v17 = vld [vmem:[%s4166_s0 + $0x10] sm:$0xff] }
   0x5   :  { %208 = vmatpush.msra.mxu2 %v3321_v4  ;;  %v3350_v10 = vld [vmem:[%s4165_s3] sm:$0xff]  ;;  %v40_v18 = vld [vmem:[%s4164_s1 + $0x18] sm:$0xff]  ;;  %v39_v19 = vld [vmem:[%s4164_s1 + $0x10] sm:$0xff] }
   0x6   :  { %233 = vmatpush.msra.mxu3 %v3326_v5  ;;  %v3355_v11 = vld [vmem:[%s4165_s3 + $0x20] sm:$0xff]  ;;  %144 = vmatpush.msra.mxu1 %v2878_v6  ;;  %v38_v20 = vld [vmem:[%s4164_s1 + $0x8] sm:$0xff]  ;;  %v32_v21 = vld [vmem:[%s4166_s0 + $0x18] sm:$0xff] }
   0x7   :  { %209 = vmatpush.msra.mxu2 %v3335_v7  ;;  %v29_v12 = vld [vmem:[%s4166_s0] sm:$0xff]  ;;  %82 = vmatpush.msra.mxu0 %v40_v18  ;;  %v34_v24 = vld [vmem:[%s4166_s0 + $0x28] sm:$0xff]  ;;  %v35_v25 = vld [vmem:[%s4166_s0 + $0x30] sm:$0xff] }
   0x8   :  { %234 = vmatpush.msra.mxu3 %v3341_v8  ;;  %v3049_v13 = vld [vmem:[%s4167_s5 + $0x1] ss:$0 sm:$0xff]  ;;  %v3050_v14 = vld [vmem:[%s4167_s5] ss:$0 sm:$0xff]  ;;  %145 = vmatpush.msra.mxu1 %v2877_v9  ;;  %v36_v26 = vld [vmem:[%s4166_s0 + $0x38] sm:$0xff] }
   0x9   :  { %210 = vmatpush.msra.mxu2 %v3350_v10  ;;  %2882 = vmatmul.msk.f32.vlgmr.msra.gmra.mxu1 %vm45_vm0, %v29_v12  ;;  %v37_v22 = vld [vmem:[%s4164_s1] sm:$0xff] }
   0xa   :  { %235 = vmatpush.msra.mxu3 %v3355_v11  ;;  %211 = vmatmul.f32.vlgmr.msra.gmra.mxu2 %v3252_v15  ;;  %v33_v23 = vld [vmem:[%s4166_s0 + $0x20] sm:$0xff] }
   0xb   :  { %236 = vmatmul.f32.vlgmr.msra.gmra.mxu3 %v3252_v15  ;;  %295 = vrot.lane.b32.xlu0 %v3049_v13, %s3253_s13  ;;  %v3051_v27 = vld [vmem:[%s4168_s4 + $0x1] ss:$0 sm:$0xff]  ;;  %v3457_v42 = vld [vmem:[%s4168_s4] ss:$0 sm:$0xff] }
   0xc   :  { %260 = vrot.lane.b32.xlu1 %v3050_v14, %s3253_s13  ;;  %362 = vmatpush.msrb.mxu2 %v3307_v1 }
   0xd   :  { %388 = vmatpush.msrb.mxu3 %v3312_v2  ;;  %83 = vmatpush.msra.mxu0 %v39_v19 }
   0xe   :  { %363 = vmatpush.msrb.mxu2 %v3321_v4 }
   0xf   :  { %389 = vmatpush.msrb.mxu3 %v3326_v5  ;;  %84 = vmatpush.msra.mxu0 %v38_v20 }
  0x10   :  { %364 = vmatpush.msrb.mxu2 %v3335_v7 }
  0x11   :  { %390 = vmatpush.msrb.mxu3 %v3341_v8  ;;  %2883 = vmatmul.msk.f32.gmra.mxu1 %vm45_vm0, %v30_v16 }
  0x12   :  { %365 = vmatpush.msrb.mxu2 %v3350_v10  ;;  %85 = vmatpush.msra.mxu0 %v37_v22 }
  0x13   :  { %391 = vmatpush.msrb.mxu3 %v3355_v11  ;;  %2869 = vmatmul.msk.f32.vlgmr.msra.gmra.mxu0 %vm45_vm0, %v29_v12 }
  0x14   :  { %512 = vmatpush.msra.mxu2 %v3307_v1 }
  0x15   :  { %538 = vmatpush.msra.mxu3 %v3312_v2 }
  0x16   :  { %513 = vmatpush.msra.mxu2 %v3321_v4 }
  0x17   :  { %539 = vmatpush.msra.mxu3 %v3326_v5 }
  0x18   :  { %514 = vmatpush.msra.mxu2 %v3335_v7 }
  0x19   :  { %540 = vmatpush.msra.mxu3 %v3341_v8  ;;  %2884 = vmatmul.msk.f32.gmra.mxu1 %vm45_vm0, %v31_v17 }
  0x1a   :  { %515 = vmatpush.msra.mxu2 %v3350_v10 }
  0x1b   :  { %541 = vmatpush.msra.mxu3 %v3355_v11  ;;  %2870 = vmatmul.msk.f32.gmra.mxu0 %vm45_vm0, %v30_v16 }
  0x21   :  { %2885 = vmatmul.msk.f32.gmra.mxu1 %vm45_vm0, %v32_v21 }
  0x23   :  { %2871 = vmatmul.msk.f32.gmra.mxu0 %vm45_vm0, %v31_v17 }
  0x29   :  { %2886 = vmatmul.msk.f32.gmra.mxu1 %vm45_vm0, %v33_v23 }
  0x2b   :  { %2872 = vmatmul.msk.f32.gmra.mxu0 %vm45_vm0, %v32_v21 }
  0x31   :  { %2887 = vmatmul.msk.f32.gmra.mxu1 %vm45_vm0, %v34_v24 }
  0x33   :  { %2873 = vmatmul.msk.f32.gmra.mxu0 %vm45_vm0, %v33_v23 }
  0x39   :  { %2888 = vmatmul.msk.f32.gmra.mxu1 %vm45_vm0, %v35_v25 }
  0x3b   :  { %2874 = vmatmul.msk.f32.gmra.mxu0 %vm45_vm0, %v34_v24 }
  0x41   :  { %2889 = vmatmul.msk.f32.gmra.mxu1 %vm45_vm0, %v36_v26 }
  0x43   :  { %2875 = vmatmul.msk.f32.gmra.mxu0 %vm45_vm0, %v35_v25 }
  0x4b   :  { %2876 = vmatmul.msk.f32.gmra.mxu0 %vm45_vm0, %v36_v26 }
  0x7d   :  { %v3443_v30 = vpop.permute.xlu0 %295 }
  0x7e   :  { %v3445_v31 = vpop.permute.xlu1 %260 }
  0x86   :  { %v147_v28 = vpop.f32.mrf.mxu1 }
  0x87   :  { %v148_v29 = vadd.f32 %v3051_v27, %v147_v28 }
  0x89   :  { %171 = vst.msk [vmem:[#allocation3] sm:$0xff] %vm111_vm1, %v148_v29 }
  0x8d   :  { %v212_v32 = vpop.f32.mrf.mxu2 }
  0x8e   :  { %v237_v33 = vpop.f32.mrf.mxu3  ;;  %v150_v35 = vpop.f32.mrf.mxu1  ;;  %v263_v36 = vadd.f32 %v3445_v31, %v212_v32 }
  0x8f   :  { %v298_v34 = vadd.f32 %v3443_v30, %v237_v33  ;;  %v151_v37 = vadd.f32 %v3051_v27, %v150_v35 }
  0x90   :  { %265 = vrot.lane.b32.xlu2 %v263_v36, %s3253_s13  ;;  %v87_v43 = vpop.f32.mrf.mxu0 }
  0x91   :  { %300 = vrot.lane.b32.xlu0 %v298_v34, %s3253_s13  ;;  %172 = vst.msk [vmem:[#allocation3 + $0x8] sm:$0xff] %vm111_vm1, %v151_v37  ;;  %v88_v44 = vadd.f32 %v3457_v42, %v87_v43 }
  0x93   :  { %112 = vst.msk [vmem:[#allocation2] sm:$0xff] %vm111_vm1, %v88_v44 }
  0x96   :  { %v153_v38 = vpop.f32.mrf.mxu1 }
  0x97   :  { %v154_v39 = vadd.f32 %v3051_v27, %v153_v38 }
  0x99   :  { %173 = vst.msk [vmem:[#allocation3 + $0x10] sm:$0xff] %vm111_vm1, %v154_v39 }
  0x9a   :  { %v186_v49 = vld [vmem:[#allocation2] sm:$0xff] }
  0x9b   :  { %v240_v52 = vadd.f32 %v212_v32, %v186_v49 }
  0x9d   :  { %v2895_v53 = vmul.f32 -1.442695, %v240_v52  ;;  %v1410_v52 = vld [vmem:[%s4169_s2 + $0x10] sm:$0xff] }
  0x9e   :  { %v156_v40 = vpop.f32.mrf.mxu1 }
  0x9f   :  { %v157_v41 = vadd.f32 %v3051_v27, %v156_v40  ;;  %3058 = vpow2.f32 %v2895_v53  ;;  %v1409_v53 = vld [vmem:[%s4169_s2 + $0x8] sm:$0xff] }
  0xa1   :  { %174 = vst.msk [vmem:[#allocation3 + $0x18] sm:$0xff] %vm111_vm1, %v157_v41 }
  0xa5   :  { %v3059_v56 = vpop.eup %3058 }
  0xa6   :  { %v159_v45 = vpop.f32.mrf.mxu1  ;;  %v244_v57 = vadd.f32 1.0, %v3059_v56 }
  0xa7   :  { %v160_v46 = vadd.f32 %v3051_v27, %v159_v45 }
  0xa8   :  { %3060 = vrcp.f32 %v244_v57  ;;  %vm250_vm2 = vweird.f32 %v244_v57  ;;  %v256_v6 = vand.u32 2147483648, %v244_v57  ;;  %v254_v12 = vand.u32 2147483647, %v244_v57 }
  0xa9   :  { %175 = vst.msk [vmem:[#allocation3 + $0x20] sm:$0xff] %vm111_vm1, %v160_v46 }
  0xaa   :  { %v257_v14 = vor.u32 1.1754944e-38, %v256_v6  ;;  %vm255_vm5 = vcmp.eq.f32.partialorder %v254_v12, 8.507059e+37 }
  0xae   :  { %v162_v47 = vpop.f32.mrf.mxu1  ;;  %v3061_v60 = vpop.eup %3060 }
  0xaf   :  { %v163_v48 = vadd.f32 %v3051_v27, %v162_v47  ;;  %v246_v61 = vmul.f32 %v3061_v60, %v244_v57  ;;  %vm251_vm3 = vweird.f32 %v3061_v60 }
  0xb0   :  { %vm252_vm4 = vmor %vm250_vm2, %vm251_vm3 }
  0xb1   :  { %176 = vst.msk [vmem:[#allocation3 + $0x28] sm:$0xff] %vm111_vm1, %v163_v48  ;;  %v247_v63 = vsub.f32 1.0, %v246_v61 }
  0xb3   :  { %v248_v0 = vmul.f32 %v3061_v60, %v247_v63 }
  0xb5   :  { %v249_v9 = vadd.f32 %v3061_v60, %v248_v0 }
  0xb6   :  { %v165_v50 = vpop.f32.mrf.mxu1 }
  0xb7   :  { %v166_v51 = vadd.f32 %v3051_v27, %v165_v50  ;;  %v253_v16 = vsel %vm252_vm4, %v3061_v60, %v249_v9 }
  0xb8   :  { %v258_v17 = vsel %vm255_vm5, %v257_v14, %v253_v16 }
  0xb9   :  { %177 = vst.msk [vmem:[#allocation3 + $0x30] sm:$0xff] %vm111_vm1, %v166_v51  ;;  %v1411_v51 = vld [vmem:[%s4169_s2 + $0x18] sm:$0xff] }
  0xba   :  { %1518 = vmatpush.msrb.mxu1 %v1411_v51 }
  0xbc   :  { %1519 = vmatpush.msrb.mxu1 %v1410_v52 }
  0xbe   :  { %v168_v54 = vpop.f32.mrf.mxu1  ;;  %1520 = vmatpush.msrb.mxu1 %v1409_v53 }
  0xbf   :  { %v169_v55 = vadd.f32 %v3051_v27, %v168_v54  ;;  %v1408_v54 = vld [vmem:[%s4169_s2] sm:$0xff] }
  0xc0   :  { %1521 = vmatpush.msrb.mxu1 %v1408_v54  ;;  %v343_v0 = vld [vmem:[#allocation3 + $0x30] sm:$0xff] }
  0xc1   :  { %178 = vst.msk [vmem:[#allocation3 + $0x38] sm:$0xff] %vm111_vm1, %v169_v55  ;;  %v90_v55 = vpop.f32.mrf.mxu0 }
  0xc2   :  { %v91_v56 = vadd.f32 %v3457_v42, %v90_v55 }
  0xc4   :  { %113 = vst.msk [vmem:[#allocation2 + $0x8] sm:$0xff] %vm111_vm1, %v91_v56 }
  0xc8   :  { %v187_v58 = vld [vmem:[#allocation3 + $0x38] sm:$0xff] }
  0xc9   :  { %v275_v59 = vadd.f32 %v237_v33, %v187_v58 }
  0xcb   :  { %v2896_v62 = vmul.f32 -1.442695, %v275_v59  ;;  %v342_v9 = vld [vmem:[#allocation2 + $0x8] sm:$0xff] }
  0xcd   :  { %3062 = vpow2.f32 %v2896_v62 }
  0xd3   :  { %v3063_v3 = vpop.eup %3062 }
  0xd4   :  { %v279_v13 = vadd.f32 1.0, %v3063_v3 }
  0xd6   :  { %3064 = vrcp.f32 %v279_v13  ;;  %v291_v25 = vand.u32 2147483648, %v279_v13  ;;  %vm285_vm7 = vweird.f32 %v279_v13  ;;  %v289_v26 = vand.u32 2147483647, %v279_v13 }
  0xd8   :  { %v292_v28 = vor.u32 1.1754944e-38, %v291_v25  ;;  %vm290_vm9 = vcmp.eq.f32.partialorder %v289_v26, 8.507059e+37 }
  0xdc   :  { %v3065_v20 = vpop.eup %3064 }
  0xdd   :  { %v281_v21 = vmul.f32 %v3065_v20, %v279_v13  ;;  %vm286_vm6 = vweird.f32 %v3065_v20 }
  0xde   :  { %vm287_vm8 = vmor %vm285_vm7, %vm286_vm6 }
  0xdf   :  { %v282_v22 = vsub.f32 1.0, %v281_v21 }
  0xe1   :  { %v283_v23 = vmul.f32 %v3065_v20, %v282_v22 }
  0xe3   :  { %v284_v24 = vadd.f32 %v3065_v20, %v283_v23 }
  0xe5   :  { %v288_v27 = vsel %vm287_vm8, %v3065_v20, %v284_v24 }
  0xe6   :  { %v293_v32 = vsel %vm290_vm9, %v292_v28, %v288_v27 }
  0xea   :  { %v266_v18 = vpop.permute.xlu2 %265 }
  0xeb   :  { %v268_v19 = vmul.f32 %v266_v18, %v258_v17 }
  0xed   :  { %270 = vrot.lane.b32.xlu0 %v268_v19, %s3253_s13 }
 0x103   :  { %v301_v29 = vpop.permute.xlu0 %300 }
 0x104   :  { %v303_v33 = vmul.f32 %v301_v29, %v293_v32 }
 0x106   :  { %305 = vrot.lane.b32.xlu1 %v303_v33, %s3253_s13 }
 0x15f   :  { %v271_v36 = vpop.permute.xlu0 %270 }
 0x160   :  { %v273_v37 = vadd.f32 %v271_v36, %v186_v49 }
 0x178   :  { %v306_v34 = vpop.permute.xlu1 %305 }
 0x179   :  { %v308_v35 = vadd.f32 %v306_v34, %v187_v58 }
 0x17b   :  { %3066 = vtanh.f32 %v308_v35 }
 0x17c   :  { %3068 = vtanh.f32 %v273_v37 }
 0x181   :  { %v3067_v38 = vpop.eup %3066 }
 0x182   :  { %v321_v39 = vsub.f32 0.0, %v3067_v38  ;;  %v3069_v40 = vpop.eup %3068 }
 0x183   :  { %v310_v41 = vsub.f32 0.0, %v3069_v40 }
 0x184   :  { %323 = vrot.lane.b32.xlu2 %v321_v39, %s3254_s17 }
 0x18c   :  { %312 = vrot.lane.b32.xlu2 %v310_v41, %s3254_s17 }
 0x1de   :  { %v324_v43 = vpop.permute.xlu2 %323 }
 0x1df   :  { %v326_v44 = vmul.f32 %v324_v43, %v293_v32 }
 0x1e1   :  { %328 = vrot.lane.b32.xlu1 %v326_v44, %s3255_s18 }
 0x1e6   :  { %v313_v45 = vpop.permute.xlu2 %312 }
 0x1e7   :  { %v315_v46 = vmul.f32 %v313_v45, %v258_v17 }
 0x1e9   :  { %317 = vrot.lane.b32.xlu1 %v315_v46, %s3255_s18 }
 0x253   :  { %v329_v47 = vpop.permute.xlu1 %328 }
 0x254   :  { %v3471_v48 = vadd.f32 %v3067_v38, %v329_v47 }
 0x256   :  { %338 = vrot.lane.b32.xlu0 %v3471_v48, %s3253_s13 }
 0x25b   :  { %v318_v49 = vpop.permute.xlu1 %317 }
 0x25c   :  { %v3475_v50 = vadd.f32 %v3069_v40, %v318_v49 }
 0x25e   :  { %333 = vrot.lane.b32.xlu2 %v3475_v50, %s3253_s13 }
 0x2b8   :  { %v334_v57 = vpop.permute.xlu2 %333 }
 0x2b9   :  { %336 = vst.msk [vmem:[#allocation4] sm:$0xff] %vm45_vm0, %v334_v57  ;;  %2897 = vmatmul.msk.f32.vlgmr.msrb.gmra.mxu2 %vm45_vm0, %v334_v57 }
 0x2ba   :  { %662 = vmatpush.msrb.mxu2 %v3307_v1 }
 0x2bc   :  { %663 = vmatpush.msrb.mxu2 %v3321_v4 }
 0x2be   :  { %664 = vmatpush.msrb.mxu2 %v3335_v7 }
 0x2c0   :  { %v1392_v58 = vld [vmem:[#allocation4] sm:$0xff]  ;;  %665 = vmatpush.msrb.mxu2 %v3350_v10 }
 0x2c1   :  { %2965 = vmatmul.msk.f32.vlgmr.msrb.gmra.mxu1 %vm45_vm0, %v1392_v58 }
 0x2c8   :  { %v339_v59 = vpop.permute.xlu0 %338 }
 0x2c9   :  { %341 = vst.msk [vmem:[#allocation5 + $0x38] sm:$0xff] %vm45_vm0, %v339_v59  ;;  %2902 = vmatmul.msk.f32.vlgmr.msrb.gmra.mxu3 %vm45_vm0, %v339_v59 }
 0x2ca   :  { %688 = vmatpush.msrb.mxu3 %v3312_v2 }
 0x2cc   :  { %689 = vmatpush.msrb.mxu3 %v3326_v5 }
 0x2ce   :  { %690 = vmatpush.msrb.mxu3 %v3341_v8 }
 0x2d0   :  { %691 = vmatpush.msrb.mxu3 %v3355_v11 }
 0x33c   :  { %v367_v60 = vpop.f32.mrf.mxu2 }
 0x33d   :  { %v416_v61 = vadd.f32 %v367_v60, %v3445_v31  ;;  %v396_v12 = vadd.f32 %v367_v60, %v342_v9 }
 0x33f   :  { %418 = vrot.lane.b32.xlu2 %v416_v61, %s3253_s13  ;;  %v2903_v13 = vmul.f32 -1.442695, %v396_v12 }
 0x34c   :  { %v393_v62 = vpop.f32.mrf.mxu3 }
 0x34d   :  { %v448_v63 = vadd.f32 %v393_v62, %v3443_v30  ;;  %v428_v3 = vadd.f32 %v393_v62, %v343_v0 }
 0x34f   :  { %450 = vrot.lane.b32.xlu0 %v448_v63, %s3253_s13  ;;  %v2904_v6 = vmul.f32 -1.442695, %v428_v3 }
 0x351   :  { %3070 = vpow2.f32 %v2904_v6 }
 0x352   :  { %3072 = vpow2.f32 %v2903_v13 }
 0x357   :  { %v3071_v14 = vpop.eup %3070 }
 0x358   :  { %v432_v16 = vadd.f32 1.0, %v3071_v14  ;;  %v3073_v17 = vpop.eup %3072 }
 0x359   :  { %v400_v18 = vadd.f32 1.0, %v3073_v17 }
 0x35a   :  { %3074 = vrcp.f32 %v432_v16  ;;  %v444_v27 = vand.u32 2147483648, %v432_v16  ;;  %vm438_vm11 = vweird.f32 %v432_v16  ;;  %v442_v28 = vand.u32 2147483647, %v432_v16 }
 0x35b   :  { %3076 = vrcp.f32 %v400_v18  ;;  %v412_v38 = vand.u32 2147483648, %v400_v18  ;;  %vm406_vm15 = vweird.f32 %v400_v18  ;;  %v410_v39 = vand.u32 2147483647, %v400_v18 }
 0x35c   :  { %v445_v33 = vor.u32 1.1754944e-38, %v444_v27  ;;  %vm443_vm13 = vcmp.eq.f32.partialorder %v442_v28, 8.507059e+37 }
 0x35d   :  { %v413_v43 = vor.u32 1.1754944e-38, %v412_v38  ;;  %vm411_vm3 = vcmp.eq.f32.partialorder %v410_v39, 8.507059e+37 }
 0x360   :  { %v3075_v19 = vpop.eup %3074 }
 0x361   :  { %v434_v20 = vmul.f32 %v3075_v19, %v432_v16  ;;  %v3077_v22 = vpop.eup %3076  ;;  %vm439_vm10 = vweird.f32 %v3075_v19 }
 0x362   :  { %v402_v23 = vmul.f32 %v3077_v22, %v400_v18  ;;  %vm440_vm12 = vmor %vm438_vm11, %vm439_vm10  ;;  %vm407_vm14 = vweird.f32 %v3077_v22 }
 0x363   :  { %v435_v21 = vsub.f32 1.0, %v434_v20  ;;  %vm408_vm2 = vmor %vm406_vm15, %vm407_vm14 }
 0x364   :  { %v403_v25 = vsub.f32 1.0, %v402_v23 }
 0x365   :  { %v436_v24 = vmul.f32 %v3075_v19, %v435_v21 }
 0x366   :  { %v404_v29 = vmul.f32 %v3077_v22, %v403_v25 }
 0x367   :  { %v437_v26 = vadd.f32 %v3075_v19, %v436_v24 }
 0x368   :  { %v405_v36 = vadd.f32 %v3077_v22, %v404_v29 }
 0x369   :  { %v441_v32 = vsel %vm440_vm12, %v3075_v19, %v437_v26 }
 0x36a   :  { %v446_v35 = vsel %vm443_vm13, %v445_v33, %v441_v32  ;;  %v409_v40 = vsel %vm408_vm2, %v3077_v22, %v405_v36 }
 0x36b   :  { %v414_v44 = vsel %vm411_vm3, %v413_v43, %v409_v40 }
 0x399   :  { %v419_v41 = vpop.permute.xlu2 %418 }
 0x39a   :  { %v421_v45 = vmul.f32 %v419_v41, %v414_v44 }
 0x3c1   :  { %v451_v34 = vpop.permute.xlu0 %450 }
 0x3c2   :  { %v453_v37 = vmul.f32 %v451_v34, %v446_v35 }
 0x3c4   :  { %455 = vrot.lane.b32.xlu1 %v453_v37, %s3253_s13 }
 0x3cc   :  { %423 = vrot.lane.b32.xlu1 %v421_v45, %s3253_s13 }
 0x436   :  { %v456_v46 = vpop.permute.xlu1 %455 }
 0x437   :  { %v458_v47 = vadd.f32 %v456_v46, %v343_v0 }
 0x439   :  { %3078 = vtanh.f32 %v458_v47 }
 0x43e   :  { %v424_v49 = vpop.permute.xlu1 %423 }
 0x43f   :  { %v3079_v51 = vpop.eup %3078  ;;  %v426_v52 = vadd.f32 %v424_v49, %v342_v9 }
 0x440   :  { %v471_v53 = vsub.f32 %v3471_v48, %v3079_v51 }
 0x441   :  { %3080 = vtanh.f32 %v426_v52 }
 0x442   :  { %473 = vrot.lane.b32.xlu0 %v471_v53, %s3254_s17 }
 0x447   :  { %v3081_v54 = vpop.eup %3080 }
 0x448   :  { %v460_v55 = vsub.f32 %v3475_v50, %v3081_v54  ;;  %v93_v50 = vpop.f32.mrf.mxu0 }
 0x449   :  { %v94_v63 = vadd.f32 %v3457_v42, %v93_v50 }
 0x44a   :  { %462 = vrot.lane.b32.xlu0 %v460_v55, %s3254_s17 }
 0x44b   :  { %114 = vst.msk [vmem:[#allocation2 + $0x10] sm:$0xff] %vm111_vm1, %v94_v63 }
 0x452   :  { %v492_v9 = vld [vmem:[#allocation2 + $0x10] sm:$0xff] }
 0x4b4   :  { %v474_v56 = vpop.permute.xlu0 %473 }
 0x4b5   :  { %v476_v57 = vmul.f32 %v474_v56, %v446_v35 }
 0x4b7   :  { %478 = vrot.lane.b32.xlu2 %v476_v57, %s3255_s18 }
 0x4bc   :  { %v463_v58 = vpop.permute.xlu0 %462 }
 0x4bd   :  { %v465_v59 = vmul.f32 %v463_v58, %v414_v44 }
 0x4bf   :  { %467 = vrot.lane.b32.xlu2 %v465_v59, %s3255_s18 }
 0x511   :  { %v479_v60 = vpop.permute.xlu2 %478 }
 0x512   :  { %v3518_v61 = vadd.f32 %v3079_v51, %v479_v60 }
 0x514   :  { %488 = vrot.lane.b32.xlu1 %v3518_v61, %s3253_s13 }
 0x519   :  { %v468_v48 = vpop.permute.xlu2 %467 }
 0x51a   :  { %v3522_v62 = vadd.f32 %v3081_v54, %v468_v48 }
 0x51c   :  { %483 = vrot.lane.b32.xlu0 %v3522_v62, %s3253_s13 }
 0x586   :  { %v489_v0 = vpop.permute.xlu1 %488 }
 0x587   :  { %491 = vst.msk [vmem:[#allocation5 + $0x30] sm:$0xff] %vm45_vm0, %v489_v0  ;;  %2910 = vmatmul.msk.f32.vlgmr.msra.gmra.mxu3 %vm45_vm0, %v489_v0  ;;  %v96_v0 = vpop.f32.mrf.mxu0 }
 0x588   :  { %838 = vmatpush.msra.mxu3 %v3312_v2 }
 0x58a   :  { %839 = vmatpush.msra.mxu3 %v3326_v5 }
 0x58c   :  { %840 = vmatpush.msra.mxu3 %v3341_v8 }
 0x58e   :  { %v484_v3 = vpop.permute.xlu0 %483  ;;  %841 = vmatpush.msra.mxu3 %v3355_v11 }
 0x58f   :  { %486 = vst.msk [vmem:[#allocation4 + $0x8] sm:$0xff] %vm45_vm0, %v484_v3  ;;  %2905 = vmatmul.msk.f32.vlgmr.msra.gmra.mxu2 %vm45_vm0, %v484_v3  ;;  %v97_v3 = vadd.f32 %v3457_v42, %v96_v0 }
 0x590   :  { %812 = vmatpush.msra.mxu2 %v3307_v1  ;;  %v493_v1 = vld [vmem:[#allocation3 + $0x28] sm:$0xff] }
 0x591   :  { %115 = vst.msk [vmem:[#allocation2 + $0x18] sm:$0xff] %vm111_vm1, %v97_v3  ;;  %v99_v3 = vpop.f32.mrf.mxu0 }
 0x592   :  { %813 = vmatpush.msra.mxu2 %v3321_v4 }
 0x594   :  { %814 = vmatpush.msra.mxu2 %v3335_v7 }
 0x596   :  { %v3539_v6 = vld [vmem:[#allocation4 + $0x8] sm:$0xff]  ;;  %815 = vmatpush.msra.mxu2 %v3350_v10 }
 0x597   :  { %2966 = vmatmul.msk.f32.gmra.mxu1 %vm45_vm0, %v3539_v6 }
 0x60a   :  { %v543_v2 = vpop.f32.mrf.mxu3 }
 0x60b   :  { %v598_v5 = vadd.f32 %v543_v2, %v3443_v30  ;;  %v578_v4 = vadd.f32 %v543_v2, %v493_v1 }
 0x60d   :  { %600 = vrot.lane.b32.xlu1 %v598_v5, %s3253_s13  ;;  %v2912_v7 = vmul.f32 -1.442695, %v578_v4 }
 0x60f   :  { %3082 = vpow2.f32 %v2912_v7 }
 0x612   :  { %v517_v8 = vpop.f32.mrf.mxu2 }
 0x613   :  { %v566_v11 = vadd.f32 %v517_v8, %v3445_v31  ;;  %v546_v12 = vadd.f32 %v517_v8, %v492_v9 }
 0x615   :  { %568 = vrot.lane.b32.xlu0 %v566_v11, %s3253_s13  ;;  %v2911_v10 = vmul.f32 -1.442695, %v546_v12  ;;  %v3083_v13 = vpop.eup %3082 }
 0x616   :  { %v582_v14 = vadd.f32 1.0, %v3083_v13 }
 0x617   :  { %3084 = vpow2.f32 %v2911_v10 }
 0x618   :  { %3086 = vrcp.f32 %v582_v14  ;;  %v594_v26 = vand.u32 2147483648, %v582_v14  ;;  %vm588_vm5 = vweird.f32 %v582_v14  ;;  %v592_v27 = vand.u32 2147483647, %v582_v14 }
 0x61a   :  { %v595_v32 = vor.u32 1.1754944e-38, %v594_v26  ;;  %vm593_vm7 = vcmp.eq.f32.partialorder %v592_v27, 8.507059e+37 }
 0x61d   :  { %v3085_v16 = vpop.eup %3084 }
 0x61e   :  { %v550_v17 = vadd.f32 1.0, %v3085_v16  ;;  %v3087_v18 = vpop.eup %3086 }
 0x61f   :  { %v584_v19 = vmul.f32 %v3087_v18, %v582_v14  ;;  %vm589_vm4 = vweird.f32 %v3087_v18 }
 0x620   :  { %3088 = vrcp.f32 %v550_v17  ;;  %vm590_vm6 = vmor %vm588_vm5, %vm589_vm4  ;;  %v562_v37 = vand.u32 2147483648, %v550_v17  ;;  %vm556_vm9 = vweird.f32 %v550_v17  ;;  %v560_v38 = vand.u32 2147483647, %v550_v17 }
 0x621   :  { %v585_v20 = vsub.f32 1.0, %v584_v19 }
 0x622   :  { %v563_v40 = vor.u32 1.1754944e-38, %v562_v37  ;;  %vm561_vm11 = vcmp.eq.f32.partialorder %v560_v38, 8.507059e+37 }
 0x623   :  { %v586_v22 = vmul.f32 %v3087_v18, %v585_v20 }
 0x625   :  { %v587_v24 = vadd.f32 %v3087_v18, %v586_v22 }
 0x626   :  { %v3089_v21 = vpop.eup %3088 }
 0x627   :  { %v552_v23 = vmul.f32 %v3089_v21, %v550_v17  ;;  %v591_v28 = vsel %vm590_vm6, %v3087_v18, %v587_v24  ;;  %vm557_vm8 = vweird.f32 %v3089_v21 }
 0x628   :  { %v596_v34 = vsel %vm593_vm7, %v595_v32, %v591_v28  ;;  %vm558_vm10 = vmor %vm556_vm9, %vm557_vm8 }
 0x629   :  { %v553_v25 = vsub.f32 1.0, %v552_v23 }
 0x62b   :  { %v554_v29 = vmul.f32 %v3089_v21, %v553_v25  ;;  %v642_v25 = vld [vmem:[#allocation2 + $0x18] sm:$0xff] }
 0x62d   :  { %v555_v36 = vadd.f32 %v3089_v21, %v554_v29 }
 0x62f   :  { %v559_v39 = vsel %vm558_vm10, %v3089_v21, %v555_v36 }
 0x630   :  { %v564_v43 = vsel %vm561_vm11, %v563_v40, %v559_v39 }
 0x67f   :  { %v601_v33 = vpop.permute.xlu1 %600 }
 0x680   :  { %v603_v35 = vmul.f32 %v601_v33, %v596_v34 }
 0x682   :  { %605 = vrot.lane.b32.xlu2 %v603_v35, %s3253_s13 }
 0x687   :  { %v569_v41 = vpop.permute.xlu0 %568 }
 0x688   :  { %v571_v44 = vmul.f32 %v569_v41, %v564_v43 }
 0x68a   :  { %573 = vrot.lane.b32.xlu2 %v571_v44, %s3253_s13 }
 0x6dc   :  { %v606_v45 = vpop.permute.xlu2 %605 }
 0x6dd   :  { %v608_v46 = vadd.f32 %v606_v45, %v493_v1  ;;  %v643_v1 = vld [vmem:[#allocation3 + $0x20] sm:$0xff] }
 0x6df   :  { %3090 = vtanh.f32 %v608_v46 }
 0x6e4   :  { %v574_v47 = vpop.permute.xlu2 %573 }
 0x6e5   :  { %v3091_v49 = vpop.eup %3090  ;;  %v576_v51 = vadd.f32 %v574_v47, %v492_v9 }
 0x6e6   :  { %v621_v52 = vsub.f32 %v3518_v61, %v3091_v49 }
 0x6e7   :  { %3092 = vtanh.f32 %v576_v51 }
 0x6e8   :  { %623 = vrot.lane.b32.xlu1 %v621_v52, %s3254_s17 }
 0x6ed   :  { %v3093_v53 = vpop.eup %3092 }
 0x6ee   :  { %v610_v54 = vsub.f32 %v3522_v62, %v3093_v53 }
 0x6f0   :  { %612 = vrot.lane.b32.xlu1 %v610_v54, %s3254_s17 }
 0x75a   :  { %v624_v55 = vpop.permute.xlu1 %623 }
 0x75b   :  { %v626_v56 = vmul.f32 %v624_v55, %v596_v34 }
 0x75d   :  { %628 = vrot.lane.b32.xlu0 %v626_v56, %s3255_s18 }
 0x762   :  { %v613_v57 = vpop.permute.xlu1 %612 }
 0x763   :  { %v615_v58 = vmul.f32 %v613_v57, %v564_v43 }
 0x765   :  { %617 = vrot.lane.b32.xlu0 %v615_v58, %s3255_s18 }
 0x7cf   :  { %v629_v59 = vpop.permute.xlu0 %628 }
 0x7d0   :  { %v3556_v60 = vadd.f32 %v3091_v49, %v629_v59 }
 0x7d2   :  { %638 = vrot.lane.b32.xlu2 %v3556_v60, %s3253_s13 }
 0x7d7   :  { %v618_v61 = vpop.permute.xlu0 %617 }
 0x7d8   :  { %v3560_v48 = vadd.f32 %v3093_v53, %v618_v61 }
 0x7da   :  { %633 = vrot.lane.b32.xlu1 %v3560_v48, %s3253_s13 }
 0x82c   :  { %v639_v62 = vpop.permute.xlu2 %638 }
 0x82d   :  { %641 = vst.msk [vmem:[#allocation5 + $0x28] sm:$0xff] %vm45_vm0, %v639_v62  ;;  %2918 = vmatmul.msk.f32.vlgmr.msrb.gmra.mxu3 %vm45_vm0, %v639_v62 }
 0x84c   :  { %v634_v50 = vpop.permute.xlu1 %633 }
 0x84d   :  { %636 = vst.msk [vmem:[#allocation4 + $0x10] sm:$0xff] %vm45_vm0, %v634_v50  ;;  %2913 = vmatmul.msk.f32.vlgmr.msrb.gmra.mxu2 %vm45_vm0, %v634_v50 }
 0x854   :  { %v3568_v63 = vld [vmem:[#allocation4 + $0x10] sm:$0xff] }
 0x855   :  { %2967 = vmatmul.msk.f32.gmra.mxu1 %vm45_vm0, %v3568_v63 }
 0x8b0   :  { %v693_v2 = vpop.f32.mrf.mxu3 }
 0x8b1   :  { %v748_v5 = vadd.f32 %v693_v2, %v3443_v30  ;;  %v728_v4 = vadd.f32 %v693_v2, %v643_v1  ;;  %v100_v2 = vadd.f32 %v3457_v42, %v99_v3 }
 0x8b3   :  { %750 = vrot.lane.b32.xlu2 %v748_v5, %s3253_s13  ;;  %v2920_v7 = vmul.f32 -1.442695, %v728_v4  ;;  %116 = vst.msk [vmem:[#allocation2 + $0x20] sm:$0xff] %vm111_vm1, %v100_v2  ;;  %v793_v4 = vld [vmem:[#allocation3 + $0x18] sm:$0xff] }
 0x8b5   :  { %3094 = vpow2.f32 %v2920_v7 }
 0x8bb   :  { %v3095_v9 = vpop.eup %3094 }
 0x8bc   :  { %v732_v12 = vadd.f32 1.0, %v3095_v9 }
 0x8be   :  { %3096 = vrcp.f32 %v732_v12  ;;  %v744_v18 = vand.u32 2147483648, %v732_v12  ;;  %vm738_vm13 = vweird.f32 %v732_v12  ;;  %v742_v19 = vand.u32 2147483647, %v732_v12 }
 0x8c0   :  { %v745_v21 = vor.u32 1.1754944e-38, %v744_v18  ;;  %vm743_vm15 = vcmp.eq.f32.partialorder %v742_v19, 8.507059e+37 }
 0x8c4   :  { %v3097_v10 = vpop.eup %3096 }
 0x8c5   :  { %v734_v13 = vmul.f32 %v3097_v10, %v732_v12  ;;  %vm739_vm12 = vweird.f32 %v3097_v10  ;;  %v792_v12 = vld [vmem:[#allocation2 + $0x20] sm:$0xff] }
 0x8c6   :  { %vm740_vm14 = vmor %vm738_vm13, %vm739_vm12 }
 0x8c7   :  { %v735_v14 = vsub.f32 1.0, %v734_v13 }
 0x8c9   :  { %v736_v16 = vmul.f32 %v3097_v10, %v735_v14 }
 0x8cb   :  { %v737_v17 = vadd.f32 %v3097_v10, %v736_v16 }
 0x8cd   :  { %v741_v20 = vsel %vm740_vm14, %v3097_v10, %v737_v17 }
 0x8ce   :  { %v746_v23 = vsel %vm743_vm15, %v745_v21, %v741_v20 }
 0x8d0   :  { %v667_v8 = vpop.f32.mrf.mxu2 }
 0x8d1   :  { %v716_v11 = vadd.f32 %v667_v8, %v3445_v31  ;;  %v696_v26 = vadd.f32 %v667_v8, %v642_v25 }
 0x8d3   :  { %718 = vrot.lane.b32.xlu1 %v716_v11, %s3253_s13  ;;  %v2919_v27 = vmul.f32 -1.442695, %v696_v26 }
 0x8d5   :  { %3098 = vpow2.f32 %v2919_v27 }
 0x8db   :  { %v3099_v28 = vpop.eup %3098 }
 0x8dc   :  { %v700_v29 = vadd.f32 1.0, %v3099_v28 }
 0x8de   :  { %3100 = vrcp.f32 %v700_v29  ;;  %v712_v37 = vand.u32 2147483648, %v700_v29  ;;  %vm706_vm3 = vweird.f32 %v700_v29  ;;  %v710_v38 = vand.u32 2147483647, %v700_v29 }
 0x8e0   :  { %v713_v40 = vor.u32 1.1754944e-38, %v712_v37  ;;  %vm711_vm5 = vcmp.eq.f32.partialorder %v710_v38, 8.507059e+37 }
 0x8e4   :  { %v3101_v32 = vpop.eup %3100 }
 0x8e5   :  { %v702_v33 = vmul.f32 %v3101_v32, %v700_v29  ;;  %vm707_vm2 = vweird.f32 %v3101_v32 }
 0x8e6   :  { %vm708_vm4 = vmor %vm706_vm3, %vm707_vm2 }
 0x8e7   :  { %v703_v34 = vsub.f32 1.0, %v702_v33 }
 0x8e9   :  { %v704_v35 = vmul.f32 %v3101_v32, %v703_v34 }
 0x8eb   :  { %v705_v36 = vadd.f32 %v3101_v32, %v704_v35 }
 0x8ed   :  { %v709_v39 = vsel %vm708_vm4, %v3101_v32, %v705_v36 }
 0x8ee   :  { %v714_v43 = vsel %vm711_vm5, %v713_v40, %v709_v39 }
 0x90d   :  { %v751_v22 = vpop.permute.xlu2 %750 }
 0x90e   :  { %v753_v24 = vmul.f32 %v751_v22, %v746_v23 }
 0x910   :  { %755 = vrot.lane.b32.xlu0 %v753_v24, %s3253_s13 }
 0x945   :  { %v719_v41 = vpop.permute.xlu1 %718 }
 0x946   :  { %v721_v44 = vmul.f32 %v719_v41, %v714_v43 }
 0x948   :  { %723 = vrot.lane.b32.xlu0 %v721_v44, %s3253_s13 }
 0x982   :  { %v756_v45 = vpop.permute.xlu0 %755 }
 0x983   :  { %v758_v46 = vadd.f32 %v756_v45, %v643_v1 }
 0x985   :  { %3102 = vtanh.f32 %v758_v46 }
 0x98b   :  { %v3103_v47 = vpop.eup %3102 }
 0x98c   :  { %v771_v49 = vsub.f32 %v3556_v60, %v3103_v47 }
 0x98e   :  { %773 = vrot.lane.b32.xlu2 %v771_v49, %s3254_s17 }
 0x9ba   :  { %v724_v51 = vpop.permute.xlu0 %723 }
 0x9bb   :  { %v726_v52 = vadd.f32 %v724_v51, %v642_v25 }
 0x9bd   :  { %3104 = vtanh.f32 %v726_v52 }
 0x9c3   :  { %v3105_v53 = vpop.eup %3104 }
 0x9c4   :  { %v760_v54 = vsub.f32 %v3560_v48, %v3105_v53 }
 0x9c6   :  { %762 = vrot.lane.b32.xlu2 %v760_v54, %s3254_s17 }
 0x9e8   :  { %v774_v55 = vpop.permute.xlu2 %773 }
 0x9e9   :  { %v776_v56 = vmul.f32 %v774_v55, %v746_v23 }
 0x9eb   :  { %778 = vrot.lane.b32.xlu1 %v776_v56, %s3255_s18 }
 0xa20   :  { %v763_v57 = vpop.permute.xlu2 %762 }
 0xa21   :  { %v765_v58 = vmul.f32 %v763_v57, %v714_v43 }
 0xa23   :  { %767 = vrot.lane.b32.xlu1 %v765_v58, %s3255_s18 }
 0xa5d   :  { %v779_v59 = vpop.permute.xlu1 %778 }
 0xa5e   :  { %v3586_v60 = vadd.f32 %v3103_v47, %v779_v59 }
 0xa60   :  { %788 = vrot.lane.b32.xlu0 %v3586_v60, %s3253_s13 }
 0xa95   :  { %v768_v61 = vpop.permute.xlu1 %767 }
 0xa96   :  { %v3590_v62 = vadd.f32 %v3105_v53, %v768_v61  ;;  %v2932_v61 = vld [vmem:[%s4165_s3 + $0x30] sm:$0xff] }
 0xa98   :  { %783 = vrot.lane.b32.xlu2 %v3590_v62, %s3253_s13 }
 0xad2   :  { %v789_v48 = vpop.permute.xlu0 %788 }
 0xad3   :  { %791 = vst.msk [vmem:[#allocation5 + $0x20] sm:$0xff] %vm45_vm0, %v789_v48  ;;  %2926 = vmatmul.msk.f32.vlgmr.msra.gmra.mxu3 %vm45_vm0, %v789_v48  ;;  %v2930_v48 = vld [vmem:[%s4165_s3 + $0x20] sm:$0xff] }
 0xaf2   :  { %v784_v50 = vpop.permute.xlu2 %783 }
 0xaf3   :  { %786 = vst.msk [vmem:[#allocation4 + $0x18] sm:$0xff] %vm45_vm0, %v784_v50  ;;  %2921 = vmatmul.msk.f32.vlgmr.msra.gmra.mxu2 %vm45_vm0, %v784_v50 }
 0xafa   :  { %v3598_v0 = vld [vmem:[#allocation4 + $0x18] sm:$0xff] }
 0xafb   :  { %2968 = vmatmul.msk.f32.gmra.mxu1 %vm45_vm0, %v3598_v0 }
 0xb56   :  { %v843_v5 = vpop.f32.mrf.mxu3 }
 0xb57   :  { %v898_v8 = vadd.f32 %v843_v5, %v3443_v30  ;;  %v878_v7 = vadd.f32 %v843_v5, %v793_v4 }
 0xb59   :  { %900 = vrot.lane.b32.xlu0 %v898_v8, %s3253_s13  ;;  %v2928_v9 = vmul.f32 -1.442695, %v878_v7  ;;  %v947_v8 = vld [vmem:[%s4165_s3 + $0x18] sm:$0xff]  ;;  %v102_v7 = vpop.f32.mrf.mxu0 }
 0xb5a   :  { %962 = vmatpush.msrb.mxu2 %v947_v8 }
 0xb5b   :  { %3106 = vpow2.f32 %v2928_v9  ;;  %v103_v9 = vadd.f32 %v3457_v42, %v102_v7 }
 0xb5d   :  { %117 = vst.msk [vmem:[#allocation2 + $0x28] sm:$0xff] %vm111_vm1, %v103_v9 }
 0xb61   :  { %v3107_v14 = vpop.eup %3106 }
 0xb62   :  { %v882_v16 = vadd.f32 1.0, %v3107_v14 }
 0xb64   :  { %v894_v27 = vand.u32 2147483648, %v882_v16  ;;  %vm888_vm7 = vweird.f32 %v882_v16  ;;  %v892_v28 = vand.u32 2147483647, %v882_v16 }
 0xb66   :  { %v895_v33 = vor.u32 1.1754944e-38, %v894_v27  ;;  %vm893_vm9 = vcmp.eq.f32.partialorder %v892_v28, 8.507059e+37 }
 0xb76   :  { %v817_v11 = vpop.f32.mrf.mxu2 }
 0xb77   :  { %v866_v1 = vadd.f32 %v817_v11, %v3445_v31  ;;  %v846_v10 = vadd.f32 %v817_v11, %v792_v12  ;;  %v946_v11 = vld [vmem:[%s4165_s3 + $0x10] sm:$0xff] }
 0xb78   :  { %963 = vmatpush.msrb.mxu2 %v946_v11 }
 0xb79   :  { %868 = vrot.lane.b32.xlu2 %v866_v1, %s3253_s13  ;;  %v2927_v13 = vmul.f32 -1.442695, %v846_v10  ;;  %v945_v1 = vld [vmem:[%s4165_s3 + $0x8] sm:$0xff] }
 0xb7a   :  { %964 = vmatpush.msrb.mxu2 %v945_v1 }
 0xb7b   :  { %3108 = vpow2.f32 %v2927_v13 }
 0xb7c   :  { %3110 = vrcp.f32 %v882_v16 }
 0xb81   :  { %v3109_v17 = vpop.eup %3108 }
 0xb82   :  { %v850_v18 = vadd.f32 1.0, %v3109_v17  ;;  %v3111_v19 = vpop.eup %3110 }
 0xb83   :  { %v884_v20 = vmul.f32 %v3111_v19, %v882_v16  ;;  %vm889_vm6 = vweird.f32 %v3111_v19 }
 0xb84   :  { %3112 = vrcp.f32 %v850_v18  ;;  %vm890_vm8 = vmor %vm888_vm7, %vm889_vm6  ;;  %v862_v38 = vand.u32 2147483648, %v850_v18  ;;  %vm856_vm11 = vweird.f32 %v850_v18  ;;  %v860_v39 = vand.u32 2147483647, %v850_v18 }
 0xb85   :  { %v885_v21 = vsub.f32 1.0, %v884_v20 }
 0xb86   :  { %v863_v41 = vor.u32 1.1754944e-38, %v862_v38  ;;  %vm861_vm13 = vcmp.eq.f32.partialorder %v860_v39, 8.507059e+37 }
 0xb87   :  { %v886_v23 = vmul.f32 %v3111_v19, %v885_v21  ;;  %v942_v21 = vld [vmem:[#allocation2 + $0x28] sm:$0xff] }
 0xb89   :  { %v887_v25 = vadd.f32 %v3111_v19, %v886_v23 }
 0xb8a   :  { %v3113_v22 = vpop.eup %3112 }
 0xb8b   :  { %v852_v24 = vmul.f32 %v3113_v22, %v850_v18  ;;  %v891_v29 = vsel %vm890_vm8, %v3111_v19, %v887_v25  ;;  %vm857_vm10 = vweird.f32 %v3113_v22  ;;  %v943_v18 = vld [vmem:[#allocation3 + $0x10] sm:$0xff] }
 0xb8c   :  { %v896_v35 = vsel %vm893_vm9, %v895_v33, %v891_v29  ;;  %vm858_vm12 = vmor %vm856_vm11, %vm857_vm10 }
 0xb8d   :  { %v853_v26 = vsub.f32 1.0, %v852_v24 }
 0xb8f   :  { %v854_v32 = vmul.f32 %v3113_v22, %v853_v26 }
 0xb91   :  { %v855_v37 = vadd.f32 %v3113_v22, %v854_v32 }
 0xb93   :  { %v859_v40 = vsel %vm858_vm12, %v3113_v22, %v855_v37 }
 0xb94   :  { %v864_v44 = vsel %vm861_vm13, %v863_v41, %v859_v40 }
 0xbcb   :  { %v901_v34 = vpop.permute.xlu0 %900 }
 0xbcc   :  { %v903_v36 = vmul.f32 %v901_v34, %v896_v35 }
 0xbce   :  { %905 = vrot.lane.b32.xlu1 %v903_v36, %s3253_s13 }
 0xbd3   :  { %v869_v43 = vpop.permute.xlu2 %868 }
 0xbd4   :  { %v871_v45 = vmul.f32 %v869_v43, %v864_v44 }
 0xbd6   :  { %873 = vrot.lane.b32.xlu1 %v871_v45, %s3253_s13 }
 0xc40   :  { %v906_v46 = vpop.permute.xlu1 %905 }
 0xc41   :  { %v908_v47 = vadd.f32 %v906_v46, %v793_v4  ;;  %v944_v4 = vld [vmem:[%s4165_s3] sm:$0xff] }
 0xc42   :  { %965 = vmatpush.msrb.mxu2 %v944_v4 }
 0xc43   :  { %3114 = vtanh.f32 %v908_v47 }
 0xc44   :  { %1112 = vmatpush.msra.mxu2 %v947_v8 }
 0xc46   :  { %1113 = vmatpush.msra.mxu2 %v946_v11 }
 0xc48   :  { %v874_v49 = vpop.permute.xlu1 %873  ;;  %1114 = vmatpush.msra.mxu2 %v945_v1 }
 0xc49   :  { %v3115_v51 = vpop.eup %3114  ;;  %v876_v52 = vadd.f32 %v874_v49, %v792_v12 }
 0xc4a   :  { %v921_v53 = vsub.f32 %v3586_v60, %v3115_v51  ;;  %v2933_v60 = vld [vmem:[%s4165_s3 + $0x38] sm:$0xff]  ;;  %1115 = vmatpush.msra.mxu2 %v944_v4 }
 0xc4b   :  { %3116 = vtanh.f32 %v876_v52  ;;  %988 = vmatpush.msrb.mxu3 %v2933_v60 }
 0xc4c   :  { %923 = vrot.lane.b32.xlu0 %v921_v53, %s3254_s17 }
 0xc4d   :  { %989 = vmatpush.msrb.mxu3 %v2932_v61 }
 0xc51   :  { %v3117_v54 = vpop.eup %3116 }
 0xc52   :  { %v910_v55 = vsub.f32 %v3590_v62, %v3117_v54  ;;  %v2931_v62 = vld [vmem:[%s4165_s3 + $0x28] sm:$0xff] }
 0xc53   :  { %990 = vmatpush.msrb.mxu3 %v2931_v62 }
 0xc54   :  { %912 = vrot.lane.b32.xlu0 %v910_v55, %s3254_s17 }
 0xc55   :  { %991 = vmatpush.msrb.mxu3 %v2930_v48 }
 0xc57   :  { %1138 = vmatpush.msra.mxu3 %v2933_v60 }
 0xc59   :  { %1139 = vmatpush.msra.mxu3 %v2932_v61 }
 0xc5b   :  { %1140 = vmatpush.msra.mxu3 %v2931_v62 }
 0xc5d   :  { %1141 = vmatpush.msra.mxu3 %v2930_v48 }
 0xcbe   :  { %v924_v56 = vpop.permute.xlu0 %923 }
 0xcbf   :  { %v926_v57 = vmul.f32 %v924_v56, %v896_v35 }
 0xcc1   :  { %928 = vrot.lane.b32.xlu2 %v926_v57, %s3255_s18 }
 0xcc6   :  { %v913_v58 = vpop.permute.xlu0 %912 }
 0xcc7   :  { %v915_v59 = vmul.f32 %v913_v58, %v864_v44 }
 0xcc9   :  { %917 = vrot.lane.b32.xlu2 %v915_v59, %s3255_s18 }
 0xd1b   :  { %v929_v50 = vpop.permute.xlu2 %928 }
 0xd1c   :  { %v3628_v3 = vadd.f32 %v3115_v51, %v929_v50 }
 0xd1e   :  { %938 = vrot.lane.b32.xlu1 %v3628_v3, %s3253_s13 }
 0xd23   :  { %v918_v2 = vpop.permute.xlu2 %917 }
 0xd24   :  { %v3632_v5 = vadd.f32 %v3117_v54, %v918_v2 }
 0xd26   :  { %933 = vrot.lane.b32.xlu0 %v3632_v5, %s3253_s13 }
 0xd90   :  { %v939_v12 = vpop.permute.xlu1 %938 }
 0xd91   :  { %941 = vst.msk [vmem:[#allocation5 + $0x18] sm:$0xff] %vm45_vm0, %v939_v12  ;;  %2934 = vmatmul.msk.f32.vlgmr.msrb.gmra.mxu3 %vm45_vm0, %v939_v12 }
 0xd92   :  { %1288 = vmatpush.msrb.mxu3 %v2933_v60 }
 0xd94   :  { %1289 = vmatpush.msrb.mxu3 %v2932_v61 }
 0xd96   :  { %1290 = vmatpush.msrb.mxu3 %v2931_v62 }
 0xd98   :  { %v934_v10 = vpop.permute.xlu0 %933  ;;  %1291 = vmatpush.msrb.mxu3 %v2930_v48 }
 0xd99   :  { %936 = vst.msk [vmem:[#allocation4 + $0x20] sm:$0xff] %vm45_vm0, %v934_v10  ;;  %2929 = vmatmul.msk.f32.vlgmr.msrb.gmra.mxu2 %vm45_vm0, %v934_v10 }
 0xd9a   :  { %1262 = vmatpush.msrb.mxu2 %v947_v8 }
 0xd9c   :  { %1263 = vmatpush.msrb.mxu2 %v946_v11 }
 0xd9e   :  { %1264 = vmatpush.msrb.mxu2 %v945_v1 }
 0xda0   :  { %v3654_v42 = vld [vmem:[#allocation4 + $0x20] sm:$0xff]  ;;  %1265 = vmatpush.msrb.mxu2 %v944_v4 }
 0xda1   :  { %2969 = vmatmul.msk.f32.gmra.mxu1 %vm45_vm0, %v3654_v42 }
 0xe14   :  { %v993_v13 = vpop.f32.mrf.mxu3 }
 0xe15   :  { %v1048_v14 = vadd.f32 %v993_v13, %v3443_v30  ;;  %v1028_v19 = vadd.f32 %v993_v13, %v943_v18  ;;  %v105_v13 = vpop.f32.mrf.mxu0 }
 0xe17   :  { %1050 = vrot.lane.b32.xlu1 %v1048_v14, %s3253_s13  ;;  %v2936_v20 = vmul.f32 -1.442695, %v1028_v19  ;;  %v3689_v14 = vld [vmem:[%s4168_s4] ss:$0 sm:$0xff] }
 0xe19   :  { %3118 = vpow2.f32 %v2936_v20 }
 0xe1c   :  { %v967_v16 = vpop.f32.mrf.mxu2 }
 0xe1d   :  { %v1016_v17 = vadd.f32 %v967_v16, %v3445_v31  ;;  %v996_v22 = vadd.f32 %v967_v16, %v942_v21  ;;  %v106_v16 = vadd.f32 %v3689_v14, %v105_v13 }
 0xe1f   :  { %1018 = vrot.lane.b32.xlu0 %v1016_v17, %s3253_s13  ;;  %v2935_v23 = vmul.f32 -1.442695, %v996_v22  ;;  %v3119_v24 = vpop.eup %3118  ;;  %118 = vst.msk [vmem:[#allocation2 + $0x30] sm:$0xff] %vm111_vm1, %v106_v16 }
 0xe20   :  { %v1032_v25 = vadd.f32 1.0, %v3119_v24 }
 0xe21   :  { %3120 = vpow2.f32 %v2935_v23 }
 0xe22   :  { %3122 = vrcp.f32 %v1032_v25  ;;  %v1044_v38 = vand.u32 2147483648, %v1032_v25  ;;  %vm1038_vm15 = vweird.f32 %v1032_v25  ;;  %v1042_v39 = vand.u32 2147483647, %v1032_v25 }
 0xe24   :  { %v1045_v43 = vor.u32 1.1754944e-38, %v1044_v38  ;;  %vm1043_vm3 = vcmp.eq.f32.partialorder %v1042_v39, 8.507059e+37 }
 0xe27   :  { %v3121_v26 = vpop.eup %3120 }
 0xe28   :  { %v1000_v27 = vadd.f32 1.0, %v3121_v26  ;;  %v3123_v28 = vpop.eup %3122 }
 0xe29   :  { %v1034_v29 = vmul.f32 %v3123_v28, %v1032_v25  ;;  %vm1039_vm14 = vweird.f32 %v3123_v28 }
 0xe2a   :  { %3124 = vrcp.f32 %v1000_v27  ;;  %vm1040_vm2 = vmor %vm1038_vm15, %vm1039_vm14  ;;  %v1012_v49 = vand.u32 2147483648, %v1000_v27  ;;  %vm1006_vm5 = vweird.f32 %v1000_v27  ;;  %v1010_v51 = vand.u32 2147483647, %v1000_v27 }
 0xe2b   :  { %v1035_v32 = vsub.f32 1.0, %v1034_v29 }
 0xe2c   :  { %v1013_v53 = vor.u32 1.1754944e-38, %v1012_v49  ;;  %vm1011_vm7 = vcmp.eq.f32.partialorder %v1010_v51, 8.507059e+37 }
 0xe2d   :  { %v1036_v34 = vmul.f32 %v3123_v28, %v1035_v32 }
 0xe2f   :  { %v1037_v36 = vadd.f32 %v3123_v28, %v1036_v34 }
 0xe30   :  { %v3125_v33 = vpop.eup %3124 }
 0xe31   :  { %v1002_v35 = vmul.f32 %v3125_v33, %v1000_v27  ;;  %v1041_v40 = vsel %vm1040_vm2, %v3123_v28, %v1037_v36  ;;  %vm1007_vm4 = vweird.f32 %v3125_v33 }
 0xe32   :  { %v1046_v45 = vsel %vm1043_vm3, %v1045_v43, %v1041_v40  ;;  %vm1008_vm6 = vmor %vm1006_vm5, %vm1007_vm4  ;;  %v1092_v40 = vld [vmem:[#allocation2 + $0x30] sm:$0xff] }
 0xe33   :  { %v1003_v37 = vsub.f32 1.0, %v1002_v35 }
 0xe35   :  { %v1004_v41 = vmul.f32 %v3125_v33, %v1003_v37 }
 0xe37   :  { %v1005_v47 = vadd.f32 %v3125_v33, %v1004_v41 }
 0xe39   :  { %v1009_v52 = vsel %vm1008_vm6, %v3125_v33, %v1005_v47 }
 0xe3a   :  { %v1014_v55 = vsel %vm1011_vm7, %v1013_v53, %v1009_v52 }
 0xe89   :  { %v1051_v44 = vpop.permute.xlu1 %1050 }
 0xe8a   :  { %v1053_v46 = vmul.f32 %v1051_v44, %v1046_v45 }
 0xe8c   :  { %1055 = vrot.lane.b32.xlu2 %v1053_v46, %s3253_s13 }
 0xe91   :  { %v1019_v54 = vpop.permute.xlu0 %1018 }
 0xe92   :  { %v1021_v56 = vmul.f32 %v1019_v54, %v1014_v55 }
 0xe94   :  { %1023 = vrot.lane.b32.xlu2 %v1021_v56, %s3253_s13 }
 0xee6   :  { %v1056_v57 = vpop.permute.xlu2 %1055 }
 0xee7   :  { %v1058_v58 = vadd.f32 %v1056_v57, %v943_v18 }
 0xee9   :  { %3126 = vtanh.f32 %v1058_v58 }
 0xeee   :  { %v1024_v59 = vpop.permute.xlu2 %1023 }
 0xeef   :  { %v3127_v60 = vpop.eup %3126  ;;  %v1026_v61 = vadd.f32 %v1024_v59, %v942_v21  ;;  %v1093_v21 = vld [vmem:[#allocation3 + $0x8] sm:$0xff] }
 0xef0   :  { %v1071_v62 = vsub.f32 %v3628_v3, %v3127_v60 }
 0xef1   :  { %3128 = vtanh.f32 %v1026_v61 }
 0xef2   :  { %1073 = vrot.lane.b32.xlu1 %v1071_v62, %s3254_s17 }
 0xef7   :  { %v3129_v48 = vpop.eup %3128 }
 0xef8   :  { %v1060_v50 = vsub.f32 %v3632_v5, %v3129_v48 }
 0xefa   :  { %1062 = vrot.lane.b32.xlu1 %v1060_v50, %s3254_s17 }
 0xf64   :  { %v1074_v2 = vpop.permute.xlu1 %1073 }
 0xf65   :  { %v1076_v8 = vmul.f32 %v1074_v2, %v1046_v45 }
 0xf67   :  { %1078 = vrot.lane.b32.xlu0 %v1076_v8, %s3255_s18 }
 0xf6c   :  { %v1063_v11 = vpop.permute.xlu1 %1062 }
 0xf6d   :  { %v1065_v1 = vmul.f32 %v1063_v11, %v1014_v55 }
 0xf6f   :  { %1067 = vrot.lane.b32.xlu0 %v1065_v1, %s3255_s18 }
 0xfd9   :  { %v1079_v4 = vpop.permute.xlu0 %1078 }
 0xfda   :  { %v3670_v7 = vadd.f32 %v3127_v60, %v1079_v4 }
 0xfdc   :  { %1088 = vrot.lane.b32.xlu2 %v3670_v7, %s3253_s13 }
 0xfe1   :  { %v1068_v3 = vpop.permute.xlu0 %1067 }
 0xfe2   :  { %v3674_v9 = vadd.f32 %v3129_v48, %v1068_v3 }
 0xfe4   :  { %1083 = vrot.lane.b32.xlu1 %v3674_v9, %s3253_s13 }
0x1036   :  { %v1089_v5 = vpop.permute.xlu2 %1088 }
0x1037   :  { %1091 = vst.msk [vmem:[#allocation5 + $0x10] sm:$0xff] %vm45_vm0, %v1089_v5  ;;  %2942 = vmatmul.msk.f32.vlgmr.msra.gmra.mxu3 %vm45_vm0, %v1089_v5 }
0x1056   :  { %v1084_v12 = vpop.permute.xlu1 %1083 }
0x1057   :  { %1086 = vst.msk [vmem:[#allocation4 + $0x28] sm:$0xff] %vm45_vm0, %v1084_v12  ;;  %2937 = vmatmul.msk.f32.vlgmr.msra.gmra.mxu2 %vm45_vm0, %v1084_v12 }
0x105e   :  { %v3682_v10 = vld [vmem:[#allocation4 + $0x28] sm:$0xff] }
0x105f   :  { %2970 = vmatmul.msk.f32.gmra.mxu1 %vm45_vm0, %v3682_v10 }
0x10ba   :  { %v1143_v17 = vpop.f32.mrf.mxu3 }
0x10bb   :  { %v1198_v18 = vadd.f32 %v1143_v17, %v3443_v30  ;;  %v1178_v22 = vadd.f32 %v1143_v17, %v1093_v21  ;;  %v2976_v17 = vld [vmem:[%s4169_s2 + $0x50] sm:$0xff] }
0x10bd   :  { %1200 = vrot.lane.b32.xlu2 %v1198_v18, %s3253_s13  ;;  %v2944_v23 = vmul.f32 -1.442695, %v1178_v22  ;;  %v2975_v18 = vld [vmem:[%s4169_s2 + $0x48] sm:$0xff] }
0x10bf   :  { %3130 = vpow2.f32 %v2944_v23 }
0x10c5   :  { %v3131_v24 = vpop.eup %3130 }
0x10c6   :  { %v1182_v25 = vadd.f32 1.0, %v3131_v24 }
0x10c8   :  { %3132 = vrcp.f32 %v1182_v25  ;;  %v1194_v33 = vand.u32 2147483648, %v1182_v25  ;;  %vm1188_vm9 = vweird.f32 %v1182_v25  ;;  %v1192_v34 = vand.u32 2147483647, %v1182_v25 }
0x10ca   :  { %v1195_v36 = vor.u32 1.1754944e-38, %v1194_v33  ;;  %vm1193_vm11 = vcmp.eq.f32.partialorder %v1192_v34, 8.507059e+37 }
0x10ce   :  { %v3133_v26 = vpop.eup %3132 }
0x10cf   :  { %v1184_v27 = vmul.f32 %v3133_v26, %v1182_v25  ;;  %vm1189_vm8 = vweird.f32 %v3133_v26 }
0x10d0   :  { %vm1190_vm10 = vmor %vm1188_vm9, %vm1189_vm8 }
0x10d1   :  { %v1185_v28 = vsub.f32 1.0, %v1184_v27 }
0x10d3   :  { %v1186_v29 = vmul.f32 %v3133_v26, %v1185_v28 }
0x10d5   :  { %v1187_v32 = vadd.f32 %v3133_v26, %v1186_v29 }
0x10d7   :  { %v1191_v35 = vsel %vm1190_vm10, %v3133_v26, %v1187_v32 }
0x10d8   :  { %v1196_v38 = vsel %vm1193_vm11, %v1195_v36, %v1191_v35 }
0x10da   :  { %v1117_v19 = vpop.f32.mrf.mxu2 }
0x10db   :  { %v1166_v20 = vadd.f32 %v1117_v19, %v3445_v31  ;;  %v1146_v41 = vadd.f32 %v1117_v19, %v1092_v40  ;;  %v2974_v19 = vld [vmem:[%s4169_s2 + $0x40] sm:$0xff] }
0x10dd   :  { %1168 = vrot.lane.b32.xlu1 %v1166_v20, %s3253_s13  ;;  %v2943_v43 = vmul.f32 -1.442695, %v1146_v41 }
0x10df   :  { %3134 = vpow2.f32 %v2943_v43 }
0x10e5   :  { %v3135_v44 = vpop.eup %3134 }
0x10e6   :  { %v1150_v45 = vadd.f32 1.0, %v3135_v44 }
0x10e8   :  { %3136 = vrcp.f32 %v1150_v45  ;;  %v1162_v53 = vand.u32 2147483648, %v1150_v45  ;;  %vm1156_vm13 = vweird.f32 %v1150_v45  ;;  %v1160_v54 = vand.u32 2147483647, %v1150_v45 }
0x10ea   :  { %v1163_v56 = vor.u32 1.1754944e-38, %v1162_v53  ;;  %vm1161_vm15 = vcmp.eq.f32.partialorder %v1160_v54, 8.507059e+37 }
0x10ee   :  { %v3137_v46 = vpop.eup %3136 }
0x10ef   :  { %v1152_v47 = vmul.f32 %v3137_v46, %v1150_v45  ;;  %vm1157_vm12 = vweird.f32 %v3137_v46 }
0x10f0   :  { %vm1158_vm14 = vmor %vm1156_vm13, %vm1157_vm12 }
0x10f1   :  { %v1153_v49 = vsub.f32 1.0, %v1152_v47 }
0x10f3   :  { %v1154_v51 = vmul.f32 %v3137_v46, %v1153_v49 }
0x10f5   :  { %v1155_v52 = vadd.f32 %v3137_v46, %v1154_v51 }
0x10f7   :  { %v1159_v55 = vsel %vm1158_vm14, %v3137_v46, %v1155_v52 }
0x10f8   :  { %v1164_v58 = vsel %vm1161_vm15, %v1163_v56, %v1159_v55 }
0x1117   :  { %v1201_v37 = vpop.permute.xlu2 %1200 }
0x1118   :  { %v1203_v39 = vmul.f32 %v1201_v37, %v1196_v38 }
0x111a   :  { %1205 = vrot.lane.b32.xlu0 %v1203_v39, %s3253_s13 }
0x114f   :  { %v1169_v57 = vpop.permute.xlu1 %1168 }
0x1150   :  { %v1171_v59 = vmul.f32 %v1169_v57, %v1164_v58 }
0x1152   :  { %1173 = vrot.lane.b32.xlu0 %v1171_v59, %s3253_s13 }
0x118c   :  { %v1206_v60 = vpop.permute.xlu0 %1205 }
0x118d   :  { %v1208_v61 = vadd.f32 %v1206_v60, %v1093_v21  ;;  %v3251_v21 = vld [vmem:[#allocation4] sm:$0xff] }
0x118f   :  { %3138 = vtanh.f32 %v1208_v61 }
0x1195   :  { %v3139_v62 = vpop.eup %3138 }
0x1196   :  { %v1221_v48 = vsub.f32 %v3670_v7, %v3139_v62 }
0x1198   :  { %1223 = vrot.lane.b32.xlu2 %v1221_v48, %s3254_s17 }
0x11c4   :  { %v1174_v50 = vpop.permute.xlu0 %1173 }
0x11c5   :  { %v1176_v2 = vadd.f32 %v1174_v50, %v1092_v40 }
0x11c7   :  { %3140 = vtanh.f32 %v1176_v2 }
0x11cd   :  { %v3141_v8 = vpop.eup %3140 }
0x11ce   :  { %v1210_v11 = vsub.f32 %v3674_v9, %v3141_v8  ;;  %v2977_v9 = vld [vmem:[%s4169_s2 + $0x58] sm:$0xff] }
0x11cf   :  { %1631 = vmatpush.msra.mxu3 %v2977_v9  ;;  %v2953_v9 = vld [vmem:[%s4169_s2 + $0x20] sm:$0xff] }
0x11d0   :  { %1212 = vrot.lane.b32.xlu2 %v1210_v11, %s3254_s17 }
0x11d1   :  { %1632 = vmatpush.msra.mxu3 %v2976_v17 }
0x11d3   :  { %1633 = vmatpush.msra.mxu3 %v2975_v18 }
0x11d5   :  { %1634 = vmatpush.msra.mxu3 %v2974_v19 }
0x11f2   :  { %v1224_v1 = vpop.permute.xlu2 %1223 }
0x11f3   :  { %v1226_v4 = vmul.f32 %v1224_v1, %v1196_v38 }
0x11f5   :  { %1228 = vrot.lane.b32.xlu1 %v1226_v4, %s3255_s18 }
0x122a   :  { %v1213_v3 = vpop.permute.xlu2 %1212 }
0x122b   :  { %v1215_v5 = vmul.f32 %v1213_v3, %v1164_v58 }
0x122d   :  { %1217 = vrot.lane.b32.xlu1 %v1215_v5, %s3255_s18 }
0x1267   :  { %v1229_v12 = vpop.permute.xlu1 %1228 }
0x1268   :  { %v3705_v7 = vadd.f32 %v3139_v62, %v1229_v12 }
0x126a   :  { %1238 = vrot.lane.b32.xlu0 %v3705_v7, %s3253_s13 }
0x129f   :  { %v1218_v13 = vpop.permute.xlu1 %1217 }
0x12a0   :  { %v3709_v16 = vadd.f32 %v3141_v8, %v1218_v13  ;;  %v2955_v13 = vld [vmem:[%s4169_s2 + $0x30] sm:$0xff] }
0x12a2   :  { %1233 = vrot.lane.b32.xlu2 %v3709_v16, %s3253_s13 }
0x12dc   :  { %v1239_v20 = vpop.permute.xlu0 %1238 }
0x12dd   :  { %1241 = vst.msk [vmem:[#allocation5 + $0x8] sm:$0xff] %vm45_vm0, %v1239_v20  ;;  %2950 = vmatmul.msk.f32.vlgmr.msrb.gmra.mxu3 %vm45_vm0, %v1239_v20 }
0x12e5   :  { %2990 = vmatmul.msk.f32.vlgmr.msra.gmra.mxu3 %vm45_vm0, %v3251_v21  ;;  %v2981_v21 = vld [vmem:[%s4169_s2 + $0x78] sm:$0xff] }
0x12e6   :  { %1590 = vmatpush.msra.mxu2 %v2981_v21 }
0x12ed   :  { %2991 = vmatmul.msk.f32.gmra.mxu3 %vm45_vm0, %v3539_v6  ;;  %v108_v6 = vpop.f32.mrf.mxu0 }
0x12f5   :  { %2992 = vmatmul.msk.f32.gmra.mxu3 %vm45_vm0, %v3568_v63  ;;  %v109_v63 = vadd.f32 %v3689_v14, %v108_v6  ;;  %v2978_v6 = vld [vmem:[%s4169_s2 + $0x60] sm:$0xff] }
0x12f7   :  { %119 = vst.msk [vmem:[#allocation2 + $0x38] sm:$0xff] %vm111_vm1, %v109_v63  ;;  %v3785_v63 = vld [vmem:[%s4165_s3 + $0x58] sm:$0xff] }
0x12fc   :  { %v1234_v22 = vpop.permute.xlu2 %1233 }
0x12fd   :  { %1236 = vst.msk [vmem:[#allocation4 + $0x30] sm:$0xff] %vm45_vm0, %v1234_v22  ;;  %2945 = vmatmul.msk.f32.vlgmr.msrb.gmra.mxu2 %vm45_vm0, %v1234_v22  ;;  %2993 = vmatmul.msk.f32.gmra.mxu3 %vm45_vm0, %v3598_v0  ;;  %v2980_v22 = vld [vmem:[%s4169_s2 + $0x70] sm:$0xff] }
0x12fe   :  { %v1242_v28 = vld [vmem:[#allocation2 + $0x38] sm:$0xff]  ;;  %1591 = vmatpush.msra.mxu2 %v2980_v22 }
0x1304   :  { %v1398_v23 = vld [vmem:[#allocation4 + $0x30] sm:$0xff] }
0x1305   :  { %2971 = vmatmul.msk.f32.gmra.mxu1 %vm45_vm0, %v1398_v23  ;;  %2994 = vmatmul.msk.f32.gmra.mxu3 %vm45_vm0, %v3654_v42  ;;  %v1243_v42 = vld [vmem:[#allocation3] sm:$0xff] }
0x130d   :  { %2995 = vmatmul.msk.f32.gmra.mxu3 %vm45_vm0, %v3682_v10 }
0x1315   :  { %2996 = vmatmul.msk.f32.gmra.mxu3 %vm45_vm0, %v1398_v23  ;;  %v2979_v23 = vld [vmem:[%s4169_s2 + $0x68] sm:$0xff] }
0x1316   :  { %1592 = vmatpush.msra.mxu2 %v2979_v23 }
0x1318   :  { %1593 = vmatpush.msra.mxu2 %v2978_v6 }
0x131a   :  { %1852 = vmatpush.msrb.mxu2 %v3785_v63 }
0x1360   :  { %v1293_v24 = vpop.f32.mrf.mxu3 }
0x1361   :  { %v1348_v25 = vadd.f32 %v1293_v24, %v3443_v30  ;;  %v1328_v27 = vadd.f32 %v1293_v24, %v1243_v42  ;;  %v3790_v24 = vld [vmem:[%s4165_s3 + $0x78] sm:$0xff] }
0x1362   :  { %1733 = vmatpush.msra.mxu1 %v3790_v24  ;;  %1877 = vmatpush.msrb.mxu3 %v3790_v24 }
0x1363   :  { %1350 = vrot.lane.b32.xlu0 %v1348_v25, %s3253_s13  ;;  %v2952_v10 = vmul.f32 -1.442695, %v1328_v27  ;;  %v3799_v25 = vld [vmem:[%s4165_s3 + $0x70] sm:$0xff] }
0x1364   :  { %1734 = vmatpush.msra.mxu1 %v3799_v25  ;;  %1878 = vmatpush.msrb.mxu3 %v3799_v25 }
0x1365   :  { %3142 = vpow2.f32 %v2952_v10 }
0x136b   :  { %v3143_v14 = vpop.eup %3142 }
0x136c   :  { %v1332_v33 = vadd.f32 1.0, %v3143_v14 }
0x136e   :  { %v1344_v43 = vand.u32 2147483648, %v1332_v33  ;;  %vm1338_vm3 = vweird.f32 %v1332_v33  ;;  %v1342_v44 = vand.u32 2147483647, %v1332_v33 }
0x1370   :  { %v1345_v47 = vor.u32 1.1754944e-38, %v1344_v43  ;;  %vm1343_vm5 = vcmp.eq.f32.partialorder %v1342_v44, 8.507059e+37 }
0x1380   :  { %v1267_v0 = vpop.f32.mrf.mxu2 }
0x1381   :  { %v1316_v26 = vadd.f32 %v1267_v0, %v3445_v31  ;;  %v1296_v29 = vadd.f32 %v1267_v0, %v1242_v28  ;;  %v3804_v0 = vld [vmem:[%s4165_s3 + $0x68] sm:$0xff] }
0x1382   :  { %1735 = vmatpush.msra.mxu1 %v3804_v0  ;;  %1879 = vmatpush.msrb.mxu3 %v3804_v0 }
0x1383   :  { %1318 = vrot.lane.b32.xlu2 %v1316_v26, %s3253_s13  ;;  %v2951_v32 = vmul.f32 -1.442695, %v1296_v29  ;;  %v3811_v26 = vld [vmem:[%s4165_s3 + $0x60] sm:$0xff]  ;;  %v3839_v29 = vld [vmem:[%s4165_s3 + $0x48] sm:$0xff] }
0x1384   :  { %1736 = vmatpush.msra.mxu1 %v3811_v26  ;;  %1880 = vmatpush.msrb.mxu3 %v3811_v26 }
0x1385   :  { %3144 = vpow2.f32 %v2951_v32  ;;  %v1401_v32 = vld [vmem:[#allocation5 + $0x8] sm:$0xff] }
0x1386   :  { %3146 = vrcp.f32 %v1332_v33  ;;  %2015 = vmatpush.msrb.mxu1 %v3790_v24  ;;  %2153 = vmatpush.msra.mxu3 %v3790_v24 }
0x1388   :  { %2016 = vmatpush.msrb.mxu1 %v3799_v25  ;;  %2154 = vmatpush.msra.mxu3 %v3799_v25 }
0x138a   :  { %2017 = vmatpush.msrb.mxu1 %v3804_v0  ;;  %2155 = vmatpush.msra.mxu3 %v3804_v0 }
0x138b   :  { %v3145_v34 = vpop.eup %3144 }
0x138c   :  { %v1300_v30 = vadd.f32 1.0, %v3145_v34  ;;  %v3147_v35 = vpop.eup %3146  ;;  %2018 = vmatpush.msrb.mxu1 %v3811_v26  ;;  %2156 = vmatpush.msra.mxu3 %v3811_v26  ;;  %v3853_v34 = vld [vmem:[%s4165_s3 + $0x40] sm:$0xff] }
0x138d   :  { %v1334_v36 = vmul.f32 %v3147_v35, %v1332_v33  ;;  %vm1339_vm2 = vweird.f32 %v3147_v35  ;;  %v1402_v33 = vld [vmem:[#allocation5 + $0x10] sm:$0xff] }
0x138e   :  { %3148 = vrcp.f32 %v1300_v30  ;;  %vm1340_vm4 = vmor %vm1338_vm3, %vm1339_vm2  ;;  %v1312_v54 = vand.u32 2147483648, %v1300_v30  ;;  %vm1306_vm7 = vweird.f32 %v1300_v30  ;;  %v1310_v55 = vand.u32 2147483647, %v1300_v30 }
0x138f   :  { %v1335_v37 = vsub.f32 1.0, %v1334_v36  ;;  %v1404_v36 = vld [vmem:[#allocation5 + $0x20] sm:$0xff] }
0x1390   :  { %v1313_v57 = vor.u32 1.1754944e-38, %v1312_v54  ;;  %vm1311_vm9 = vcmp.eq.f32.partialorder %v1310_v55, 8.507059e+37  ;;  %v3902_v55 = vld [vmem:[%s4168_s4 + $0x3] ss:$0 sm:$0xff] }
0x1391   :  { %v1336_v38 = vmul.f32 %v3147_v35, %v1335_v37  ;;  %v3054_v37 = vld [vmem:[%s4167_s5 + $0x2] ss:$0 sm:$0xff] }
0x1393   :  { %v1337_v40 = vadd.f32 %v3147_v35, %v1336_v38  ;;  %v1406_v38 = vld [vmem:[#allocation5 + $0x30] sm:$0xff] }
0x1394   :  { %v3149_v31 = vpop.eup %3148 }
0x1395   :  { %v1302_v39 = vmul.f32 %v3149_v31, %v1300_v30  ;;  %v1341_v45 = vsel %vm1340_vm4, %v3147_v35, %v1337_v40  ;;  %vm1307_vm6 = vweird.f32 %v3149_v31  ;;  %v3053_v30 = vld [vmem:[%s4167_s5 + $0x3] ss:$0 sm:$0xff]  ;;  %v1403_v35 = vld [vmem:[#allocation5 + $0x18] sm:$0xff]  ;;  %v1523_v40 = vpop.f32.mrf.mxu1 }
0x1396   :  { %v1346_v51 = vsel %vm1343_vm5, %v1345_v47, %v1341_v45  ;;  %vm1308_vm8 = vmor %vm1306_vm7, %vm1307_vm6  ;;  %v1636_v47 = vpop.f32.mrf.mxu3 }
0x1397   :  { %v1303_v41 = vsub.f32 1.0, %v1302_v39  ;;  %v1407_v39 = vld [vmem:[#allocation5 + $0x38] sm:$0xff] }
0x1399   :  { %v1304_v46 = vmul.f32 %v3149_v31, %v1303_v41 }
0x139b   :  { %v1305_v53 = vadd.f32 %v3149_v31, %v1304_v46 }
0x139d   :  { %v1309_v56 = vsel %vm1308_vm8, %v3149_v31, %v1305_v53  ;;  %v1405_v31 = vld [vmem:[#allocation5 + $0x28] sm:$0xff]  ;;  %v1526_v41 = vpop.f32.mrf.mxu1 }
0x139e   :  { %v1314_v59 = vsel %vm1311_vm9, %v1313_v57, %v1309_v56  ;;  %v1639_v54 = vpop.f32.mrf.mxu3 }
0x13a5   :  { %v1529_v43 = vpop.f32.mrf.mxu1 }
0x13ad   :  { %v1532_v44 = vpop.f32.mrf.mxu1 }
0x13b5   :  { %v1535_v45 = vpop.f32.mrf.mxu1 }
0x13bd   :  { %v1538_v46 = vpop.f32.mrf.mxu1 }
0x13d5   :  { %v1351_v49 = vpop.permute.xlu0 %1350 }
0x13d6   :  { %v1353_v52 = vmul.f32 %v1351_v49, %v1346_v51  ;;  %v3895_v49 = vld [vmem:[%s4168_s4 + $0x2] ss:$0 sm:$0xff] }
0x13d8   :  { %1355 = vrot.lane.b32.xlu1 %v1353_v52, %s3253_s13 }
0x13dd   :  { %v1319_v58 = vpop.permute.xlu2 %1318 }
0x13de   :  { %v1321_v60 = vmul.f32 %v1319_v58, %v1314_v59 }
0x13e0   :  { %1323 = vrot.lane.b32.xlu1 %v1321_v60, %s3253_s13 }
0x144a   :  { %v1356_v61 = vpop.permute.xlu1 %1355 }
0x144b   :  { %v1358_v62 = vadd.f32 %v1356_v61, %v1243_v42  ;;  %v3822_v42 = vld [vmem:[%s4165_s3 + $0x50] sm:$0xff] }
0x144c   :  { %1853 = vmatpush.msrb.mxu2 %v3822_v42 }
0x144d   :  { %3150 = vtanh.f32 %v1358_v62 }
0x144e   :  { %1854 = vmatpush.msrb.mxu2 %v3839_v29 }
0x1450   :  { %1855 = vmatpush.msrb.mxu2 %v3853_v34 }
0x1452   :  { %v1324_v48 = vpop.permute.xlu1 %1323 }
0x1453   :  { %v3151_v50 = vpop.eup %3150  ;;  %v1326_v2 = vadd.f32 %v1324_v48, %v1242_v28 }
0x1454   :  { %v1371_v8 = vsub.f32 %v3705_v7, %v3151_v50  ;;  %v2956_v7 = vld [vmem:[%s4169_s2 + $0x38] sm:$0xff] }
0x1455   :  { %3152 = vtanh.f32 %v1326_v2  ;;  %1453 = vmatpush.msrb.mxu0 %v2956_v7 }
0x1456   :  { %1373 = vrot.lane.b32.xlu0 %v1371_v8, %s3254_s17 }
0x1457   :  { %1454 = vmatpush.msrb.mxu0 %v2955_v13 }
0x145b   :  { %v3153_v11 = vpop.eup %3152 }
0x145c   :  { %v1360_v1 = vsub.f32 %v3709_v16, %v3153_v11  ;;  %v2954_v16 = vld [vmem:[%s4169_s2 + $0x28] sm:$0xff] }
0x145d   :  { %1455 = vmatpush.msrb.mxu0 %v2954_v16 }
0x145e   :  { %1362 = vrot.lane.b32.xlu0 %v1360_v1, %s3254_s17 }
0x145f   :  { %1456 = vmatpush.msrb.mxu0 %v2953_v9 }
0x1461   :  { %1708 = vmatpush.msra.mxu0 %v3785_v63 }
0x1463   :  { %1709 = vmatpush.msra.mxu0 %v3822_v42 }
0x1465   :  { %1710 = vmatpush.msra.mxu0 %v3839_v29 }
0x1467   :  { %1711 = vmatpush.msra.mxu0 %v3853_v34 }
0x14c8   :  { %v1374_v4 = vpop.permute.xlu0 %1373 }
0x14c9   :  { %v1376_v3 = vmul.f32 %v1374_v4, %v1346_v51 }
0x14cb   :  { %1378 = vrot.lane.b32.xlu2 %v1376_v3, %s3255_s18 }
0x14d0   :  { %v1363_v5 = vpop.permute.xlu0 %1362 }
0x14d1   :  { %v1365_v12 = vmul.f32 %v1363_v5, %v1314_v59 }
0x14d3   :  { %1367 = vrot.lane.b32.xlu2 %v1365_v12, %s3255_s18 }
0x14db   :  { %1796 = vrot.lane.b32.xlu2 %v3053_v30, %s3253_s13 }
0x1525   :  { %v1379_v17 = vpop.permute.xlu2 %1378 }
0x1526   :  { %v1381_v18 = vadd.f32 %v3151_v50, %v1379_v17  ;;  %v1642_v50 = vpop.f32.mrf.mxu3 }
0x1528   :  { %1388 = vrot.lane.b32.xlu1 %v1381_v18, %s3253_s13 }
0x152d   :  { %v1368_v19 = vpop.permute.xlu2 %1367 }
0x152e   :  { %v1370_v20 = vadd.f32 %v3153_v11, %v1368_v19  ;;  %v1645_v9 = vpop.f32.mrf.mxu3 }
0x1530   :  { %1383 = vrot.lane.b32.xlu0 %v1370_v20, %s3253_s13  ;;  %1761 = vrot.lane.b32.xlu1 %v3054_v37, %s3253_s13 }
0x1535   :  { %v3908_v48 = vpop.permute.xlu2 %1796 }
0x159a   :  { %v1389_v27 = vpop.permute.xlu1 %1388 }
0x159b   :  { %1391 = vst.msk [vmem:[#allocation5] sm:$0xff] %vm45_vm0, %v1389_v27  ;;  %v1648_v27 = vpop.f32.mrf.mxu3 }
0x15a2   :  { %v1384_v10 = vpop.permute.xlu0 %1383  ;;  %v1400_v28 = vld [vmem:[#allocation5] sm:$0xff] }
0x15a3   :  { %1386 = vst.msk [vmem:[#allocation4 + $0x38] sm:$0xff] %vm45_vm0, %v1384_v10  ;;  %2957 = vmatmul.msk.f32.vlgmr.msrb.gmra.mxu0 %vm45_vm0, %v1400_v28  ;;  %2982 = vmatmul.msk.f32.vlgmr.msra.gmra.mxu2 %vm45_vm0, %v1400_v28 }
0x15a4   :  { %1990 = vmatpush.msrb.mxu0 %v3785_v63  ;;  %2128 = vmatpush.msra.mxu2 %v3785_v63 }
0x15a6   :  { %1991 = vmatpush.msrb.mxu0 %v3822_v42  ;;  %2129 = vmatpush.msra.mxu2 %v3822_v42 }
0x15a8   :  { %1992 = vmatpush.msrb.mxu0 %v3839_v29  ;;  %2130 = vmatpush.msra.mxu2 %v3839_v29 }
0x15aa   :  { %v1399_v14 = vld [vmem:[#allocation4 + $0x38] sm:$0xff]  ;;  %1993 = vmatpush.msrb.mxu0 %v3853_v34  ;;  %2131 = vmatpush.msra.mxu2 %v3853_v34 }
0x15ab   :  { %2958 = vmatmul.msk.f32.gmra.mxu0 %vm45_vm0, %v1401_v32  ;;  %2972 = vmatmul.msk.f32.gmra.mxu1 %vm45_vm0, %v1399_v14 }
0x15ac   :  { %2983 = vmatmul.msk.f32.gmra.mxu2 %vm45_vm0, %v1401_v32  ;;  %2997 = vmatmul.msk.f32.gmra.mxu3 %vm45_vm0, %v1399_v14 }
0x15b3   :  { %2959 = vmatmul.msk.f32.gmra.mxu0 %vm45_vm0, %v1402_v33  ;;  %1737 = vmatmul.f32.vlgmr.msra.gmra.mxu1 %v3252_v15 }
0x15b4   :  { %2984 = vmatmul.msk.f32.gmra.mxu2 %vm45_vm0, %v1402_v33  ;;  %2291 = vmatpush.msra.mxu1 %v3790_v24 }
0x15b6   :  { %2292 = vmatpush.msra.mxu1 %v3799_v25 }
0x15b8   :  { %2293 = vmatpush.msra.mxu1 %v3804_v0 }
0x15ba   :  { %2294 = vmatpush.msra.mxu1 %v3811_v26 }
0x15bb   :  { %2960 = vmatmul.msk.f32.gmra.mxu0 %vm45_vm0, %v1403_v35 }
0x15bc   :  { %2985 = vmatmul.msk.f32.gmra.mxu2 %vm45_vm0, %v1403_v35 }
0x15c3   :  { %2961 = vmatmul.msk.f32.gmra.mxu0 %vm45_vm0, %v1404_v36 }
0x15c4   :  { %2986 = vmatmul.msk.f32.gmra.mxu2 %vm45_vm0, %v1404_v36  ;;  %v1651_v36 = vpop.f32.mrf.mxu3 }
0x15cb   :  { %2962 = vmatmul.msk.f32.gmra.mxu0 %vm45_vm0, %v1405_v31 }
0x15cc   :  { %2987 = vmatmul.msk.f32.gmra.mxu2 %vm45_vm0, %v1405_v31 }
0x15d3   :  { %2963 = vmatmul.msk.f32.gmra.mxu0 %vm45_vm0, %v1406_v38 }
0x15d4   :  { %2988 = vmatmul.msk.f32.gmra.mxu2 %vm45_vm0, %v1406_v38 }
0x15db   :  { %2964 = vmatmul.msk.f32.gmra.mxu0 %vm45_vm0, %v1407_v39 }
0x15dc   :  { %2989 = vmatmul.msk.f32.gmra.mxu2 %vm45_vm0, %v1407_v39 }
0x15e3   :  { %1712 = vmatmul.f32.vlgmr.msra.gmra.mxu0 %v3252_v15  ;;  %v1541_v15 = vpop.f32.mrf.mxu1 }
0x15e4   :  { %2266 = vmatpush.msra.mxu0 %v3785_v63 }
0x15e6   :  { %2267 = vmatpush.msra.mxu0 %v3822_v42 }
0x15e8   :  { %2268 = vmatpush.msra.mxu0 %v3839_v29 }
0x15ea   :  { %2269 = vmatpush.msra.mxu0 %v3853_v34 }
0x1620   :  { %v1458_v51 = vpop.f32.mrf.mxu0 }
0x1621   :  { %v1524_v52 = vadd.f32 %v1523_v40, %v1458_v51 }
0x1623   :  { %v1552_v53 = vadd.f32 %v3895_v49, %v1524_v52 }
0x1625   :  { %1560 = vst.msk [vmem:[#allocation2] sm:$0xff] %vm111_vm1, %v1552_v53 }
0x1626   :  { %v1595_v56 = vpop.f32.mrf.mxu2 }
0x1627   :  { %v1637_v57 = vadd.f32 %v1636_v47, %v1595_v56 }
0x1628   :  { %v1461_v58 = vpop.f32.mrf.mxu0  ;;  %v1544_v59 = vpop.f32.mrf.mxu1 }
0x1629   :  { %v1665_v60 = vadd.f32 %v3902_v55, %v1637_v57  ;;  %v1527_v61 = vadd.f32 %v1526_v41, %v1461_v58 }
0x162b   :  { %1673 = vst.msk [vmem:[#allocation3] sm:$0xff] %vm111_vm1, %v1665_v60  ;;  %v1553_v62 = vadd.f32 %v3895_v49, %v1527_v61 }
0x162d   :  { %1561 = vst.msk [vmem:[#allocation2 + $0x8] sm:$0xff] %vm111_vm1, %v1553_v62 }
0x162f   :  { %v1598_v2 = vpop.f32.mrf.mxu2 }
0x1630   :  { %v1640_v8 = vadd.f32 %v1639_v54, %v1598_v2  ;;  %v3910_v11 = vpop.f32.mrf.mxu1  ;;  %v1464_v1 = vpop.f32.mrf.mxu0 }
0x1631   :  { %v1530_v4 = vadd.f32 %v1529_v43, %v1464_v1  ;;  %v1799_v3 = vadd.f32 %v3908_v48, %v3910_v11  ;;  %v1654_v43 = vpop.f32.mrf.mxu3 }
0x1632   :  { %v1666_v5 = vadd.f32 %v3902_v55, %v1640_v8 }
0x1633   :  { %v1554_v12 = vadd.f32 %v3895_v49, %v1530_v4  ;;  %1801 = vrot.lane.b32.xlu1 %v1799_v3, %s3253_s13 }
0x1634   :  { %1674 = vst.msk [vmem:[#allocation3 + $0x8] sm:$0xff] %vm111_vm1, %v1666_v5 }
0x1635   :  { %1562 = vst.msk [vmem:[#allocation2 + $0x10] sm:$0xff] %vm111_vm1, %v1554_v12 }
0x1637   :  { %v1601_v7 = vpop.f32.mrf.mxu2 }
0x1638   :  { %v1643_v13 = vadd.f32 %v1642_v50, %v1601_v7  ;;  %v1467_v16 = vpop.f32.mrf.mxu0  ;;  %v1689_v7 = vld [vmem:[#allocation2] sm:$0xff] }
0x1639   :  { %v1533_v17 = vadd.f32 %v1532_v44, %v1467_v16  ;;  %v1657_v53 = vpop.f32.mrf.mxu3 }
0x163a   :  { %v1667_v18 = vadd.f32 %v3902_v55, %v1643_v13 }
0x163b   :  { %v1555_v19 = vadd.f32 %v3895_v49, %v1533_v17 }
0x163c   :  { %1675 = vst.msk [vmem:[#allocation3 + $0x10] sm:$0xff] %vm111_vm1, %v1667_v18 }
0x163d   :  { %1563 = vst.msk [vmem:[#allocation2 + $0x18] sm:$0xff] %vm111_vm1, %v1555_v19 }
0x163f   :  { %v1604_v20 = vpop.f32.mrf.mxu2 }
0x1640   :  { %v1646_v21 = vadd.f32 %v1645_v9, %v1604_v20  ;;  %v1470_v22 = vpop.f32.mrf.mxu0 }
0x1641   :  { %v1536_v23 = vadd.f32 %v1535_v45, %v1470_v22 }
0x1642   :  { %v1668_v6 = vadd.f32 %v3902_v55, %v1646_v21 }
0x1643   :  { %v1556_v10 = vadd.f32 %v3895_v49, %v1536_v23 }
0x1644   :  { %1676 = vst.msk [vmem:[#allocation3 + $0x18] sm:$0xff] %vm111_vm1, %v1668_v6 }
0x1645   :  { %1564 = vst.msk [vmem:[#allocation2 + $0x20] sm:$0xff] %vm111_vm1, %v1556_v10 }
0x1647   :  { %v1607_v28 = vpop.f32.mrf.mxu2 }
0x1648   :  { %v1649_v32 = vadd.f32 %v1648_v27, %v1607_v28  ;;  %v1473_v14 = vpop.f32.mrf.mxu0 }
0x1649   :  { %v1539_v33 = vadd.f32 %v1538_v46, %v1473_v14 }
0x164a   :  { %v1669_v30 = vadd.f32 %v3902_v55, %v1649_v32 }
0x164b   :  { %v1557_v35 = vadd.f32 %v3895_v49, %v1539_v33 }
0x164c   :  { %1677 = vst.msk [vmem:[#allocation3 + $0x20] sm:$0xff] %vm111_vm1, %v1669_v30 }
0x164d   :  { %1565 = vst.msk [vmem:[#allocation2 + $0x28] sm:$0xff] %vm111_vm1, %v1557_v35 }
0x164f   :  { %v1610_v37 = vpop.f32.mrf.mxu2 }
0x1650   :  { %v1652_v31 = vadd.f32 %v1651_v36, %v1610_v37  ;;  %v1476_v38 = vpop.f32.mrf.mxu0 }
0x1651   :  { %v1542_v39 = vadd.f32 %v1541_v15, %v1476_v38  ;;  %v3939_v15 = vpop.permute.xlu1 %1761 }
0x1652   :  { %v1670_v40 = vadd.f32 %v3902_v55, %v1652_v31 }
0x1653   :  { %v1558_v41 = vadd.f32 %v3895_v49, %v1542_v39 }
0x1654   :  { %1678 = vst.msk [vmem:[#allocation3 + $0x28] sm:$0xff] %vm111_vm1, %v1670_v40 }
0x1655   :  { %1566 = vst.msk [vmem:[#allocation2 + $0x30] sm:$0xff] %vm111_vm1, %v1558_v41 }
0x1657   :  { %v1613_v44 = vpop.f32.mrf.mxu2 }
0x1658   :  { %v1655_v45 = vadd.f32 %v1654_v43, %v1613_v44  ;;  %v1479_v46 = vpop.f32.mrf.mxu0 }
0x1659   :  { %v1545_v47 = vadd.f32 %v1544_v59, %v1479_v46 }
0x165a   :  { %v1671_v51 = vadd.f32 %v3902_v55, %v1655_v45 }
0x165b   :  { %v1559_v52 = vadd.f32 %v3895_v49, %v1545_v47 }
0x165c   :  { %1679 = vst.msk [vmem:[#allocation3 + $0x30] sm:$0xff] %vm111_vm1, %v1671_v51 }
0x165d   :  { %1567 = vst.msk [vmem:[#allocation2 + $0x38] sm:$0xff] %vm111_vm1, %v1559_v52 }
0x165f   :  { %v1616_v54 = vpop.f32.mrf.mxu2 }
0x1660   :  { %v1658_v56 = vadd.f32 %v1657_v53, %v1616_v54  ;;  %v1713_v57 = vpop.f32.mrf.mxu0 }
0x1661   :  { %v1764_v58 = vadd.f32 %v3939_v15, %v1713_v57  ;;  %v1741_v16 = vadd.f32 %v1713_v57, %v1689_v7 }
0x1662   :  { %v1672_v60 = vadd.f32 %v3902_v55, %v1658_v56 }
0x1663   :  { %1766 = vrot.lane.b32.xlu0 %v1764_v58, %s3253_s13  ;;  %v3009_v18 = vmul.f32 -1.442695, %v1741_v16  ;;  %v1833_v16 = vld [vmem:[#allocation2 + $0x8] sm:$0xff] }
0x1664   :  { %1680 = vst.msk [vmem:[#allocation3 + $0x38] sm:$0xff] %vm111_vm1, %v1672_v60 }
0x166b   :  { %v1690_v59 = vld [vmem:[#allocation3 + $0x38] sm:$0xff] }
0x166c   :  { %v1776_v49 = vadd.f32 %v3910_v11, %v1690_v59 }
0x166e   :  { %v3010_v61 = vmul.f32 -1.442695, %v1776_v49 }
0x1670   :  { %3154 = vpow2.f32 %v3010_v61  ;;  %v1834_v61 = vld [vmem:[#allocation3 + $0x30] sm:$0xff] }
0x1676   :  { %v3155_v62 = vpop.eup %3154 }
0x1677   :  { %v1780_v50 = vadd.f32 1.0, %v3155_v62 }
0x1679   :  { %3156 = vrcp.f32 %v1780_v50  ;;  %v1792_v5 = vand.u32 2147483648, %v1780_v50  ;;  %vm1786_vm11 = vweird.f32 %v1780_v50  ;;  %v1790_v55 = vand.u32 2147483647, %v1780_v50 }
0x167a   :  { %3158 = vpow2.f32 %v3009_v18 }
0x167b   :  { %v1793_v13 = vor.u32 1.1754944e-38, %v1792_v5  ;;  %vm1791_vm1 = vcmp.eq.f32.partialorder %v1790_v55, 8.507059e+37 }
0x167f   :  { %v3157_v2 = vpop.eup %3156 }
0x1680   :  { %v1782_v8 = vmul.f32 %v3157_v2, %v1780_v50  ;;  %vm1787_vm10 = vweird.f32 %v3157_v2  ;;  %v3159_v19 = vpop.eup %3158 }
0x1681   :  { %vm1788_vm12 = vmor %vm1786_vm11, %vm1787_vm10  ;;  %v1745_v20 = vadd.f32 1.0, %v3159_v19 }
0x1682   :  { %v1783_v1 = vsub.f32 1.0, %v1782_v8 }
0x1683   :  { %3160 = vrcp.f32 %v1745_v20  ;;  %v1757_v10 = vand.u32 2147483648, %v1745_v20  ;;  %vm1751_vm14 = vweird.f32 %v1745_v20  ;;  %v1755_v28 = vand.u32 2147483647, %v1745_v20 }
0x1684   :  { %v1784_v4 = vmul.f32 %v3157_v2, %v1783_v1 }
0x1685   :  { %v1758_v14 = vor.u32 1.1754944e-38, %v1757_v10  ;;  %vm1756_vm2 = vcmp.eq.f32.partialorder %v1755_v28, 8.507059e+37 }
0x1686   :  { %v1785_v3 = vadd.f32 %v3157_v2, %v1784_v4 }
0x1688   :  { %v1789_v12 = vsel %vm1788_vm12, %v3157_v2, %v1785_v3 }
0x1689   :  { %v1794_v9 = vsel %vm1791_vm1, %v1793_v13, %v1789_v12  ;;  %v3161_v21 = vpop.eup %3160 }
0x168a   :  { %v1747_v22 = vmul.f32 %v3161_v21, %v1745_v20  ;;  %vm1752_vm13 = vweird.f32 %v3161_v21 }
0x168b   :  { %vm1753_vm15 = vmor %vm1751_vm14, %vm1752_vm13 }
0x168c   :  { %v1748_v23 = vsub.f32 1.0, %v1747_v22 }
0x168e   :  { %v1749_v6 = vmul.f32 %v3161_v21, %v1748_v23 }
0x1690   :  { %v1750_v27 = vadd.f32 %v3161_v21, %v1749_v6 }
0x1692   :  { %v1754_v32 = vsel %vm1753_vm15, %v3161_v21, %v1750_v27 }
0x1693   :  { %v1759_v30 = vsel %vm1756_vm2, %v1758_v14, %v1754_v32 }
0x16a5   :  { %v1802_v11 = vpop.permute.xlu1 %1801 }
0x16a6   :  { %v1804_v17 = vmul.f32 %v1802_v11, %v1794_v9 }
0x16a8   :  { %1806 = vrot.lane.b32.xlu0 %v1804_v17, %s3253_s13 }
0x16d5   :  { %v1767_v33 = vpop.permute.xlu0 %1766 }
0x16d6   :  { %v1769_v35 = vmul.f32 %v1767_v33, %v1759_v30 }
0x16d8   :  { %1771 = vrot.lane.b32.xlu2 %v1769_v35, %s3253_s13 }
0x171a   :  { %v1807_v36 = vpop.permute.xlu0 %1806 }
0x171b   :  { %v1809_v37 = vadd.f32 %v1807_v36, %v1690_v59 }
0x171d   :  { %3162 = vtanh.f32 %v1809_v37 }
0x1723   :  { %v3163_v31 = vpop.eup %3162 }
0x1724   :  { %v1822_v38 = vsub.f32 0.0, %v3163_v31 }
0x1726   :  { %1824 = vrot.lane.b32.xlu2 %v1822_v38, %s3254_s17 }
0x1732   :  { %v1772_v39 = vpop.permute.xlu2 %1771 }
0x1733   :  { %v1774_v40 = vadd.f32 %v1772_v39, %v1689_v7 }
0x1735   :  { %3164 = vtanh.f32 %v1774_v40 }
0x173b   :  { %v3165_v41 = vpop.eup %3164 }
0x173c   :  { %v1811_v43 = vsub.f32 0.0, %v3165_v41 }
0x173e   :  { %1813 = vrot.lane.b32.xlu1 %v1811_v43, %s3254_s17 }
0x1780   :  { %v1825_v44 = vpop.permute.xlu2 %1824 }
0x1781   :  { %v1827_v45 = vmul.f32 %v1825_v44, %v1794_v9 }
0x1783   :  { %1829 = vrot.lane.b32.xlu1 %v1827_v45, %s3255_s18 }
0x17b0   :  { %v1814_v46 = vpop.permute.xlu1 %1813 }
0x17b1   :  { %v1816_v47 = vmul.f32 %v1814_v46, %v1759_v30 }
0x17b3   :  { %1818 = vrot.lane.b32.xlu0 %v1816_v47, %s3255_s18 }
0x17f5   :  { %v1830_v51 = vpop.permute.xlu1 %1829 }
0x17f6   :  { %v3952_v52 = vadd.f32 %v3163_v31, %v1830_v51 }
0x17f8   :  { %1861 = vrot.lane.b32.xlu0 %v3952_v52, %s3253_s13 }
0x1825   :  { %v1819_v53 = vpop.permute.xlu0 %1818 }
0x1826   :  { %v3956_v54 = vadd.f32 %v3165_v41, %v1819_v53 }
0x1828   :  { %1836 = vrot.lane.b32.xlu2 %v3956_v54, %s3253_s13 }
0x186a   :  { %v1862_v56 = vpop.permute.xlu0 %1861 }
0x186b   :  { %3012 = vmatmul.msk.f32.vlgmr.msrb.gmra.mxu3 %vm45_vm0, %v1862_v56 }
0x186c   :  { %2429 = vmatpush.msrb.mxu3 %v3790_v24 }
0x186e   :  { %2430 = vmatpush.msrb.mxu3 %v3799_v25 }
0x1870   :  { %2431 = vmatpush.msrb.mxu3 %v3804_v0 }
0x1872   :  { %2432 = vmatpush.msrb.mxu3 %v3811_v26 }
0x1882   :  { %v1837_v57 = vpop.permute.xlu2 %1836 }
0x1883   :  { %3011 = vmatmul.msk.f32.vlgmr.msrb.gmra.mxu2 %vm45_vm0, %v1837_v57 }
0x1884   :  { %2404 = vmatpush.msrb.mxu2 %v3785_v63 }
0x1886   :  { %2405 = vmatpush.msrb.mxu2 %v3822_v42 }
0x1888   :  { %2406 = vmatpush.msrb.mxu2 %v3839_v29 }
0x188a   :  { %2407 = vmatpush.msrb.mxu2 %v3853_v34 }
0x18ee   :  { %v1882_v58 = vpop.f32.mrf.mxu3 }
0x18ef   :  { %v1937_v60 = vadd.f32 %v1882_v58, %v3908_v48  ;;  %v1917_v62 = vadd.f32 %v1882_v58, %v1834_v61 }
0x18f1   :  { %1939 = vrot.lane.b32.xlu2 %v1937_v60, %s3253_s13  ;;  %v3014_v50 = vmul.f32 -1.442695, %v1917_v62 }
0x18f3   :  { %3166 = vpow2.f32 %v3014_v50  ;;  %v1972_v50 = vld [vmem:[#allocation3 + $0x28] sm:$0xff] }
0x18f9   :  { %v3167_v2 = vpop.eup %3166 }
0x18fa   :  { %v1921_v8 = vadd.f32 1.0, %v3167_v2 }
0x18fc   :  { %3168 = vrcp.f32 %v1921_v8  ;;  %v1933_v12 = vand.u32 2147483648, %v1921_v8  ;;  %vm1927_vm4 = vweird.f32 %v1921_v8  ;;  %v1931_v7 = vand.u32 2147483647, %v1921_v8 }
0x18fe   :  { %v1934_v11 = vor.u32 1.1754944e-38, %v1933_v12  ;;  %vm1932_vm6 = vcmp.eq.f32.partialorder %v1931_v7, 8.507059e+37 }
0x1902   :  { %v3169_v1 = vpop.eup %3168 }
0x1903   :  { %v1923_v4 = vmul.f32 %v3169_v1, %v1921_v8  ;;  %vm1928_vm3 = vweird.f32 %v3169_v1 }
0x1904   :  { %vm1929_vm5 = vmor %vm1927_vm4, %vm1928_vm3 }
0x1905   :  { %v1924_v3 = vsub.f32 1.0, %v1923_v4 }
0x1906   :  { %v1857_v59 = vpop.f32.mrf.mxu2 }
0x1907   :  { %v1905_v49 = vadd.f32 %v1857_v59, %v3939_v15  ;;  %v1925_v5 = vmul.f32 %v3169_v1, %v1924_v3  ;;  %v1885_v9 = vadd.f32 %v1857_v59, %v1833_v16  ;;  %v1971_v3 = vld [vmem:[#allocation2 + $0x10] sm:$0xff] }
0x1909   :  { %1907 = vrot.lane.b32.xlu1 %v1905_v49, %s3253_s13  ;;  %v1926_v55 = vadd.f32 %v3169_v1, %v1925_v5  ;;  %v3013_v20 = vmul.f32 -1.442695, %v1885_v9 }
0x190b   :  { %v1930_v13 = vsel %vm1929_vm5, %v3169_v1, %v1926_v55  ;;  %3170 = vpow2.f32 %v3013_v20 }
0x190c   :  { %v1935_v17 = vsel %vm1932_vm6, %v1934_v11, %v1930_v13 }
0x1911   :  { %v3171_v21 = vpop.eup %3170 }
0x1912   :  { %v1889_v22 = vadd.f32 1.0, %v3171_v21 }
0x1914   :  { %3172 = vrcp.f32 %v1889_v22  ;;  %v1901_v32 = vand.u32 2147483648, %v1889_v22  ;;  %vm1895_vm8 = vweird.f32 %v1889_v22  ;;  %v1899_v14 = vand.u32 2147483647, %v1889_v22 }
0x1916   :  { %v1902_v30 = vor.u32 1.1754944e-38, %v1901_v32  ;;  %vm1900_vm10 = vcmp.eq.f32.partialorder %v1899_v14, 8.507059e+37 }
0x191a   :  { %v3173_v23 = vpop.eup %3172 }
0x191b   :  { %v1891_v6 = vmul.f32 %v3173_v23, %v1889_v22  ;;  %vm1896_vm7 = vweird.f32 %v3173_v23 }
0x191c   :  { %vm1897_vm9 = vmor %vm1895_vm8, %vm1896_vm7 }
0x191d   :  { %v1892_v27 = vsub.f32 1.0, %v1891_v6 }
0x191f   :  { %v1893_v10 = vmul.f32 %v3173_v23, %v1892_v27 }
0x1921   :  { %v1894_v28 = vadd.f32 %v3173_v23, %v1893_v10 }
0x1923   :  { %v1898_v33 = vsel %vm1897_vm9, %v3173_v23, %v1894_v28 }
0x1924   :  { %v1903_v36 = vsel %vm1900_vm10, %v1902_v30, %v1898_v33 }
0x194b   :  { %v1940_v18 = vpop.permute.xlu2 %1939 }
0x194c   :  { %v1942_v19 = vmul.f32 %v1940_v18, %v1935_v17 }
0x194e   :  { %1944 = vrot.lane.b32.xlu1 %v1942_v19, %s3253_s13 }
0x197b   :  { %v1908_v35 = vpop.permute.xlu1 %1907 }
0x197c   :  { %v1910_v37 = vmul.f32 %v1908_v35, %v1903_v36 }
0x197e   :  { %1912 = vrot.lane.b32.xlu0 %v1910_v37, %s3253_s13 }
0x19c0   :  { %v1945_v31 = vpop.permute.xlu1 %1944 }
0x19c1   :  { %v1947_v38 = vadd.f32 %v1945_v31, %v1834_v61 }
0x19c3   :  { %3174 = vtanh.f32 %v1947_v38 }
0x19c9   :  { %v3175_v39 = vpop.eup %3174 }
0x19ca   :  { %v1960_v40 = vsub.f32 %v3952_v52, %v3175_v39 }
0x19cc   :  { %1962 = vrot.lane.b32.xlu0 %v1960_v40, %s3254_s17 }
0x19f0   :  { %v1913_v41 = vpop.permute.xlu0 %1912 }
0x19f1   :  { %v1915_v43 = vadd.f32 %v1913_v41, %v1833_v16 }
0x19f3   :  { %3176 = vtanh.f32 %v1915_v43 }
0x19f9   :  { %v3177_v44 = vpop.eup %3176 }
0x19fa   :  { %v1949_v45 = vsub.f32 %v3956_v54, %v3177_v44 }
0x19fc   :  { %1951 = vrot.lane.b32.xlu2 %v1949_v45, %s3254_s17 }
0x1a3e   :  { %v1963_v46 = vpop.permute.xlu0 %1962 }
0x1a3f   :  { %v1965_v47 = vmul.f32 %v1963_v46, %v1935_v17 }
0x1a41   :  { %1967 = vrot.lane.b32.xlu2 %v1965_v47, %s3255_s18 }
0x1a56   :  { %v1952_v51 = vpop.permute.xlu2 %1951 }
0x1a57   :  { %v1954_v53 = vmul.f32 %v1952_v51, %v1903_v36 }
0x1a59   :  { %1956 = vrot.lane.b32.xlu1 %v1954_v53, %s3255_s18 }
0x1a9b   :  { %v1968_v56 = vpop.permute.xlu2 %1967 }
0x1a9c   :  { %v3982_v52 = vadd.f32 %v3175_v39, %v1968_v56 }
0x1a9e   :  { %1999 = vrot.lane.b32.xlu1 %v3982_v52, %s3253_s13 }
0x1acb   :  { %v1957_v57 = vpop.permute.xlu1 %1956 }
0x1acc   :  { %v3986_v58 = vadd.f32 %v3177_v44, %v1957_v57 }
0x1ace   :  { %1974 = vrot.lane.b32.xlu0 %v3986_v58, %s3253_s13 }
0x1b10   :  { %v2000_v54 = vpop.permute.xlu1 %1999 }
0x1b11   :  { %3016 = vmatmul.msk.f32.vlgmr.msrb.gmra.mxu1 %vm45_vm0, %v2000_v54 }
0x1b12   :  { %2567 = vmatpush.msrb.mxu1 %v3790_v24 }
0x1b14   :  { %2568 = vmatpush.msrb.mxu1 %v3799_v25 }
0x1b16   :  { %2569 = vmatpush.msrb.mxu1 %v3804_v0 }
0x1b18   :  { %2570 = vmatpush.msrb.mxu1 %v3811_v26 }
0x1b40   :  { %v1975_v60 = vpop.permute.xlu0 %1974 }
0x1b41   :  { %3015 = vmatmul.msk.f32.vlgmr.msrb.gmra.mxu0 %vm45_vm0, %v1975_v60 }
0x1b42   :  { %2542 = vmatpush.msrb.mxu0 %v3785_v63 }
0x1b44   :  { %2543 = vmatpush.msrb.mxu0 %v3822_v42 }
0x1b46   :  { %2544 = vmatpush.msrb.mxu0 %v3839_v29 }
0x1b48   :  { %2545 = vmatpush.msrb.mxu0 %v3853_v34 }
0x1b8e   :  { %v2020_v59 = vpop.f32.mrf.mxu1 }
0x1b8f   :  { %v2075_v49 = vadd.f32 %v2020_v59, %v3908_v48  ;;  %v2055_v2 = vadd.f32 %v2020_v59, %v1972_v50 }
0x1b91   :  { %2077 = vrot.lane.b32.xlu0 %v2075_v49, %s3253_s13  ;;  %v3018_v8 = vmul.f32 -1.442695, %v2055_v2 }
0x1b93   :  { %3178 = vpow2.f32 %v3018_v8 }
0x1b99   :  { %v3179_v1 = vpop.eup %3178 }
0x1b9a   :  { %v2059_v4 = vadd.f32 1.0, %v3179_v1 }
0x1b9c   :  { %3180 = vrcp.f32 %v2059_v4  ;;  %v2071_v18 = vand.u32 2147483648, %v2059_v4  ;;  %vm2065_vm12 = vweird.f32 %v2059_v4  ;;  %v2069_v19 = vand.u32 2147483647, %v2059_v4 }
0x1b9e   :  { %v2072_v21 = vor.u32 1.1754944e-38, %v2071_v18  ;;  %vm2070_vm13 = vcmp.eq.f32.partialorder %v2069_v19, 8.507059e+37 }
0x1ba2   :  { %v3181_v55 = vpop.eup %3180 }
0x1ba3   :  { %v2061_v7 = vmul.f32 %v3181_v55, %v2059_v4  ;;  %vm2066_vm11 = vweird.f32 %v3181_v55 }
0x1ba4   :  { %vm2067_vm1 = vmor %vm2065_vm12, %vm2066_vm11 }
0x1ba5   :  { %v2062_v13 = vsub.f32 1.0, %v2061_v7 }
0x1ba7   :  { %v2063_v11 = vmul.f32 %v3181_v55, %v2062_v13 }
0x1ba9   :  { %v2064_v17 = vadd.f32 %v3181_v55, %v2063_v11 }
0x1bab   :  { %v2068_v20 = vsel %vm2067_vm1, %v3181_v55, %v2064_v17  ;;  %v2109_v55 = vld [vmem:[#allocation2 + $0x18] sm:$0xff] }
0x1bac   :  { %v2073_v23 = vsel %vm2070_vm13, %v2072_v21, %v2068_v20 }
0x1bbe   :  { %v1995_v61 = vpop.f32.mrf.mxu0 }
0x1bbf   :  { %v2043_v62 = vadd.f32 %v1995_v61, %v3939_v15  ;;  %v2023_v5 = vadd.f32 %v1995_v61, %v1971_v3 }
0x1bc1   :  { %2045 = vrot.lane.b32.xlu2 %v2043_v62, %s3253_s13  ;;  %v3017_v12 = vmul.f32 -1.442695, %v2023_v5 }
0x1bc3   :  { %3182 = vpow2.f32 %v3017_v12 }
0x1bc9   :  { %v3183_v16 = vpop.eup %3182 }
0x1bca   :  { %v2027_v9 = vadd.f32 1.0, %v3183_v16 }
0x1bcc   :  { %3184 = vrcp.f32 %v2027_v9  ;;  %v2039_v33 = vand.u32 2147483648, %v2027_v9  ;;  %vm2033_vm15 = vweird.f32 %v2027_v9  ;;  %v2037_v30 = vand.u32 2147483647, %v2027_v9 }
0x1bce   :  { %v2040_v36 = vor.u32 1.1754944e-38, %v2039_v33  ;;  %vm2038_vm3 = vcmp.eq.f32.partialorder %v2037_v30, 8.507059e+37 }
0x1bd2   :  { %v3185_v27 = vpop.eup %3184 }
0x1bd3   :  { %v2029_v10 = vmul.f32 %v3185_v27, %v2027_v9  ;;  %vm2034_vm14 = vweird.f32 %v3185_v27 }
0x1bd4   :  { %vm2035_vm2 = vmor %vm2033_vm15, %vm2034_vm14 }
0x1bd5   :  { %v2030_v28 = vsub.f32 1.0, %v2029_v10 }
0x1bd7   :  { %v2031_v32 = vmul.f32 %v3185_v27, %v2030_v28 }
0x1bd9   :  { %v2032_v14 = vadd.f32 %v3185_v27, %v2031_v32 }
0x1bdb   :  { %v2036_v35 = vsel %vm2035_vm2, %v3185_v27, %v2032_v14 }
0x1bdc   :  { %v2041_v37 = vsel %vm2038_vm3, %v2040_v36, %v2036_v35 }
0x1c03   :  { %v2078_v22 = vpop.permute.xlu0 %2077 }
0x1c04   :  { %v2080_v6 = vmul.f32 %v2078_v22, %v2073_v23 }
0x1c06   :  { %2082 = vrot.lane.b32.xlu2 %v2080_v6, %s3253_s13 }
0x1c1b   :  { %v2046_v31 = vpop.permute.xlu2 %2045 }
0x1c1c   :  { %v2048_v38 = vmul.f32 %v2046_v31, %v2041_v37 }
0x1c1e   :  { %2050 = vrot.lane.b32.xlu1 %v2048_v38, %s3253_s13 }
0x1c60   :  { %v2083_v39 = vpop.permute.xlu2 %2082 }
0x1c61   :  { %v2085_v40 = vadd.f32 %v2083_v39, %v1972_v50 }
0x1c63   :  { %3186 = vtanh.f32 %v2085_v40 }
0x1c69   :  { %v3187_v41 = vpop.eup %3186 }
0x1c6a   :  { %v2098_v43 = vsub.f32 %v3982_v52, %v3187_v41 }
0x1c6c   :  { %2100 = vrot.lane.b32.xlu1 %v2098_v43, %s3254_s17 }
0x1c90   :  { %v2051_v44 = vpop.permute.xlu1 %2050 }
0x1c91   :  { %v2053_v45 = vadd.f32 %v2051_v44, %v1971_v3 }
0x1c93   :  { %3188 = vtanh.f32 %v2053_v45 }
0x1c99   :  { %v3189_v46 = vpop.eup %3188 }
0x1c9a   :  { %v2087_v47 = vsub.f32 %v3986_v58, %v3189_v46 }
0x1c9c   :  { %2089 = vrot.lane.b32.xlu0 %v2087_v47, %s3254_s17 }
0x1cde   :  { %v2101_v51 = vpop.permute.xlu1 %2100 }
0x1cdf   :  { %v2103_v53 = vmul.f32 %v2101_v51, %v2073_v23 }
0x1ce1   :  { %2105 = vrot.lane.b32.xlu0 %v2103_v53, %s3255_s18 }
0x1d0e   :  { %v2090_v56 = vpop.permute.xlu0 %2089 }
0x1d0f   :  { %v2092_v57 = vmul.f32 %v2090_v56, %v2041_v37 }
0x1d11   :  { %2094 = vrot.lane.b32.xlu2 %v2092_v57, %s3255_s18 }
0x1d53   :  { %v2106_v54 = vpop.permute.xlu0 %2105 }
0x1d54   :  { %v4012_v52 = vadd.f32 %v3187_v41, %v2106_v54 }
0x1d56   :  { %2137 = vrot.lane.b32.xlu2 %v4012_v52, %s3253_s13 }
0x1d6b   :  { %v2095_v60 = vpop.permute.xlu2 %2094 }
0x1d6c   :  { %v4016_v59 = vadd.f32 %v3189_v46, %v2095_v60 }
0x1d6e   :  { %2112 = vrot.lane.b32.xlu1 %v4016_v59, %s3253_s13 }
0x1db0   :  { %v2138_v58 = vpop.permute.xlu2 %2137 }
0x1db1   :  { %3020 = vmatmul.msk.f32.vlgmr.msra.gmra.mxu3 %vm45_vm0, %v2138_v58  ;;  %v2248_v58 = vld [vmem:[#allocation3 + $0x18] sm:$0xff] }
0x1db2   :  { %2705 = vmatpush.msra.mxu3 %v3790_v24 }
0x1db4   :  { %2706 = vmatpush.msra.mxu3 %v3799_v25 }
0x1db6   :  { %2707 = vmatpush.msra.mxu3 %v3804_v0 }
0x1db8   :  { %2708 = vmatpush.msra.mxu3 %v3811_v26  ;;  %v2110_v26 = vld [vmem:[#allocation3 + $0x20] sm:$0xff] }
0x1de0   :  { %v2113_v49 = vpop.permute.xlu1 %2112 }
0x1de1   :  { %3019 = vmatmul.msk.f32.vlgmr.msra.gmra.mxu2 %vm45_vm0, %v2113_v49 }
0x1de2   :  { %2680 = vmatpush.msra.mxu2 %v3785_v63 }
0x1de4   :  { %2681 = vmatpush.msra.mxu2 %v3822_v42 }
0x1de6   :  { %2682 = vmatpush.msra.mxu2 %v3839_v29 }
0x1de8   :  { %2683 = vmatpush.msra.mxu2 %v3853_v34 }
0x1e34   :  { %v2158_v61 = vpop.f32.mrf.mxu3 }
0x1e35   :  { %v2213_v24 = vadd.f32 %v2158_v61, %v3908_v48  ;;  %v2193_v62 = vadd.f32 %v2158_v61, %v2110_v26 }
0x1e37   :  { %2215 = vrot.lane.b32.xlu1 %v2213_v24, %s3253_s13  ;;  %v3022_v50 = vmul.f32 -1.442695, %v2193_v62 }
0x1e39   :  { %3190 = vpow2.f32 %v3022_v50 }
0x1e3f   :  { %v3191_v63 = vpop.eup %3190 }
0x1e40   :  { %v2197_v42 = vadd.f32 1.0, %v3191_v63 }
0x1e42   :  { %3192 = vrcp.f32 %v2197_v42  ;;  %v2209_v4 = vand.u32 2147483648, %v2197_v42  ;;  %vm2203_vm5 = vweird.f32 %v2197_v42  ;;  %v2207_v3 = vand.u32 2147483647, %v2197_v42 }
0x1e44   :  { %v2210_v12 = vor.u32 1.1754944e-38, %v2209_v4  ;;  %vm2208_vm7 = vcmp.eq.f32.partialorder %v2207_v3, 8.507059e+37 }
0x1e48   :  { %v3193_v29 = vpop.eup %3192 }
0x1e49   :  { %v2199_v2 = vmul.f32 %v3193_v29, %v2197_v42  ;;  %vm2204_vm4 = vweird.f32 %v3193_v29 }
0x1e4a   :  { %vm2205_vm6 = vmor %vm2203_vm5, %vm2204_vm4 }
0x1e4b   :  { %v2200_v34 = vsub.f32 1.0, %v2199_v2 }
0x1e4d   :  { %v2201_v8 = vmul.f32 %v3193_v29, %v2200_v34  ;;  %v2247_v34 = vld [vmem:[#allocation2 + $0x20] sm:$0xff] }
0x1e4f   :  { %v2202_v1 = vadd.f32 %v3193_v29, %v2201_v8 }
0x1e51   :  { %v2206_v5 = vsel %vm2205_vm6, %v3193_v29, %v2202_v1 }
0x1e52   :  { %v2211_v16 = vsel %vm2208_vm7, %v2210_v12, %v2206_v5 }
0x1e64   :  { %v2133_v25 = vpop.f32.mrf.mxu2 }
0x1e65   :  { %v2181_v0 = vadd.f32 %v2133_v25, %v3939_v15  ;;  %v2161_v7 = vadd.f32 %v2133_v25, %v2109_v55 }
0x1e67   :  { %2183 = vrot.lane.b32.xlu0 %v2181_v0, %s3253_s13  ;;  %v3021_v9 = vmul.f32 -1.442695, %v2161_v7 }
0x1e69   :  { %3194 = vpow2.f32 %v3021_v9 }
0x1e6f   :  { %v3195_v17 = vpop.eup %3194 }
0x1e70   :  { %v2165_v18 = vadd.f32 1.0, %v3195_v17 }
0x1e72   :  { %3196 = vrcp.f32 %v2165_v18  ;;  %v2177_v6 = vand.u32 2147483648, %v2165_v18  ;;  %vm2171_vm9 = vweird.f32 %v2165_v18  ;;  %v2175_v27 = vand.u32 2147483647, %v2165_v18 }
0x1e74   :  { %v2178_v28 = vor.u32 1.1754944e-38, %v2177_v6  ;;  %vm2176_vm11 = vcmp.eq.f32.partialorder %v2175_v27, 8.507059e+37 }
0x1e78   :  { %v3197_v19 = vpop.eup %3196 }
0x1e79   :  { %v2167_v20 = vmul.f32 %v3197_v19, %v2165_v18  ;;  %vm2172_vm8 = vweird.f32 %v3197_v19 }
0x1e7a   :  { %vm2173_vm10 = vmor %vm2171_vm9, %vm2172_vm8 }
0x1e7b   :  { %v2168_v21 = vsub.f32 1.0, %v2167_v20 }
0x1e7d   :  { %v2169_v22 = vmul.f32 %v3197_v19, %v2168_v21 }
0x1e7f   :  { %v2170_v23 = vadd.f32 %v3197_v19, %v2169_v22 }
0x1e81   :  { %v2174_v10 = vsel %vm2173_vm10, %v3197_v19, %v2170_v23 }
0x1e82   :  { %v2179_v14 = vsel %vm2176_vm11, %v2178_v28, %v2174_v10 }
0x1ea9   :  { %v2216_v13 = vpop.permute.xlu1 %2215 }
0x1eaa   :  { %v2218_v11 = vmul.f32 %v2216_v13, %v2211_v16 }
0x1eac   :  { %2220 = vrot.lane.b32.xlu0 %v2218_v11, %s3253_s13 }
0x1ed9   :  { %v2184_v32 = vpop.permute.xlu0 %2183 }
0x1eda   :  { %v2186_v33 = vmul.f32 %v2184_v32, %v2179_v14 }
0x1edc   :  { %2188 = vrot.lane.b32.xlu2 %v2186_v33, %s3253_s13 }
0x1f1e   :  { %v2221_v30 = vpop.permute.xlu0 %2220 }
0x1f1f   :  { %v2223_v35 = vadd.f32 %v2221_v30, %v2110_v26 }
0x1f21   :  { %3198 = vtanh.f32 %v2223_v35 }
0x1f27   :  { %v3199_v36 = vpop.eup %3198 }
0x1f28   :  { %v2236_v37 = vsub.f32 %v4012_v52, %v3199_v36 }
0x1f2a   :  { %2238 = vrot.lane.b32.xlu2 %v2236_v37, %s3254_s17 }
0x1f36   :  { %v2189_v31 = vpop.permute.xlu2 %2188 }
0x1f37   :  { %v2191_v38 = vadd.f32 %v2189_v31, %v2109_v55 }
0x1f39   :  { %3200 = vtanh.f32 %v2191_v38 }
0x1f3f   :  { %v3201_v39 = vpop.eup %3200 }
0x1f40   :  { %v2225_v40 = vsub.f32 %v4016_v59, %v3201_v39 }
0x1f42   :  { %2227 = vrot.lane.b32.xlu1 %v2225_v40, %s3254_s17 }
0x1f84   :  { %v2239_v41 = vpop.permute.xlu2 %2238 }
0x1f85   :  { %v2241_v43 = vmul.f32 %v2239_v41, %v2211_v16 }
0x1f87   :  { %2243 = vrot.lane.b32.xlu1 %v2241_v43, %s3255_s18 }
0x1fb4   :  { %v2228_v44 = vpop.permute.xlu1 %2227 }
0x1fb5   :  { %v2230_v45 = vmul.f32 %v2228_v44, %v2179_v14 }
0x1fb7   :  { %2232 = vrot.lane.b32.xlu0 %v2230_v45, %s3255_s18 }
0x1ff9   :  { %v2244_v46 = vpop.permute.xlu1 %2243 }
0x1ffa   :  { %v4042_v47 = vadd.f32 %v3199_v36, %v2244_v46 }
0x1ffc   :  { %2275 = vrot.lane.b32.xlu0 %v4042_v47, %s3253_s13 }
0x2029   :  { %v2233_v51 = vpop.permute.xlu0 %2232 }
0x202a   :  { %v4046_v53 = vadd.f32 %v3201_v39, %v2233_v51 }
0x202c   :  { %2250 = vrot.lane.b32.xlu2 %v4046_v53, %s3253_s13 }
0x206e   :  { %v2276_v56 = vpop.permute.xlu0 %2275 }
0x206f   :  { %3024 = vmatmul.msk.f32.vlgmr.msra.gmra.mxu1 %vm45_vm0, %v2276_v56  ;;  %v2386_v56 = vld [vmem:[#allocation3 + $0x10] sm:$0xff] }
0x2086   :  { %v2251_v57 = vpop.permute.xlu2 %2250 }
0x2087   :  { %3023 = vmatmul.msk.f32.vlgmr.msra.gmra.mxu0 %vm45_vm0, %v2251_v57 }
0x20ec   :  { %v2296_v54 = vpop.f32.mrf.mxu1 }
0x20ed   :  { %v2351_v52 = vadd.f32 %v2296_v54, %v3908_v48  ;;  %v2331_v49 = vadd.f32 %v2296_v54, %v2248_v58 }
0x20ef   :  { %2353 = vrot.lane.b32.xlu2 %v2351_v52, %s3253_s13  ;;  %v3026_v61 = vmul.f32 -1.442695, %v2331_v49 }
0x20f1   :  { %3202 = vpow2.f32 %v3026_v61 }
0x20f7   :  { %v3203_v24 = vpop.eup %3202 }
0x20f8   :  { %v2335_v25 = vadd.f32 1.0, %v3203_v24 }
0x20fa   :  { %3204 = vrcp.f32 %v2335_v25  ;;  %v2347_v42 = vand.u32 2147483648, %v2335_v25  ;;  %vm2341_vm1 = vweird.f32 %v2335_v25  ;;  %v2345_v29 = vand.u32 2147483647, %v2335_v25 }
0x20fc   :  { %v2348_v8 = vor.u32 1.1754944e-38, %v2347_v42  ;;  %vm2346_vm14 = vcmp.eq.f32.partialorder %v2345_v29, 8.507059e+37 }
0x2100   :  { %v3205_v0 = vpop.eup %3204 }
0x2101   :  { %v2337_v26 = vmul.f32 %v3205_v0, %v2335_v25  ;;  %vm2342_vm12 = vweird.f32 %v3205_v0 }
0x2102   :  { %vm2343_vm13 = vmor %vm2341_vm1, %vm2342_vm12 }
0x2103   :  { %v2338_v62 = vsub.f32 1.0, %v2337_v26 }
0x2104   :  { %v2271_v60 = vpop.f32.mrf.mxu0 }
0x2105   :  { %v2319_v59 = vadd.f32 %v2271_v60, %v3939_v15  ;;  %v2339_v50 = vmul.f32 %v3205_v0, %v2338_v62  ;;  %v2299_v1 = vadd.f32 %v2271_v60, %v2247_v34 }
0x2107   :  { %2321 = vrot.lane.b32.xlu1 %v2319_v59, %s3253_s13  ;;  %v2340_v63 = vadd.f32 %v3205_v0, %v2339_v50  ;;  %v3025_v55 = vmul.f32 -1.442695, %v2299_v1  ;;  %v2385_v59 = vld [vmem:[#allocation2 + $0x28] sm:$0xff] }
0x2109   :  { %v2344_v2 = vsel %vm2343_vm13, %v3205_v0, %v2340_v63  ;;  %3206 = vpow2.f32 %v3025_v55 }
0x210a   :  { %v2349_v4 = vsel %vm2346_vm14, %v2348_v8, %v2344_v2 }
0x210f   :  { %v3207_v12 = vpop.eup %3206 }
0x2110   :  { %v2303_v7 = vadd.f32 1.0, %v3207_v12 }
0x2112   :  { %3208 = vrcp.f32 %v2303_v7  ;;  %v2315_v18 = vand.u32 2147483648, %v2303_v7  ;;  %vm2309_vm2 = vweird.f32 %v2303_v7  ;;  %v2313_v19 = vand.u32 2147483647, %v2303_v7 }
0x2114   :  { %v2316_v21 = vor.u32 1.1754944e-38, %v2315_v18  ;;  %vm2314_vm4 = vcmp.eq.f32.partialorder %v2313_v19, 8.507059e+37 }
0x2118   :  { %v3209_v13 = vpop.eup %3208 }
0x2119   :  { %v2305_v16 = vmul.f32 %v3209_v13, %v2303_v7  ;;  %vm2310_vm15 = vweird.f32 %v3209_v13 }
0x211a   :  { %vm2311_vm3 = vmor %vm2309_vm2, %vm2310_vm15 }
0x211b   :  { %v2306_v11 = vsub.f32 1.0, %v2305_v16 }
0x211d   :  { %v2307_v9 = vmul.f32 %v3209_v13, %v2306_v11 }
0x211f   :  { %v2308_v17 = vadd.f32 %v3209_v13, %v2307_v9 }
0x2121   :  { %v2312_v20 = vsel %vm2311_vm3, %v3209_v13, %v2308_v17 }
0x2122   :  { %v2317_v23 = vsel %vm2314_vm4, %v2316_v21, %v2312_v20 }
0x2149   :  { %v2354_v3 = vpop.permute.xlu2 %2353 }
0x214a   :  { %v2356_v5 = vmul.f32 %v2354_v3, %v2349_v4 }
0x214c   :  { %2358 = vrot.lane.b32.xlu1 %v2356_v5, %s3253_s13 }
0x2179   :  { %v2322_v22 = vpop.permute.xlu1 %2321 }
0x217a   :  { %v2324_v6 = vmul.f32 %v2322_v22, %v2317_v23 }
0x217c   :  { %2326 = vrot.lane.b32.xlu0 %v2324_v6, %s3253_s13 }
0x21be   :  { %v2359_v27 = vpop.permute.xlu1 %2358 }
0x21bf   :  { %v2361_v10 = vadd.f32 %v2359_v27, %v2248_v58 }
0x21c1   :  { %3210 = vtanh.f32 %v2361_v10 }
0x21c7   :  { %v3211_v28 = vpop.eup %3210 }
0x21c8   :  { %v2374_v32 = vsub.f32 %v4042_v47, %v3211_v28 }
0x21ca   :  { %2376 = vrot.lane.b32.xlu0 %v2374_v32, %s3254_s17 }
0x21ee   :  { %v2327_v14 = vpop.permute.xlu0 %2326 }
0x21ef   :  { %v2329_v33 = vadd.f32 %v2327_v14, %v2247_v34 }
0x21f1   :  { %3212 = vtanh.f32 %v2329_v33 }
0x21f7   :  { %v3213_v30 = vpop.eup %3212 }
0x21f8   :  { %v2363_v35 = vsub.f32 %v4046_v53, %v3213_v30 }
0x21fa   :  { %2365 = vrot.lane.b32.xlu2 %v2363_v35, %s3254_s17 }
0x223c   :  { %v2377_v36 = vpop.permute.xlu0 %2376 }
0x223d   :  { %v2379_v37 = vmul.f32 %v2377_v36, %v2349_v4 }
0x223f   :  { %2381 = vrot.lane.b32.xlu2 %v2379_v37, %s3255_s18 }
0x2254   :  { %v2366_v31 = vpop.permute.xlu2 %2365 }
0x2255   :  { %v2368_v38 = vmul.f32 %v2366_v31, %v2317_v23 }
0x2257   :  { %2370 = vrot.lane.b32.xlu1 %v2368_v38, %s3255_s18 }
0x2299   :  { %v2382_v39 = vpop.permute.xlu2 %2381 }
0x229a   :  { %v4064_v40 = vadd.f32 %v3211_v28, %v2382_v39 }
0x229c   :  { %2413 = vrot.lane.b32.xlu1 %v4064_v40, %s3253_s13 }
0x22c9   :  { %v2371_v41 = vpop.permute.xlu1 %2370 }
0x22ca   :  { %v4068_v43 = vadd.f32 %v3213_v30, %v2371_v41 }
0x22cc   :  { %2388 = vrot.lane.b32.xlu0 %v4068_v43, %s3253_s13 }
0x230e   :  { %v2414_v44 = vpop.permute.xlu1 %2413 }
0x230f   :  { %3028 = vmatmul.msk.f32.vlgmr.msrb.gmra.mxu3 %vm45_vm0, %v2414_v44  ;;  %v2524_v44 = vld [vmem:[#allocation3 + $0x8] sm:$0xff] }
0x233e   :  { %v2389_v45 = vpop.permute.xlu0 %2388 }
0x233f   :  { %3027 = vmatmul.msk.f32.vlgmr.msrb.gmra.mxu2 %vm45_vm0, %v2389_v45 }
0x2392   :  { %v2434_v46 = vpop.f32.mrf.mxu3 }
0x2393   :  { %v2489_v47 = vadd.f32 %v2434_v46, %v3908_v48  ;;  %v2469_v57 = vadd.f32 %v2434_v46, %v2386_v56 }
0x2395   :  { %2491 = vrot.lane.b32.xlu0 %v2489_v47, %s3253_s13  ;;  %v3030_v54 = vmul.f32 -1.442695, %v2469_v57 }
0x2397   :  { %3214 = vpow2.f32 %v3030_v54 }
0x239d   :  { %v3215_v52 = vpop.eup %3214 }
0x239e   :  { %v2473_v60 = vadd.f32 1.0, %v3215_v52 }
0x23a0   :  { %3216 = vrcp.f32 %v2473_v60  ;;  %v2485_v63 = vand.u32 2147483648, %v2473_v60  ;;  %vm2479_vm6 = vweird.f32 %v2473_v60  ;;  %v2483_v42 = vand.u32 2147483647, %v2473_v60 }
0x23a2   :  { %v2486_v2 = vor.u32 1.1754944e-38, %v2485_v63  ;;  %vm2484_vm8 = vcmp.eq.f32.partialorder %v2483_v42, 8.507059e+37 }
0x23a6   :  { %v3217_v49 = vpop.eup %3216 }
0x23a7   :  { %v2475_v24 = vmul.f32 %v3217_v49, %v2473_v60  ;;  %vm2480_vm5 = vweird.f32 %v3217_v49 }
0x23a8   :  { %vm2481_vm7 = vmor %vm2479_vm6, %vm2480_vm5 }
0x23a9   :  { %v2476_v25 = vsub.f32 1.0, %v2475_v24 }
0x23ab   :  { %v2477_v26 = vmul.f32 %v3217_v49, %v2476_v25 }
0x23ad   :  { %v2478_v50 = vadd.f32 %v3217_v49, %v2477_v26 }
0x23af   :  { %v2482_v29 = vsel %vm2481_vm7, %v3217_v49, %v2478_v50  ;;  %v2523_v49 = vld [vmem:[#allocation2 + $0x30] sm:$0xff] }
0x23b0   :  { %v2487_v8 = vsel %vm2484_vm8, %v2486_v2, %v2482_v29 }
0x23c2   :  { %v2409_v51 = vpop.f32.mrf.mxu2 }
0x23c3   :  { %v2457_v53 = vadd.f32 %v2409_v51, %v3939_v15  ;;  %v2437_v58 = vadd.f32 %v2409_v51, %v2385_v59 }
0x23c5   :  { %2459 = vrot.lane.b32.xlu2 %v2457_v53, %s3253_s13  ;;  %v3029_v61 = vmul.f32 -1.442695, %v2437_v58 }
0x23c7   :  { %3218 = vpow2.f32 %v3029_v61 }
0x23cd   :  { %v3219_v0 = vpop.eup %3218 }
0x23ce   :  { %v2441_v62 = vadd.f32 1.0, %v3219_v0 }
0x23d0   :  { %3220 = vrcp.f32 %v2441_v62  ;;  %v2453_v7 = vand.u32 2147483648, %v2441_v62  ;;  %vm2447_vm10 = vweird.f32 %v2441_v62  ;;  %v2451_v13 = vand.u32 2147483647, %v2441_v62 }
0x23d2   :  { %v2454_v11 = vor.u32 1.1754944e-38, %v2453_v7  ;;  %vm2452_vm12 = vcmp.eq.f32.partialorder %v2451_v13, 8.507059e+37 }
0x23d6   :  { %v3221_v4 = vpop.eup %3220 }
0x23d7   :  { %v2443_v3 = vmul.f32 %v3221_v4, %v2441_v62  ;;  %vm2448_vm9 = vweird.f32 %v3221_v4 }
0x23d8   :  { %vm2449_vm11 = vmor %vm2447_vm10, %vm2448_vm9 }
0x23d9   :  { %v2444_v5 = vsub.f32 1.0, %v2443_v3 }
0x23db   :  { %v2445_v55 = vmul.f32 %v3221_v4, %v2444_v5 }
0x23dd   :  { %v2446_v12 = vadd.f32 %v3221_v4, %v2445_v55 }
0x23df   :  { %v2450_v16 = vsel %vm2449_vm11, %v3221_v4, %v2446_v12 }
0x23e0   :  { %v2455_v9 = vsel %vm2452_vm12, %v2454_v11, %v2450_v16 }
0x2407   :  { %v2492_v34 = vpop.permute.xlu0 %2491 }
0x2408   :  { %v2494_v1 = vmul.f32 %v2492_v34, %v2487_v8 }
0x240a   :  { %2496 = vrot.lane.b32.xlu2 %v2494_v1, %s3253_s13 }
0x241f   :  { %v2460_v17 = vpop.permute.xlu2 %2459 }
0x2420   :  { %v2462_v18 = vmul.f32 %v2460_v17, %v2455_v9 }
0x2422   :  { %2464 = vrot.lane.b32.xlu1 %v2462_v18, %s3253_s13 }
0x2464   :  { %v2497_v19 = vpop.permute.xlu2 %2496 }
0x2465   :  { %v2499_v20 = vadd.f32 %v2497_v19, %v2386_v56 }
0x2467   :  { %3222 = vtanh.f32 %v2499_v20 }
0x246d   :  { %v3223_v21 = vpop.eup %3222 }
0x246e   :  { %v2512_v22 = vsub.f32 %v4064_v40, %v3223_v21 }
0x2470   :  { %2514 = vrot.lane.b32.xlu1 %v2512_v22, %s3254_s17 }
0x2494   :  { %v2465_v23 = vpop.permute.xlu1 %2464 }
0x2495   :  { %v2467_v6 = vadd.f32 %v2465_v23, %v2385_v59 }
0x2497   :  { %3224 = vtanh.f32 %v2467_v6 }
0x249d   :  { %v3225_v27 = vpop.eup %3224 }
0x249e   :  { %v2501_v10 = vsub.f32 %v4068_v43, %v3225_v27 }
0x24a0   :  { %2503 = vrot.lane.b32.xlu0 %v2501_v10, %s3254_s17 }
0x24e2   :  { %v2515_v28 = vpop.permute.xlu1 %2514 }
0x24e3   :  { %v2517_v32 = vmul.f32 %v2515_v28, %v2487_v8 }
0x24e5   :  { %2519 = vrot.lane.b32.xlu0 %v2517_v32, %s3255_s18 }
0x2512   :  { %v2504_v14 = vpop.permute.xlu0 %2503 }
0x2513   :  { %v2506_v33 = vmul.f32 %v2504_v14, %v2455_v9 }
0x2515   :  { %2508 = vrot.lane.b32.xlu2 %v2506_v33, %s3255_s18 }
0x2557   :  { %v2520_v30 = vpop.permute.xlu0 %2519 }
0x2558   :  { %v4086_v35 = vadd.f32 %v3223_v21, %v2520_v30 }
0x255a   :  { %2551 = vrot.lane.b32.xlu2 %v4086_v35, %s3253_s13 }
0x256f   :  { %v2509_v36 = vpop.permute.xlu2 %2508 }
0x2570   :  { %v4090_v37 = vadd.f32 %v3225_v27, %v2509_v36 }
0x2572   :  { %2526 = vrot.lane.b32.xlu1 %v4090_v37, %s3253_s13 }
0x25b4   :  { %v2552_v31 = vpop.permute.xlu2 %2551 }
0x25b5   :  { %3032 = vmatmul.msk.f32.vlgmr.msrb.gmra.mxu1 %vm45_vm0, %v2552_v31  ;;  %v2662_v31 = vld [vmem:[#allocation3] sm:$0xff] }
0x25e4   :  { %v2527_v38 = vpop.permute.xlu1 %2526 }
0x25e5   :  { %3031 = vmatmul.msk.f32.vlgmr.msrb.gmra.mxu0 %vm45_vm0, %v2527_v38 }
0x2632   :  { %v2572_v39 = vpop.f32.mrf.mxu1 }
0x2633   :  { %v2627_v40 = vadd.f32 %v2572_v39, %v3908_v48  ;;  %v2607_v45 = vadd.f32 %v2572_v39, %v2524_v44 }
0x2635   :  { %2629 = vrot.lane.b32.xlu1 %v2627_v40, %s3253_s13  ;;  %v3034_v46 = vmul.f32 -1.442695, %v2607_v45 }
0x2637   :  { %3226 = vpow2.f32 %v3034_v46 }
0x263d   :  { %v3227_v47 = vpop.eup %3226 }
0x263e   :  { %v2611_v51 = vadd.f32 1.0, %v3227_v47 }
0x2640   :  { %3228 = vrcp.f32 %v2611_v51  ;;  %v2623_v60 = vand.u32 2147483648, %v2611_v51  ;;  %vm2617_vm13 = vweird.f32 %v2611_v51  ;;  %v2621_v59 = vand.u32 2147483647, %v2611_v51 }
0x2642   :  { %v2624_v61 = vor.u32 1.1754944e-38, %v2623_v60  ;;  %vm2622_vm15 = vcmp.eq.f32.partialorder %v2621_v59, 8.507059e+37 }
0x2646   :  { %v3229_v53 = vpop.eup %3228 }
0x2647   :  { %v2613_v56 = vmul.f32 %v3229_v53, %v2611_v51  ;;  %vm2618_vm1 = vweird.f32 %v3229_v53 }
0x2648   :  { %vm2619_vm14 = vmor %vm2617_vm13, %vm2618_vm1  ;;  %vm2863_vm13 = vcmask 64512  }
0x2649   :  { %v2614_v57 = vsub.f32 1.0, %v2613_v56 }
0x264b   :  { %v2615_v54 = vmul.f32 %v3229_v53, %v2614_v57 }
0x264d   :  { %v2616_v52 = vadd.f32 %v3229_v53, %v2615_v54 }
0x264f   :  { %v2620_v58 = vsel %vm2619_vm14, %v3229_v53, %v2616_v52  ;;  %v2661_v53 = vld [vmem:[#allocation2 + $0x38] sm:$0xff] }
0x2650   :  { %v2625_v0 = vsel %vm2622_vm15, %v2624_v61, %v2620_v58 }
0x2662   :  { %v2547_v41 = vpop.f32.mrf.mxu0 }
0x2663   :  { %v2595_v43 = vadd.f32 %v2547_v41, %v3939_v15  ;;  %v2575_v24 = vadd.f32 %v2547_v41, %v2523_v49 }
0x2665   :  { %2597 = vrot.lane.b32.xlu0 %v2595_v43, %s3253_s13  ;;  %v3033_v62 = vmul.f32 -1.442695, %v2575_v24 }
0x2667   :  { %3230 = vpow2.f32 %v3033_v62 }
0x266d   :  { %v3231_v50 = vpop.eup %3230 }
0x266e   :  { %v2579_v63 = vadd.f32 1.0, %v3231_v50 }
0x2670   :  { %3232 = vrcp.f32 %v2579_v63  ;;  %v2591_v1 = vand.u32 2147483648, %v2579_v63  ;;  %vm2585_vm3 = vweird.f32 %v2579_v63  ;;  %v2589_v4 = vand.u32 2147483647, %v2579_v63 }
0x2672   :  { %v2592_v5 = vor.u32 1.1754944e-38, %v2591_v1  ;;  %vm2590_vm5 = vcmp.eq.f32.partialorder %v2589_v4, 8.507059e+37 }
0x2676   :  { %v3233_v42 = vpop.eup %3232 }
0x2677   :  { %v2581_v29 = vmul.f32 %v3233_v42, %v2579_v63  ;;  %vm2586_vm2 = vweird.f32 %v3233_v42 }
0x2678   :  { %vm2587_vm4 = vmor %vm2585_vm3, %vm2586_vm2 }
0x2679   :  { %v2582_v2 = vsub.f32 1.0, %v2581_v29 }
0x267b   :  { %v2583_v34 = vmul.f32 %v3233_v42, %v2582_v2 }
0x267d   :  { %v2584_v8 = vadd.f32 %v3233_v42, %v2583_v34 }
0x267f   :  { %v2588_v3 = vsel %vm2587_vm4, %v3233_v42, %v2584_v8 }
0x2680   :  { %v2593_v12 = vsel %vm2590_vm5, %v2592_v5, %v2588_v3 }
0x26a7   :  { %v2630_v25 = vpop.permute.xlu1 %2629 }
0x26a8   :  { %v2632_v26 = vmul.f32 %v2630_v25, %v2625_v0 }
0x26aa   :  { %2634 = vrot.lane.b32.xlu0 %v2632_v26, %s3253_s13 }
0x26d7   :  { %v2598_v55 = vpop.permute.xlu0 %2597 }
0x26d8   :  { %v2600_v7 = vmul.f32 %v2598_v55, %v2593_v12 }
0x26da   :  { %2602 = vrot.lane.b32.xlu2 %v2600_v7, %s3253_s13 }
0x271c   :  { %v2635_v13 = vpop.permute.xlu0 %2634 }
0x271d   :  { %v2637_v16 = vadd.f32 %v2635_v13, %v2524_v44 }
0x271f   :  { %3234 = vtanh.f32 %v2637_v16 }
0x2725   :  { %v3235_v11 = vpop.eup %3234 }
0x2726   :  { %v2650_v9 = vsub.f32 %v4086_v35, %v3235_v11 }
0x2728   :  { %2652 = vrot.lane.b32.xlu2 %v2650_v9, %s3254_s17 }
0x2734   :  { %v2603_v17 = vpop.permute.xlu2 %2602 }
0x2735   :  { %v2605_v18 = vadd.f32 %v2603_v17, %v2523_v49 }
0x2737   :  { %3236 = vtanh.f32 %v2605_v18 }
0x273d   :  { %v3237_v19 = vpop.eup %3236 }
0x273e   :  { %v2639_v20 = vsub.f32 %v4090_v37, %v3237_v19 }
0x2740   :  { %2641 = vrot.lane.b32.xlu1 %v2639_v20, %s3254_s17  ;;  %v3041_v20 = vld [vmem:[%s4170_s6 + $0x30] sm:$0xff] }
0x2782   :  { %v2653_v21 = vpop.permute.xlu2 %2652 }
0x2783   :  { %v2655_v22 = vmul.f32 %v2653_v21, %v2625_v0  ;;  %v3040_v21 = vld [vmem:[%s4170_s6 + $0x28] sm:$0xff] }
0x2785   :  { %2657 = vrot.lane.b32.xlu1 %v2655_v22, %s3255_s18  ;;  %v3039_v22 = vld [vmem:[%s4170_s6 + $0x20] sm:$0xff] }
0x27b2   :  { %v2642_v23 = vpop.permute.xlu1 %2641 }
0x27b3   :  { %v2644_v6 = vmul.f32 %v2642_v23, %v2593_v12 }
0x27b5   :  { %2646 = vrot.lane.b32.xlu0 %v2644_v6, %s3255_s18 }
0x27f7   :  { %v2658_v27 = vpop.permute.xlu1 %2657 }
0x27f8   :  { %v4108_v10 = vadd.f32 %v3235_v11, %v2658_v27  ;;  %v2802_v27 = vld [vmem:[%s4170_s6 + $0x18] sm:$0xff] }
0x27f9   :  { %2850 = vmatpush.msra.mxu1 %v2802_v27 }
0x27fa   :  { %2689 = vrot.lane.b32.xlu0 %v4108_v10, %s3253_s13 }
0x2827   :  { %v2647_v28 = vpop.permute.xlu0 %2646 }
0x2828   :  { %v4112_v32 = vadd.f32 %v3237_v19, %v2647_v28  ;;  %v3042_v19 = vld [vmem:[%s4170_s6 + $0x38] sm:$0xff]  ;;  %v2800_v28 = vld [vmem:[%s4170_s6 + $0x8] sm:$0xff] }
0x2829   :  { %2825 = vmatpush.msra.mxu0 %v3042_v19 }
0x282a   :  { %2664 = vrot.lane.b32.xlu2 %v4112_v32, %s3253_s13 }
0x282b   :  { %2826 = vmatpush.msra.mxu0 %v3041_v20 }
0x282d   :  { %2827 = vmatpush.msra.mxu0 %v3040_v21 }
0x282f   :  { %2828 = vmatpush.msra.mxu0 %v3039_v22 }
0x286c   :  { %v2690_v14 = vpop.permute.xlu0 %2689 }
0x286d   :  { %3036 = vmatmul.msk.f32.vlgmr.msra.gmra.mxu3 %vm45_vm0, %v2690_v14 }
0x2884   :  { %v2665_v33 = vpop.permute.xlu2 %2664 }
0x2885   :  { %3035 = vmatmul.msk.f32.vlgmr.msra.gmra.mxu2 %vm45_vm0, %v2665_v33 }
0x28f0   :  { %v2710_v30 = vpop.f32.mrf.mxu3 }
0x28f1   :  { %v2765_v35 = vadd.f32 %v2710_v30, %v3908_v48  ;;  %v2745_v38 = vadd.f32 %v2710_v30, %v2662_v31  ;;  %v3057_v30 = vld [vmem:[%s4171_s7] ss:$0 sm:$0xff] }
0x28f3   :  { %2767 = vrot.lane.b32.xlu2 %v2765_v35, %s3253_s13  ;;  %v3038_v39 = vmul.f32 -1.442695, %v2745_v38 }
0x28f5   :  { %3238 = vpow2.f32 %v3038_v39 }
0x28fb   :  { %v3239_v40 = vpop.eup %3238 }
0x28fc   :  { %v2749_v41 = vadd.f32 1.0, %v3239_v40 }
0x28fe   :  { %3240 = vrcp.f32 %v2749_v41  ;;  %v2761_v48 = vand.u32 2147483648, %v2749_v41  ;;  %vm2755_vm7 = vweird.f32 %v2749_v41  ;;  %v2759_v51 = vand.u32 2147483647, %v2749_v41 }
0x2900   :  { %v2762_v56 = vor.u32 1.1754944e-38, %v2761_v48  ;;  %vm2760_vm9 = vcmp.eq.f32.partialorder %v2759_v51, 8.507059e+37 }
0x2904   :  { %v3241_v43 = vpop.eup %3240 }
0x2905   :  { %v2751_v44 = vmul.f32 %v3241_v43, %v2749_v41  ;;  %vm2756_vm6 = vweird.f32 %v3241_v43 }
0x2906   :  { %vm2757_vm8 = vmor %vm2755_vm7, %vm2756_vm6 }
0x2907   :  { %v2752_v45 = vsub.f32 1.0, %v2751_v44 }
0x2908   :  { %v2685_v36 = vpop.f32.mrf.mxu2 }
0x2909   :  { %v2733_v37 = vadd.f32 %v2685_v36, %v3939_v15  ;;  %v2753_v46 = vmul.f32 %v3241_v43, %v2752_v45  ;;  %v2713_v57 = vadd.f32 %v2685_v36, %v2661_v53 }
0x290b   :  { %2735 = vrot.lane.b32.xlu1 %v2733_v37, %s3253_s13  ;;  %v2754_v47 = vadd.f32 %v3241_v43, %v2753_v46  ;;  %v3037_v59 = vmul.f32 -1.442695, %v2713_v57 }
0x290d   :  { %v2758_v15 = vsel %vm2757_vm8, %v3241_v43, %v2754_v47  ;;  %3242 = vpow2.f32 %v3037_v59 }
0x290e   :  { %v2763_v54 = vsel %vm2760_vm9, %v2762_v56, %v2758_v15 }
0x2913   :  { %v3243_v58 = vpop.eup %3242 }
0x2914   :  { %v2717_v49 = vadd.f32 1.0, %v3243_v58 }
0x2916   :  { %3244 = vrcp.f32 %v2717_v49  ;;  %v2729_v62 = vand.u32 2147483648, %v2717_v49  ;;  %vm2723_vm11 = vweird.f32 %v2717_v49  ;;  %v2727_v50 = vand.u32 2147483647, %v2717_v49 }
0x2918   :  { %v2730_v42 = vor.u32 1.1754944e-38, %v2729_v62  ;;  %vm2728_vm1 = vcmp.eq.f32.partialorder %v2727_v50, 8.507059e+37 }
0x291c   :  { %v3245_v61 = vpop.eup %3244 }
0x291d   :  { %v2719_v24 = vmul.f32 %v3245_v61, %v2717_v49  ;;  %vm2724_vm10 = vweird.f32 %v3245_v61 }
0x291e   :  { %vm2725_vm12 = vmor %vm2723_vm11, %vm2724_vm10 }
0x291f   :  { %v2720_v25 = vsub.f32 1.0, %v2719_v24 }
0x2921   :  { %v2721_v0 = vmul.f32 %v3245_v61, %v2720_v25 }
0x2923   :  { %v2722_v26 = vadd.f32 %v3245_v61, %v2721_v0 }
0x2925   :  { %v2726_v63 = vsel %vm2725_vm12, %v3245_v61, %v2722_v26 }
0x2926   :  { %v2731_v2 = vsel %vm2728_vm1, %v2730_v42, %v2726_v63 }
0x294d   :  { %v2768_v52 = vpop.permute.xlu2 %2767 }
0x294e   :  { %v2770_v60 = vmul.f32 %v2768_v52, %v2763_v54 }
0x2950   :  { %2772 = vrot.lane.b32.xlu1 %v2770_v60, %s3253_s13 }
0x297d   :  { %v2736_v29 = vpop.permute.xlu1 %2735 }
0x297e   :  { %v2738_v34 = vmul.f32 %v2736_v29, %v2731_v2 }
0x2980   :  { %2740 = vrot.lane.b32.xlu0 %v2738_v34, %s3253_s13 }
0x29c2   :  { %v2773_v8 = vpop.permute.xlu1 %2772 }
0x29c3   :  { %v2775_v1 = vadd.f32 %v2773_v8, %v2662_v31 }
0x29c5   :  { %3246 = vtanh.f32 %v2775_v1 }
0x29cb   :  { %v3247_v4 = vpop.eup %3246 }
0x29cc   :  { %v2788_v3 = vsub.f32 %v4108_v10, %v3247_v4  ;;  %v2801_v10 = vld [vmem:[%s4170_s6 + $0x10] sm:$0xff] }
0x29cd   :  { %2851 = vmatpush.msra.mxu1 %v2801_v10 }
0x29ce   :  { %2790 = vrot.lane.b32.xlu0 %v2788_v3, %s3254_s17 }
0x29cf   :  { %2852 = vmatpush.msra.mxu1 %v2800_v28 }
0x29f2   :  { %v2741_v5 = vpop.permute.xlu0 %2740 }
0x29f3   :  { %v2743_v55 = vadd.f32 %v2741_v5, %v2661_v53 }
0x29f5   :  { %3248 = vtanh.f32 %v2743_v55 }
0x29fb   :  { %v3249_v12 = vpop.eup %3248 }
0x29fc   :  { %v2777_v7 = vsub.f32 %v4112_v32, %v3249_v12  ;;  %v2799_v32 = vld [vmem:[%s4170_s6] sm:$0xff] }
0x29fd   :  { %2853 = vmatpush.msra.mxu1 %v2799_v32 }
0x29fe   :  { %2779 = vrot.lane.b32.xlu2 %v2777_v7, %s3254_s17 }
0x2a40   :  { %v2791_v13 = vpop.permute.xlu0 %2790 }
0x2a41   :  { %v2793_v16 = vmul.f32 %v2791_v13, %v2763_v54 }
0x2a43   :  { %2795 = vrot.lane.b32.xlu2 %v2793_v16, %s3255_s18 }
0x2a58   :  { %v2780_v11 = vpop.permute.xlu2 %2779 }
0x2a59   :  { %v2782_v9 = vmul.f32 %v2780_v11, %v2731_v2 }
0x2a5b   :  { %2784 = vrot.lane.b32.xlu1 %v2782_v9, %s3255_s18 }
0x2a9d   :  { %v2796_v17 = vpop.permute.xlu2 %2795 }
0x2a9e   :  { %v2798_v18 = vadd.f32 %v3247_v4, %v2796_v17 }
0x2aa0   :  { %2809 = vrot.lane.b32.xlu0 %v2798_v18, %s3253_s13 }
0x2acd   :  { %v2785_v23 = vpop.permute.xlu1 %2784 }
0x2ace   :  { %v2787_v6 = vadd.f32 %v3249_v12, %v2785_v23 }
0x2ad0   :  { %2834 = vrot.lane.b32.xlu1 %v2787_v6, %s3253_s13 }
0x2b12   :  { %v2810_v14 = vpop.permute.xlu0 %2809 }
0x2b13   :  { %3043 = vmatmul.msk.f32.vlgmr.msra.gmra.mxu0 %vm45_vm0, %v2810_v14 }
0x2b42   :  { %v2835_v33 = vpop.permute.xlu1 %2834 }
0x2b43   :  { %3044 = vmatmul.msk.f32.vlgmr.msra.gmra.mxu1 %vm45_vm0, %v2835_v33 }
0x2b90   :  { %v2830_v35 = vpop.f32.mrf.mxu0 }
0x2bc0   :  { %v2855_v36 = vpop.f32.mrf.mxu1 }
0x2bc1   :  { %v2856_v37 = vadd.f32 %v2855_v36, %v2830_v35 }
0x2bc3   :  { %v2862_v31 = vadd.f32 %v3057_v30, %v2856_v37 }
0x2bc5   :  { %2864 = vst.msk [vmem:[%s4172_s8] sm:$0xff] %vm2863_vm13, %v2862_v31 }

</bundles_post_ra>
